<compile_context>
chip_gen: v7x
topology: tpu7x:2x2x1
jax: 0.10.0
libtpu: 0.0.40
codegen_flags: <defaults>
</compile_context>

<pallas_src>
import functools
import math

import jax
import jax.numpy as jnp
from jax.experimental import pallas as pl
from jax.experimental.pallas import tpu as pltpu

LN_EPS = 1e-5


def _round_up(x, m):
    return (x + m - 1) // m * m


@functools.lru_cache(maxsize=None)
def _vmem_limit_bytes():
    """Generation-aware scoped-VMEM request: leave headroom on v7x (64 MiB
    physical per TC), allow bigger tiles on v5e/v6e (128 MiB physical)."""
    try:
        cap = int(pltpu.get_tpu_info().vmem_capacity_bytes)
    except Exception:
        cap = 128 * 1024 * 1024
    return int(min(max(cap - 16 * 1024 * 1024, 32 * 1024 * 1024),
                   100 * 1024 * 1024))


# ----------------------------------------------------------------------------
# in-kernel helpers (fp32 statistics, bf16/fp32 MXU operands, fp32 accumulate)
# ----------------------------------------------------------------------------
def _ln(x, w, b):
    # x: (rows, D) fp32; w, b: (1, D)
    mu = jnp.mean(x, axis=-1, keepdims=True)
    var = jnp.mean(jnp.square(x - mu), axis=-1, keepdims=True)
    return (x - mu) * jax.lax.rsqrt(var + LN_EPS) * w.astype(jnp.float32) \
        + b.astype(jnp.float32)


def _mm(a, w):
    # MXU matmul: cast the activation to the weight dtype (bf16 or fp32),
    # accumulate in fp32.
    return jnp.dot(a.astype(w.dtype), w, preferred_element_type=jnp.float32)


# ----------------------------------------------------------------------------
# kernels
# ----------------------------------------------------------------------------
def _ln_kernel(x_ref, w_ref, b_ref, o_ref):
    x = x_ref[...].astype(jnp.float32)
    o_ref[...] = _ln(x, w_ref[...], b_ref[...]).astype(o_ref.dtype)


def _linear_kernel(x_ref, w_ref, b_ref, o_ref):
    x = x_ref[...].astype(jnp.float32)
    o_ref[...] = (_mm(x, w_ref[...]) + b_ref[...].astype(jnp.float32)
                  ).astype(o_ref.dtype)


def _ln_linear_kernel(x_ref, lnw_ref, lnb_ref, w_ref, b_ref, o_ref):
    # LayerNorm followed by a fused projection (used for ln_1+QKV and
    # ln_post+proj).
    x = x_ref[...].astype(jnp.float32)
    xn = _ln(x, lnw_ref[...], lnb_ref[...])
    o_ref[...] = (_mm(xn, w_ref[...]) + b_ref[...].astype(jnp.float32)
                  ).astype(o_ref.dtype)


def _attn_kernel(qkv_ref, o_ref, *, n_head, d_head, l_valid, scale, exp_dtype):
    # One batch element per grid step: qkv_ref is the (Lp, 3D) slab in the
    # padded residual-row layout; output is written as a single lane-dense
    # (Lp, D) block (no XLA head transposes on either side).
    # TODO(synk): attn_mask is None for VisualTransformer; a general masked
    # variant (beyond key-padding masking) is not implemented.
    lp = qkv_ref.shape[0]
    d = n_head * d_head
    need_mask = l_valid < lp
    if need_mask:
        kv_valid = jax.lax.broadcasted_iota(jnp.int32, (1, lp), 1) < l_valid

    parts = []
    for h in range(n_head):
        q = qkv_ref[:, h * d_head:(h + 1) * d_head]
        k = qkv_ref[:, d + h * d_head:d + (h + 1) * d_head]
        v = qkv_ref[:, 2 * d + h * d_head:2 * d + (h + 1) * d_head]
        s = jax.lax.dot_general(q, k, (((1,), (1,)), ((), ())),
                                preferred_element_type=jnp.float32) * scale
        if need_mask:
            s = jnp.where(kv_valid, s, -jnp.inf)        # mask padded keys
        m = jnp.max(s, axis=-1, keepdims=True)
        p = jnp.exp((s - m).astype(exp_dtype))          # bf16 exp on bf16 path
        denom = jnp.sum(p.astype(jnp.float32), axis=-1, keepdims=True)
        inv = pl.reciprocal(denom, approx=True)         # EUP, off the VALU path
        p = (p.astype(jnp.float32) * inv).astype(v.dtype)
        o = jnp.dot(p, v, preferred_element_type=jnp.float32)
        parts.append(o)
    # One full-width (lane-dense) store of all heads concatenated.
    o_ref[...] = jnp.concatenate(parts, axis=-1).astype(o_ref.dtype)


def _proj_mlp_kernel(attn_ref, x_ref, wo_ref, bo_ref, ln2w_ref, ln2b_ref,
                     wfc_ref, bfc_ref, wpr_ref, bpr_ref, o_ref, *, n_chunks):
    # out-proj + residual + ln_2 + MLP(QuickGELU) + residual, fused per
    # token-row tile.  The hidden (4D) dimension is processed in n_chunks
    # column chunks to cap the live fp32 intermediate.
    x = x_ref[...].astype(jnp.float32)
    x = x + _mm(attn_ref[...], wo_ref[...]) + bo_ref[...].astype(jnp.float32)
    xn = _ln(x, ln2w_ref[...], ln2b_ref[...])
    xn_w = xn.astype(wfc_ref.dtype)

    hidden = wfc_ref.shape[1]
    ck = hidden // n_chunks
    acc = x
    for c in range(n_chunks):
        wfc_c = wfc_ref[:, c * ck:(c + 1) * ck]
        bfc_c = bfc_ref[:, c * ck:(c + 1) * ck].astype(jnp.float32)
        h = jnp.dot(xn_w, wfc_c, preferred_element_type=jnp.float32) + bfc_c
        h = h * jax.nn.sigmoid(1.702 * h)               # QuickGELU (fp32)
        acc = acc + _mm(h, wpr_ref[c * ck:(c + 1) * ck, :])
    acc = acc + bpr_ref[...].astype(jnp.float32)
    o_ref[...] = acc.astype(o_ref.dtype)


# ----------------------------------------------------------------------------
# pallas_call wrappers
# ----------------------------------------------------------------------------
def _row_tiled_call(kernel, row_inputs, const_inputs, out_cols, out_dtype,
                    *, tm=256, flops=1, transcendentals=0):
    """Run `kernel(row_refs..., const_refs..., o_ref)` over tiles of rows.

    row_inputs:   (T, C_i) arrays, tiled along rows (grid axis, "parallel").
    const_inputs: 2-D weights/biases, kept fully VMEM-resident via constant
                  index_maps.  No padding is performed; a ragged trailing
                  block is handled by the cdiv grid.
    """
    T = row_inputs[0].shape[0]
    tm = T if T <= tm else tm
    grid = (pl.cdiv(T, tm),)

    in_specs = [pl.BlockSpec((tm, a.shape[1]), lambda i: (i, 0))
                for a in row_inputs]
    # TODO(synk): pipeline_mode=pl.Buffered(1) on these constant-index specs
    # would halve resident weight VMEM on v7x; left at default for portability.
    in_specs += [pl.BlockSpec(c.shape, lambda i: (0, 0)) for c in const_inputs]

    bytes_accessed = sum(int(a.size) * a.dtype.itemsize for a in row_inputs)
    bytes_accessed += sum(int(c.size) * c.dtype.itemsize for c in const_inputs)
    bytes_accessed += int(T) * int(out_cols) * jnp.dtype(out_dtype).itemsize

    return pl.pallas_call(
        kernel,
        out_shape=jax.ShapeDtypeStruct((T, out_cols), out_dtype),
        grid=grid,
        in_specs=in_specs,
        out_specs=pl.BlockSpec((tm, out_cols), lambda i: (i, 0)),
        compiler_params=pltpu.CompilerParams(
            dimension_semantics=("parallel",),
            vmem_limit_bytes=_vmem_limit_bytes()),
        cost_estimate=pl.CostEstimate(
            flops=max(int(flops), 1),
            transcendentals=int(transcendentals),
            bytes_accessed=int(bytes_accessed)),
    )(*row_inputs, *const_inputs)


def _attention_fused(qkv2d, n_batch, lp, n_head, d_head, l_valid, scale,
                     out_dtype, exp_dtype):
    """qkv2d: (n_batch*lp, 3D) in the padded residual-row layout.
    Returns (n_batch*lp, D) in the same layout (no head transposes)."""
    d = n_head * d_head
    kern = functools.partial(_attn_kernel, n_head=n_head, d_head=d_head,
                             l_valid=l_valid, scale=scale, exp_dtype=exp_dtype)
    bytes_accessed = (int(qkv2d.size) * qkv2d.dtype.itemsize
                      + n_batch * lp * d * jnp.dtype(out_dtype).itemsize)
    return pl.pallas_call(
        kern,
        out_shape=jax.ShapeDtypeStruct((n_batch * lp, d), out_dtype),
        grid=(n_batch,),
        in_specs=[pl.BlockSpec((lp, 3 * d), lambda b: (b, 0))],
        out_specs=pl.BlockSpec((lp, d), lambda b: (b, 0)),
        compiler_params=pltpu.CompilerParams(
            dimension_semantics=("parallel",),
            vmem_limit_bytes=_vmem_limit_bytes()),
        cost_estimate=pl.CostEstimate(
            flops=4 * n_batch * n_head * lp * lp * d_head,
            transcendentals=n_batch * n_head * lp * lp,
            bytes_accessed=int(bytes_accessed)),
    )(qkv2d)


def residual_attention_block(x2d, n_batch, lp, l_valid, blk, n_head, dtype):
    """x2d: (n_batch*lp, D) fp32 residual stream (row = batch*lp + token)."""
    (ln1_w, ln1_b, w_in, b_in, w_out, b_out,
     ln2_w, ln2_b, w_fc, b_fc, w_proj, b_proj) = blk
    D = ln1_w.shape[1]
    Dh = D // n_head
    T = x2d.shape[0]

    # --- ln_1 + fused QKV projection; output stays in the compute dtype ---
    qkv = _row_tiled_call(
        _ln_linear_kernel, [x2d],
        [ln1_w, ln1_b, w_in, b_in],
        3 * D, dtype, tm=256,
        flops=2 * T * D * 3 * D)

    # --- fused multi-head attention, per-batch grid, no XLA transposes ---
    exp_dtype = (jnp.bfloat16 if jnp.dtype(dtype) == jnp.dtype(jnp.bfloat16)
                 else jnp.float32)
    attn2d = _attention_fused(qkv, n_batch, lp, n_head, Dh, l_valid,
                              1.0 / math.sqrt(Dh), dtype, exp_dtype)

    # --- out-proj + residual + ln_2 + MLP + residual (fused, token-tiled) ---
    hidden = w_fc.shape[1]
    n_chunks = 1
    for ck in (2048, 1024):
        if hidden > ck and hidden % ck == 0:
            n_chunks = hidden // ck
            break
    return _row_tiled_call(
        functools.partial(_proj_mlp_kernel, n_chunks=n_chunks),
        [attn2d, x2d],
        [w_out, b_out, ln2_w, ln2_b, w_fc, b_fc, w_proj, b_proj],
        D, jnp.float32, tm=256,
        flops=2 * T * 9 * D * D,
        transcendentals=T * 4 * D)


def prepare_params(params, dtype):
    """Pre-cast all matmul weights to the compute dtype ONCE (outside jit)."""
    p = dict(params)
    p['conv_w'] = params['conv_w'].astype(dtype)
    p['proj'] = params['proj'].astype(dtype)
    blocks = []
    for blk in params['blocks']:
        (ln1_w, ln1_b, w_in, b_in, w_out, b_out,
         ln2_w, ln2_b, w_fc, b_fc, w_proj, b_proj) = blk
        blocks.append((ln1_w, ln1_b, w_in.astype(dtype), b_in,
                       w_out.astype(dtype), b_out, ln2_w, ln2_b,
                       w_fc.astype(dtype), b_fc, w_proj.astype(dtype), b_proj))
    p['blocks'] = blocks
    return p


def visual_transformer_forward(x, params, *, patch_size, n_head,
                               dtype=jnp.bfloat16):
    """VisualTransformer forward. x: (B, 3, H, W) fp32 -> (B, output_dim).
    `params` should come from prepare_params (weights in compute dtype)."""
    B, C, H, W = x.shape
    P = patch_size
    Gh, Gw = H // P, W // P
    D = params['conv_w'].shape[1]

    # conv1 (stride == kernel) == per-patch matmul; patch extraction is
    # XLA-side layout plumbing.
    patches = x.reshape(B, C, Gh, P, Gw, P).transpose(0, 2, 4, 1, 3, 5)
    patches = patches.reshape(B * Gh * Gw, C * P * P)
    emb = _row_tiled_call(
        _linear_kernel, [patches],
        [params['conv_w'], params['conv_b0']],
        D, jnp.float32, tm=256,
        flops=2 * patches.shape[0] * patches.shape[1] * D)
    emb = emb.reshape(B, Gh * Gw, D)

    # class token + positional embedding (tiny elementwise, XLA side)
    cls = jnp.broadcast_to(params['class_embedding'].reshape(1, 1, D),
                           (B, 1, D))
    xt = jnp.concatenate([cls, emb], axis=1) + params['positional_embedding'][None]
    L = xt.shape[1]

    # Pad the sequence ONCE (to a multiple of 16 for clean bf16/(8,128) tiling
    # and aligned per-batch attention blocks); keep padded rows through all
    # layers, only the CLS rows are read at the end.
    Lp = _round_up(L, 16)
    if Lp != L:
        xt = jnp.pad(xt, ((0, 0), (0, Lp - L), (0, 0)))
    x2d = xt.reshape(B * Lp, D)

    # ln_pre (memory-bound -> larger row tile)
    x2d = _row_tiled_call(_ln_kernel, [x2d],
                          [params['ln_pre_w'], params['ln_pre_b']],
                          D, jnp.float32, tm=1024, flops=10 * B * Lp * D)

    # transformer blocks
    for blk in params['blocks']:
        x2d = residual_attention_block(x2d, B, Lp, L, blk, n_head, dtype)

    # ln_post on the CLS token + output projection
    cls_tok = x2d.reshape(B, Lp, D)[:, 0, :]
    out_dim = params['proj'].shape[1]
    return _row_tiled_call(
        _ln_linear_kernel, [cls_tok],
        [params['ln_post_w'], params['ln_post_b'],
         params['proj'], params['proj_b0']],
        out_dim, jnp.float32, tm=256,
        flops=2 * B * D * out_dim)


# ----------------------------------------------------------------------------
# parameters + pure-JAX reference
# ----------------------------------------------------------------------------
def init_params(key, *, input_resolution, patch_size, width, layers, heads,
                output_dim):
    D, P = width, patch_size
    G = (input_resolution // P) ** 2
    scale = D ** -0.5
    keys = jax.random.split(key, 4 + layers)
    conv_w = scale * jax.random.normal(keys[0], (D, 3 * P * P), jnp.float32)
    params = {
        'conv_w': conv_w.T,                                    # (3*P*P, D)
        'conv_b0': jnp.zeros((1, D), jnp.float32),
        'class_embedding': scale * jax.random.normal(keys[1], (D,), jnp.float32),
        'positional_embedding': scale * jax.random.normal(
            keys[2], (G + 1, D), jnp.float32),
        'ln_pre_w': jnp.ones((1, D), jnp.float32),
        'ln_pre_b': jnp.zeros((1, D), jnp.float32),
        'ln_post_w': jnp.ones((1, D), jnp.float32),
        'ln_post_b': jnp.zeros((1, D), jnp.float32),
        'proj': scale * jax.random.normal(keys[3], (D, output_dim), jnp.float32),
        'proj_b0': jnp.zeros((1, output_dim), jnp.float32),
        'blocks': [],
    }
    s = 0.02
    for l in range(layers):
        ks = jax.random.split(keys[4 + l], 8)
        w_in = (s * jax.random.normal(ks[0], (3 * D, D), jnp.float32)).T
        b_in = (s * jax.random.normal(ks[1], (3 * D,), jnp.float32)).reshape(1, 3 * D)
        w_out = (s * jax.random.normal(ks[2], (D, D), jnp.float32)).T
        b_out = (s * jax.random.normal(ks[3], (D,), jnp.float32)).reshape(1, D)
        w_fc = (s * jax.random.normal(ks[4], (4 * D, D), jnp.float32)).T
        b_fc = (s * jax.random.normal(ks[5], (4 * D,), jnp.float32)).reshape(1, 4 * D)
        w_proj = (s * jax.random.normal(ks[6], (D, 4 * D), jnp.float32)).T
        b_proj = (s * jax.random.normal(ks[7], (D,), jnp.float32)).reshape(1, D)
        params['blocks'].append(
            (jnp.ones((1, D), jnp.float32), jnp.zeros((1, D), jnp.float32),
             w_in, b_in, w_out, b_out,
             jnp.ones((1, D), jnp.float32), jnp.zeros((1, D), jnp.float32),
             w_fc, b_fc, w_proj, b_proj))
    return params


def reference(x, params, *, patch_size, n_head):
    """Pure-JAX fp32 reference mirroring the PyTorch forward."""
    B = x.shape[0]
    P = patch_size
    Gh, Gw = x.shape[2] // P, x.shape[3] // P
    D = params['conv_w'].shape[1]

    def ln(z, w, b):
        mu = jnp.mean(z, -1, keepdims=True)
        var = jnp.mean((z - mu) ** 2, -1, keepdims=True)
        shp = (1,) * (z.ndim - 1) + (-1,)
        return (z - mu) / jnp.sqrt(var + LN_EPS) * w.reshape(shp) + b.reshape(shp)

    patches = x.reshape(B, 3, Gh, P, Gw, P).transpose(0, 2, 4, 1, 3, 5)
    patches = patches.reshape(B, Gh * Gw, 3 * P * P)
    emb = patches @ params['conv_w']
    cls = jnp.broadcast_to(params['class_embedding'].reshape(1, 1, D), (B, 1, D))
    xt = jnp.concatenate([cls, emb], axis=1) + params['positional_embedding'][None]
    xt = ln(xt, params['ln_pre_w'], params['ln_pre_b'])
    L = xt.shape[1]
    Dh = D // n_head

    for blk in params['blocks']:
        (ln1_w, ln1_b, w_in, b_in, w_out, b_out,
         ln2_w, ln2_b, w_fc, b_fc, w_proj, b_proj) = blk
        xn = ln(xt, ln1_w, ln1_b)
        qkv = xn @ w_in + b_in
        q, k, v = jnp.split(qkv, 3, axis=-1)
        heads = lambda t: t.reshape(B, L, n_head, Dh).transpose(0, 2, 1, 3)
        q, k, v = heads(q), heads(k), heads(v)
        s = jnp.einsum('bhld,bhmd->bhlm', q, k) / jnp.sqrt(jnp.float32(Dh))
        p = jax.nn.softmax(s, axis=-1)
        o = jnp.einsum('bhlm,bhmd->bhld', p, v).transpose(0, 2, 1, 3)
        xt = xt + o.reshape(B, L, D) @ w_out + b_out
        xn2 = ln(xt, ln2_w, ln2_b)
        h1 = xn2 @ w_fc + b_fc
        g = h1 * jax.nn.sigmoid(1.702 * h1)
        xt = xt + g @ w_proj + b_proj

    cls_tok = ln(xt[:, 0, :], params['ln_post_w'], params['ln_post_b'])
    return cls_tok @ params['proj']


if __name__ == "__main__":
    INPUT_RES, PATCH, WIDTH, LAYERS, HEADS, OUT_DIM = 16, 4, 32, 2, 4, 16
    BATCH = 2

    key = jax.random.PRNGKey(0)
    kx, kp = jax.random.split(key)
    x = jax.random.normal(kx, (BATCH, 3, INPUT_RES, INPUT_RES), jnp.float32)
    params = init_params(kp, input_resolution=INPUT_RES, patch_size=PATCH,
                         width=WIDTH, layers=LAYERS, heads=HEADS,
                         output_dim=OUT_DIM)

    # Weights pre-cast once, outside the jitted forward.
    params_bf16 = prepare_params(params, jnp.bfloat16)
    params_f32 = prepare_params(params, jnp.float32)

    fwd_bf16 = jax.jit(functools.partial(visual_transformer_forward,
                                         patch_size=PATCH, n_head=HEADS,
                                         dtype=jnp.bfloat16))
    fwd_f32 = jax.jit(functools.partial(visual_transformer_forward,
                                        patch_size=PATCH, n_head=HEADS,
                                        dtype=jnp.float32))

    out_bf16 = jax.block_until_ready(fwd_bf16(x, params_bf16))
    out_f32 = jax.block_until_ready(fwd_f32(x, params_f32))

    ref = reference(x, params, patch_size=PATCH, n_head=HEADS)
    assert out_f32.shape == (BATCH, OUT_DIM)
    assert out_bf16.shape == (BATCH, OUT_DIM)
    err32 = float(jnp.max(jnp.abs(out_f32 - ref)))
    err16 = float(jnp.max(jnp.abs(out_bf16 - ref)))
    assert jnp.allclose(out_f32, ref, atol=2e-3, rtol=2e-3), \
        f"fp32-operand path max err {err32}"
    # bf16 path: bf16 weights, bf16 QKV/attention intermediates, bf16 softmax
    # exponent -> slightly looser budget than pure-bf16-matmul.
    assert jnp.allclose(out_bf16, ref, atol=7.5e-2, rtol=7.5e-2), \
        f"bf16-operand path max err {err16}"
    print("KERNEL_OK")
</pallas_src>

<mosaic_0001>
module attributes {stable_mosaic.version = 11 : i64} {
  func.func @_ln_linear_kernel(%arg0: i32, %arg1: memref<64x32xf32, #tpu.memory_space<vmem>>, %arg2: memref<1x32xf32, #tpu.memory_space<vmem>>, %arg3: memref<1x32xf32, #tpu.memory_space<vmem>>, %arg4: memref<32x96xbf16, #tpu.memory_space<vmem>>, %arg5: memref<1x96xf32, #tpu.memory_space<vmem>>, %arg6: memref<64x96xbf16, #tpu.memory_space<vmem>>) attributes {dimension_semantics = [#tpu.dimension_semantics<parallel>], iteration_bounds = array<i64: 1>, scalar_prefetch = 0 : i64, scratch_operands = 0 : i64, tpu.core_type = #tpu.core_type<tc>, window_params = [{transform_indices = @transform_0, window_bounds = array<i64: 64, 32>}, {pipeline_mode = #tpu.pipeline_mode<synchronous>, transform_indices = @transform_1, window_bounds = array<i64: 1, 32>}, {pipeline_mode = #tpu.pipeline_mode<synchronous>, transform_indices = @transform_2, window_bounds = array<i64: 1, 32>}, {pipeline_mode = #tpu.pipeline_mode<synchronous>, transform_indices = @transform_3, window_bounds = array<i64: 32, 96>}, {pipeline_mode = #tpu.pipeline_mode<synchronous>, transform_indices = @transform_4, window_bounds = array<i64: 1, 96>}, {transform_indices = @transform_5, window_bounds = array<i64: 64, 96>}]} {
    %c0 = arith.constant 0 : index
    %c0_0 = arith.constant 0 : index
    %0 = vector.load %arg1[%c0, %c0_0] : memref<64x32xf32, #tpu.memory_space<vmem>>, vector<64x32xf32>
    %c0_1 = arith.constant 0 : index
    %c0_2 = arith.constant 0 : index
    %1 = vector.load %arg2[%c0_1, %c0_2] : memref<1x32xf32, #tpu.memory_space<vmem>>, vector<1x32xf32>
    %c0_3 = arith.constant 0 : index
    %c0_4 = arith.constant 0 : index
    %2 = vector.load %arg3[%c0_3, %c0_4] : memref<1x32xf32, #tpu.memory_space<vmem>>, vector<1x32xf32>
    %cst = arith.constant dense<0.000000e+00> : vector<64xf32>
    %3 = vector.multi_reduction <add>, %0, %cst [1] : vector<64x32xf32> to vector<64xf32>
    %4 = vector.shape_cast %3 : vector<64xf32> to vector<64x1xf32>
    %cst_5 = arith.constant 3.200000e+01 : f32
    %5 = vector.broadcast %cst_5 : f32 to vector<64x1xf32>
    %6 = arith.divf %4, %5 : vector<64x1xf32>
    %7 = vector.broadcast %6 : vector<64x1xf32> to vector<64x32xf32>
    %8 = arith.subf %0, %7 : vector<64x32xf32>
    %9 = arith.mulf %8, %8 : vector<64x32xf32>
    %cst_6 = arith.constant dense<0.000000e+00> : vector<64xf32>
    %10 = vector.multi_reduction <add>, %9, %cst_6 [1] : vector<64x32xf32> to vector<64xf32>
    %11 = vector.shape_cast %10 : vector<64xf32> to vector<64x1xf32>
    %cst_7 = arith.constant 3.200000e+01 : f32
    %12 = vector.broadcast %cst_7 : f32 to vector<64x1xf32>
    %13 = arith.divf %11, %12 : vector<64x1xf32>
    %14 = vector.broadcast %6 : vector<64x1xf32> to vector<64x32xf32>
    %15 = arith.subf %0, %14 : vector<64x32xf32>
    %cst_8 = arith.constant 9.99999974E-6 : f32
    %16 = vector.broadcast %cst_8 : f32 to vector<64x1xf32>
    %17 = arith.addf %13, %16 : vector<64x1xf32>
    %18 = math.rsqrt %17 : vector<64x1xf32>
    %19 = vector.broadcast %18 : vector<64x1xf32> to vector<64x32xf32>
    %20 = arith.mulf %15, %19 : vector<64x32xf32>
    %21 = vector.broadcast %1 : vector<1x32xf32> to vector<64x32xf32>
    %22 = arith.mulf %20, %21 : vector<64x32xf32>
    %23 = vector.broadcast %2 : vector<1x32xf32> to vector<64x32xf32>
    %24 = arith.addf %22, %23 : vector<64x32xf32>
    %c0_9 = arith.constant 0 : index
    %c0_10 = arith.constant 0 : index
    %25 = vector.load %arg4[%c0_9, %c0_10] : memref<32x96xbf16, #tpu.memory_space<vmem>>, vector<32x96xbf16>
    %26 = arith.truncf %24 : vector<64x32xf32> to vector<64x32xbf16>
    %cst_11 = arith.constant dense<0.000000e+00> : vector<64x96xf32>
    %27 = tpu.matmul %26, %25, %cst_11 {dimension_numbers = #tpu.dot_dimension_numbers<[1], [0], [0], [1], [0, 0, 1, 1], [], []>} : vector<64x32xbf16>, vector<32x96xbf16>, vector<64x96xf32> -> vector<64x96xf32>
    %c0_12 = arith.constant 0 : index
    %c0_13 = arith.constant 0 : index
    %28 = vector.load %arg5[%c0_12, %c0_13] : memref<1x96xf32, #tpu.memory_space<vmem>>, vector<1x96xf32>
    %29 = vector.broadcast %28 : vector<1x96xf32> to vector<64x96xf32>
    %30 = arith.addf %27, %29 : vector<64x96xf32>
    %31 = arith.truncf %30 : vector<64x96xf32> to vector<64x96xbf16>
    %c0_14 = arith.constant 0 : index
    %c0_15 = arith.constant 0 : index
    %32 = vector.load %arg6[%c0_14, %c0_15] : memref<64x96xbf16, #tpu.memory_space<vmem>>, vector<64x96xbf16>
    tpu.vector_store %arg6[%c0_14, %c0_15], %31 {strides = array<i32>} : memref<64x96xbf16, #tpu.memory_space<vmem>>, vector<64x96xbf16>,
    return
  }
  func.func @transform_0(%arg0: i32) -> (i32, i32) {
    %c0_i32 = arith.constant 0 : i32
    %c0_i32_0 = arith.constant 0 : i32
    return %arg0, %c0_i32 : i32, i32
  }
  func.func @transform_1(%arg0: i32) -> (i32, i32) {
    %c0_i32 = arith.constant 0 : i32
    %c0_i32_0 = arith.constant 0 : i32
    %c0_i32_1 = arith.constant 0 : i32
    return %c0_i32, %c0_i32_0 : i32, i32
  }
  func.func @transform_2(%arg0: i32) -> (i32, i32) {
    %c0_i32 = arith.constant 0 : i32
    %c0_i32_0 = arith.constant 0 : i32
    %c0_i32_1 = arith.constant 0 : i32
    return %c0_i32, %c0_i32_0 : i32, i32
  }
  func.func @transform_3(%arg0: i32) -> (i32, i32) {
    %c0_i32 = arith.constant 0 : i32
    %c0_i32_0 = arith.constant 0 : i32
    %c0_i32_1 = arith.constant 0 : i32
    return %c0_i32, %c0_i32_0 : i32, i32
  }
  func.func @transform_4(%arg0: i32) -> (i32, i32) {
    %c0_i32 = arith.constant 0 : i32
    %c0_i32_0 = arith.constant 0 : i32
    %c0_i32_1 = arith.constant 0 : i32
    return %c0_i32, %c0_i32_0 : i32, i32
  }
  func.func @transform_5(%arg0: i32) -> (i32, i32) {
    %c0_i32 = arith.constant 0 : i32
    %c0_i32_0 = arith.constant 0 : i32
    return %arg0, %c0_i32 : i32, i32
  }
}

module attributes {stable_mosaic.version = 11 : i64} {
  func.func @_linear_kernel(%arg0: i32, %arg1: memref<32x48xf32, #tpu.memory_space<vmem>>, %arg2: memref<48x32xbf16, #tpu.memory_space<vmem>>, %arg3: memref<1x32xf32, #tpu.memory_space<vmem>>, %arg4: memref<32x32xf32, #tpu.memory_space<vmem>>) attributes {dimension_semantics = [#tpu.dimension_semantics<parallel>], iteration_bounds = array<i64: 1>, scalar_prefetch = 0 : i64, scratch_operands = 0 : i64, tpu.core_type = #tpu.core_type<tc>, window_params = [{transform_indices = @transform_0, window_bounds = array<i64: 32, 48>}, {pipeline_mode = #tpu.pipeline_mode<synchronous>, transform_indices = @transform_1, window_bounds = array<i64: 48, 32>}, {pipeline_mode = #tpu.pipeline_mode<synchronous>, transform_indices = @transform_2, window_bounds = array<i64: 1, 32>}, {transform_indices = @transform_3, window_bounds = array<i64: 32, 32>}]} {
    %c0 = arith.constant 0 : index
    %c0_0 = arith.constant 0 : index
    %0 = vector.load %arg1[%c0, %c0_0] : memref<32x48xf32, #tpu.memory_space<vmem>>, vector<32x48xf32>
    %c0_1 = arith.constant 0 : index
    %c0_2 = arith.constant 0 : index
    %1 = vector.load %arg2[%c0_1, %c0_2] : memref<48x32xbf16, #tpu.memory_space<vmem>>, vector<48x32xbf16>
    %2 = arith.truncf %0 : vector<32x48xf32> to vector<32x48xbf16>
    %cst = arith.constant dense<0.000000e+00> : vector<32x32xf32>
    %3 = tpu.matmul %2, %1, %cst {dimension_numbers = #tpu.dot_dimension_numbers<[1], [0], [0], [1], [0, 0, 1, 1], [], []>} : vector<32x48xbf16>, vector<48x32xbf16>, vector<32x32xf32> -> vector<32x32xf32>
    %c0_3 = arith.constant 0 : index
    %c0_4 = arith.constant 0 : index
    %4 = vector.load %arg3[%c0_3, %c0_4] : memref<1x32xf32, #tpu.memory_space<vmem>>, vector<1x32xf32>
    %5 = vector.broadcast %4 : vector<1x32xf32> to vector<32x32xf32>
    %6 = arith.addf %3, %5 : vector<32x32xf32>
    %c0_5 = arith.constant 0 : index
    %c0_6 = arith.constant 0 : index
    %7 = vector.load %arg4[%c0_5, %c0_6] : memref<32x32xf32, #tpu.memory_space<vmem>>, vector<32x32xf32>
    tpu.vector_store %arg4[%c0_5, %c0_6], %6 {strides = array<i32>} : memref<32x32xf32, #tpu.memory_space<vmem>>, vector<32x32xf32>,
    return
  }
  func.func @transform_0(%arg0: i32) -> (i32, i32) {
    %c0_i32 = arith.constant 0 : i32
    %c0_i32_0 = arith.constant 0 : i32
    return %arg0, %c0_i32 : i32, i32
  }
  func.func @transform_1(%arg0: i32) -> (i32, i32) {
    %c0_i32 = arith.constant 0 : i32
    %c0_i32_0 = arith.constant 0 : i32
    %c0_i32_1 = arith.constant 0 : i32
    return %c0_i32, %c0_i32_0 : i32, i32
  }
  func.func @transform_2(%arg0: i32) -> (i32, i32) {
    %c0_i32 = arith.constant 0 : i32
    %c0_i32_0 = arith.constant 0 : i32
    %c0_i32_1 = arith.constant 0 : i32
    return %c0_i32, %c0_i32_0 : i32, i32
  }
  func.func @transform_3(%arg0: i32) -> (i32, i32) {
    %c0_i32 = arith.constant 0 : i32
    %c0_i32_0 = arith.constant 0 : i32
    return %arg0, %c0_i32 : i32, i32
  }
}

module attributes {stable_mosaic.version = 11 : i64} {
  func.func @_ln_kernel(%arg0: i32, %arg1: memref<64x32xf32, #tpu.memory_space<vmem>>, %arg2: memref<1x32xf32, #tpu.memory_space<vmem>>, %arg3: memref<1x32xf32, #tpu.memory_space<vmem>>, %arg4: memref<64x32xf32, #tpu.memory_space<vmem>>) attributes {dimension_semantics = [#tpu.dimension_semantics<parallel>], iteration_bounds = array<i64: 1>, scalar_prefetch = 0 : i64, scratch_operands = 0 : i64, tpu.core_type = #tpu.core_type<tc>, window_params = [{transform_indices = @transform_0, window_bounds = array<i64: 64, 32>}, {pipeline_mode = #tpu.pipeline_mode<synchronous>, transform_indices = @transform_1, window_bounds = array<i64: 1, 32>}, {pipeline_mode = #tpu.pipeline_mode<synchronous>, transform_indices = @transform_2, window_bounds = array<i64: 1, 32>}, {transform_indices = @transform_3, window_bounds = array<i64: 64, 32>}]} {
    %c0 = arith.constant 0 : index
    %c0_0 = arith.constant 0 : index
    %0 = vector.load %arg1[%c0, %c0_0] : memref<64x32xf32, #tpu.memory_space<vmem>>, vector<64x32xf32>
    %c0_1 = arith.constant 0 : index
    %c0_2 = arith.constant 0 : index
    %1 = vector.load %arg2[%c0_1, %c0_2] : memref<1x32xf32, #tpu.memory_space<vmem>>, vector<1x32xf32>
    %c0_3 = arith.constant 0 : index
    %c0_4 = arith.constant 0 : index
    %2 = vector.load %arg3[%c0_3, %c0_4] : memref<1x32xf32, #tpu.memory_space<vmem>>, vector<1x32xf32>
    %cst = arith.constant dense<0.000000e+00> : vector<64xf32>
    %3 = vector.multi_reduction <add>, %0, %cst [1] : vector<64x32xf32> to vector<64xf32>
    %4 = vector.shape_cast %3 : vector<64xf32> to vector<64x1xf32>
    %cst_5 = arith.constant 3.200000e+01 : f32
    %5 = vector.broadcast %cst_5 : f32 to vector<64x1xf32>
    %6 = arith.divf %4, %5 : vector<64x1xf32>
    %7 = vector.broadcast %6 : vector<64x1xf32> to vector<64x32xf32>
    %8 = arith.subf %0, %7 : vector<64x32xf32>
    %9 = arith.mulf %8, %8 : vector<64x32xf32>
    %cst_6 = arith.constant dense<0.000000e+00> : vector<64xf32>
    %10 = vector.multi_reduction <add>, %9, %cst_6 [1] : vector<64x32xf32> to vector<64xf32>
    %11 = vector.shape_cast %10 : vector<64xf32> to vector<64x1xf32>
    %cst_7 = arith.constant 3.200000e+01 : f32
    %12 = vector.broadcast %cst_7 : f32 to vector<64x1xf32>
    %13 = arith.divf %11, %12 : vector<64x1xf32>
    %14 = vector.broadcast %6 : vector<64x1xf32> to vector<64x32xf32>
    %15 = arith.subf %0, %14 : vector<64x32xf32>
    %cst_8 = arith.constant 9.99999974E-6 : f32
    %16 = vector.broadcast %cst_8 : f32 to vector<64x1xf32>
    %17 = arith.addf %13, %16 : vector<64x1xf32>
    %18 = math.rsqrt %17 : vector<64x1xf32>
    %19 = vector.broadcast %18 : vector<64x1xf32> to vector<64x32xf32>
    %20 = arith.mulf %15, %19 : vector<64x32xf32>
    %21 = vector.broadcast %1 : vector<1x32xf32> to vector<64x32xf32>
    %22 = arith.mulf %20, %21 : vector<64x32xf32>
    %23 = vector.broadcast %2 : vector<1x32xf32> to vector<64x32xf32>
    %24 = arith.addf %22, %23 : vector<64x32xf32>
    %c0_9 = arith.constant 0 : index
    %c0_10 = arith.constant 0 : index
    %25 = vector.load %arg4[%c0_9, %c0_10] : memref<64x32xf32, #tpu.memory_space<vmem>>, vector<64x32xf32>
    tpu.vector_store %arg4[%c0_9, %c0_10], %24 {strides = array<i32>} : memref<64x32xf32, #tpu.memory_space<vmem>>, vector<64x32xf32>,
    return
  }
  func.func @transform_0(%arg0: i32) -> (i32, i32) {
    %c0_i32 = arith.constant 0 : i32
    %c0_i32_0 = arith.constant 0 : i32
    return %arg0, %c0_i32 : i32, i32
  }
  func.func @transform_1(%arg0: i32) -> (i32, i32) {
    %c0_i32 = arith.constant 0 : i32
    %c0_i32_0 = arith.constant 0 : i32
    %c0_i32_1 = arith.constant 0 : i32
    return %c0_i32, %c0_i32_0 : i32, i32
  }
  func.func @transform_2(%arg0: i32) -> (i32, i32) {
    %c0_i32 = arith.constant 0 : i32
    %c0_i32_0 = arith.constant 0 : i32
    %c0_i32_1 = arith.constant 0 : i32
    return %c0_i32, %c0_i32_0 : i32, i32
  }
  func.func @transform_3(%arg0: i32) -> (i32, i32) {
    %c0_i32 = arith.constant 0 : i32
    %c0_i32_0 = arith.constant 0 : i32
    return %arg0, %c0_i32 : i32, i32
  }
}

module attributes {stable_mosaic.version = 11 : i64} {
  func.func @_attn_kernel(%arg0: i32, %arg1: memref<32x96xbf16, #tpu.memory_space<vmem>>, %arg2: memref<32x32xbf16, #tpu.memory_space<vmem>>) attributes {dimension_semantics = [#tpu.dimension_semantics<parallel>], iteration_bounds = array<i64: 2>, scalar_prefetch = 0 : i64, scratch_operands = 0 : i64, tpu.core_type = #tpu.core_type<tc>, window_params = [{transform_indices = @transform_0, window_bounds = array<i64: 32, 96>}, {transform_indices = @transform_1, window_bounds = array<i64: 32, 32>}]} {
    %0 = tpu.iota {dimensions = array<i32: 1>} : vector<1x32xi32>
    %c17_i32 = arith.constant 17 : i32
    %1 = vector.broadcast %c17_i32 : i32 to vector<1x32xi32>
    %2 = arith.cmpi slt, %0, %1 : vector<1x32xi32>
    %c0 = arith.constant 0 : index
    %c0_0 = arith.constant 0 : index
    %3 = vector.load %arg1[%c0, %c0_0] : memref<32x96xbf16, #tpu.memory_space<vmem>>, vector<32x8xbf16>
    %c0_1 = arith.constant 0 : index
    %c32 = arith.constant 32 : index
    %4 = vector.load %arg1[%c0_1, %c32] : memref<32x96xbf16, #tpu.memory_space<vmem>>, vector<32x8xbf16>
    %c0_2 = arith.constant 0 : index
    %c64 = arith.constant 64 : index
    %5 = vector.load %arg1[%c0_2, %c64] : memref<32x96xbf16, #tpu.memory_space<vmem>>, vector<32x8xbf16>
    %cst = arith.constant dense<0.000000e+00> : vector<32x32xf32>
    %6 = tpu.matmul %3, %4, %cst {dimension_numbers = #tpu.dot_dimension_numbers<[1], [1], [0], [0], [0, 0, 1, 0], [], []>} : vector<32x8xbf16>, vector<32x8xbf16>, vector<32x32xf32> -> vector<32x32xf32>
    %cst_3 = arith.constant 0.353553385 : f32
    %7 = vector.broadcast %cst_3 : f32 to vector<32x32xf32>
    %8 = arith.mulf %6, %7 : vector<32x32xf32>
    %cst_4 = arith.constant 0xFF800000 : f32
    %9 = vector.shape_cast %2 : vector<1x32xi1> to vector<1x32xi1>
    %10 = vector.broadcast %9 : vector<1x32xi1> to vector<32x32xi1>
    %11 = vector.broadcast %cst_4 : f32 to vector<32x32xf32>
    %12 = arith.select %10, %8, %11 : vector<32x32xi1>, vector<32x32xf32>
    %cst_5 = arith.constant dense<0xFF800000> : vector<32xf32>
    %13 = vector.multi_reduction <maximumf>, %12, %cst_5 [1] : vector<32x32xf32> to vector<32xf32>
    %14 = vector.shape_cast %13 : vector<32xf32> to vector<32x1xf32>
    %15 = vector.broadcast %14 : vector<32x1xf32> to vector<32x32xf32>
    %16 = arith.subf %12, %15 : vector<32x32xf32>
    %17 = arith.truncf %16 : vector<32x32xf32> to vector<32x32xbf16>
    %18 = math.exp %17 : vector<32x32xbf16>
    %19 = arith.extf %18 : vector<32x32xbf16> to vector<32x32xf32>
    %cst_6 = arith.constant dense<0.000000e+00> : vector<32xf32>
    %20 = vector.multi_reduction <add>, %19, %cst_6 [1] : vector<32x32xf32> to vector<32xf32>
    %21 = vector.shape_cast %20 : vector<32xf32> to vector<32x1xf32>
    %22 = tpu.reciprocal %21 {approx = true} : vector<32x1xf32> -> vector<32x1xf32>
    %23 = arith.extf %18 : vector<32x32xbf16> to vector<32x32xf32>
    %24 = vector.broadcast %22 : vector<32x1xf32> to vector<32x32xf32>
    %25 = arith.mulf %23, %24 : vector<32x32xf32>
    %26 = arith.truncf %25 : vector<32x32xf32> to vector<32x32xbf16>
    %cst_7 = arith.constant dense<0.000000e+00> : vector<32x8xf32>
    %27 = tpu.matmul %26, %5, %cst_7 {dimension_numbers = #tpu.dot_dimension_numbers<[1], [0], [0], [1], [0, 0, 1, 1], [], []>} : vector<32x32xbf16>, vector<32x8xbf16>, vector<32x8xf32> -> vector<32x8xf32>
    %c0_8 = arith.constant 0 : index
    %c8 = arith.constant 8 : index
    %28 = vector.load %arg1[%c0_8, %c8] : memref<32x96xbf16, #tpu.memory_space<vmem>>, vector<32x8xbf16>
    %c0_9 = arith.constant 0 : index
    %c40 = arith.constant 40 : index
    %29 = vector.load %arg1[%c0_9, %c40] : memref<32x96xbf16, #tpu.memory_space<vmem>>, vector<32x8xbf16>
    %c0_10 = arith.constant 0 : index
    %c72 = arith.constant 72 : index
    %30 = vector.load %arg1[%c0_10, %c72] : memref<32x96xbf16, #tpu.memory_space<vmem>>, vector<32x8xbf16>
    %cst_11 = arith.constant dense<0.000000e+00> : vector<32x32xf32>
    %31 = tpu.matmul %28, %29, %cst_11 {dimension_numbers = #tpu.dot_dimension_numbers<[1], [1], [0], [0], [0, 0, 1, 0], [], []>} : vector<32x8xbf16>, vector<32x8xbf16>, vector<32x32xf32> -> vector<32x32xf32>
    %cst_12 = arith.constant 0.353553385 : f32
    %32 = vector.broadcast %cst_12 : f32 to vector<32x32xf32>
    %33 = arith.mulf %31, %32 : vector<32x32xf32>
    %cst_13 = arith.constant 0xFF800000 : f32
    %34 = vector.shape_cast %2 : vector<1x32xi1> to vector<1x32xi1>
    %35 = vector.broadcast %34 : vector<1x32xi1> to vector<32x32xi1>
    %36 = vector.broadcast %cst_13 : f32 to vector<32x32xf32>
    %37 = arith.select %35, %33, %36 : vector<32x32xi1>, vector<32x32xf32>
    %cst_14 = arith.constant dense<0xFF800000> : vector<32xf32>
    %38 = vector.multi_reduction <maximumf>, %37, %cst_14 [1] : vector<32x32xf32> to vector<32xf32>
    %39 = vector.shape_cast %38 : vector<32xf32> to vector<32x1xf32>
    %40 = vector.broadcast %39 : vector<32x1xf32> to vector<32x32xf32>
    %41 = arith.subf %37, %40 : vector<32x32xf32>
    %42 = arith.truncf %41 : vector<32x32xf32> to vector<32x32xbf16>
    %43 = math.exp %42 : vector<32x32xbf16>
    %44 = arith.extf %43 : vector<32x32xbf16> to vector<32x32xf32>
    %cst_15 = arith.constant dense<0.000000e+00> : vector<32xf32>
    %45 = vector.multi_reduction <add>, %44, %cst_15 [1] : vector<32x32xf32> to vector<32xf32>
    %46 = vector.shape_cast %45 : vector<32xf32> to vector<32x1xf32>
    %47 = tpu.reciprocal %46 {approx = true} : vector<32x1xf32> -> vector<32x1xf32>
    %48 = arith.extf %43 : vector<32x32xbf16> to vector<32x32xf32>
    %49 = vector.broadcast %47 : vector<32x1xf32> to vector<32x32xf32>
    %50 = arith.mulf %48, %49 : vector<32x32xf32>
    %51 = arith.truncf %50 : vector<32x32xf32> to vector<32x32xbf16>
    %cst_16 = arith.constant dense<0.000000e+00> : vector<32x8xf32>
    %52 = tpu.matmul %51, %30, %cst_16 {dimension_numbers = #tpu.dot_dimension_numbers<[1], [0], [0], [1], [0, 0, 1, 1], [], []>} : vector<32x32xbf16>, vector<32x8xbf16>, vector<32x8xf32> -> vector<32x8xf32>
    %c0_17 = arith.constant 0 : index
    %c16 = arith.constant 16 : index
    %53 = vector.load %arg1[%c0_17, %c16] : memref<32x96xbf16, #tpu.memory_space<vmem>>, vector<32x8xbf16>
    %c0_18 = arith.constant 0 : index
    %c48 = arith.constant 48 : index
    %54 = vector.load %arg1[%c0_18, %c48] : memref<32x96xbf16, #tpu.memory_space<vmem>>, vector<32x8xbf16>
    %c0_19 = arith.constant 0 : index
    %c80 = arith.constant 80 : index
    %55 = vector.load %arg1[%c0_19, %c80] : memref<32x96xbf16, #tpu.memory_space<vmem>>, vector<32x8xbf16>
    %cst_20 = arith.constant dense<0.000000e+00> : vector<32x32xf32>
    %56 = tpu.matmul %53, %54, %cst_20 {dimension_numbers = #tpu.dot_dimension_numbers<[1], [1], [0], [0], [0, 0, 1, 0], [], []>} : vector<32x8xbf16>, vector<32x8xbf16>, vector<32x32xf32> -> vector<32x32xf32>
    %cst_21 = arith.constant 0.353553385 : f32
    %57 = vector.broadcast %cst_21 : f32 to vector<32x32xf32>
    %58 = arith.mulf %56, %57 : vector<32x32xf32>
    %cst_22 = arith.constant 0xFF800000 : f32
    %59 = vector.shape_cast %2 : vector<1x32xi1> to vector<1x32xi1>
    %60 = vector.broadcast %59 : vector<1x32xi1> to vector<32x32xi1>
    %61 = vector.broadcast %cst_22 : f32 to vector<32x32xf32>
    %62 = arith.select %60, %58, %61 : vector<32x32xi1>, vector<32x32xf32>
    %cst_23 = arith.constant dense<0xFF800000> : vector<32xf32>
    %63 = vector.multi_reduction <maximumf>, %62, %cst_23 [1] : vector<32x32xf32> to vector<32xf32>
    %64 = vector.shape_cast %63 : vector<32xf32> to vector<32x1xf32>
    %65 = vector.broadcast %64 : vector<32x1xf32> to vector<32x32xf32>
    %66 = arith.subf %62, %65 : vector<32x32xf32>
    %67 = arith.truncf %66 : vector<32x32xf32> to vector<32x32xbf16>
    %68 = math.exp %67 : vector<32x32xbf16>
    %69 = arith.extf %68 : vector<32x32xbf16> to vector<32x32xf32>
    %cst_24 = arith.constant dense<0.000000e+00> : vector<32xf32>
    %70 = vector.multi_reduction <add>, %69, %cst_24 [1] : vector<32x32xf32> to vector<32xf32>
    %71 = vector.shape_cast %70 : vector<32xf32> to vector<32x1xf32>
    %72 = tpu.reciprocal %71 {approx = true} : vector<32x1xf32> -> vector<32x1xf32>
    %73 = arith.extf %68 : vector<32x32xbf16> to vector<32x32xf32>
    %74 = vector.broadcast %72 : vector<32x1xf32> to vector<32x32xf32>
    %75 = arith.mulf %73, %74 : vector<32x32xf32>
    %76 = arith.truncf %75 : vector<32x32xf32> to vector<32x32xbf16>
    %cst_25 = arith.constant dense<0.000000e+00> : vector<32x8xf32>
    %77 = tpu.matmul %76, %55, %cst_25 {dimension_numbers = #tpu.dot_dimension_numbers<[1], [0], [0], [1], [0, 0, 1, 1], [], []>} : vector<32x32xbf16>, vector<32x8xbf16>, vector<32x8xf32> -> vector<32x8xf32>
    %c0_26 = arith.constant 0 : index
    %c24 = arith.constant 24 : index
    %78 = vector.load %arg1[%c0_26, %c24] : memref<32x96xbf16, #tpu.memory_space<vmem>>, vector<32x8xbf16>
    %c0_27 = arith.constant 0 : index
    %c56 = arith.constant 56 : index
    %79 = vector.load %arg1[%c0_27, %c56] : memref<32x96xbf16, #tpu.memory_space<vmem>>, vector<32x8xbf16>
    %c0_28 = arith.constant 0 : index
    %c88 = arith.constant 88 : index
    %80 = vector.load %arg1[%c0_28, %c88] : memref<32x96xbf16, #tpu.memory_space<vmem>>, vector<32x8xbf16>
    %cst_29 = arith.constant dense<0.000000e+00> : vector<32x32xf32>
    %81 = tpu.matmul %78, %79, %cst_29 {dimension_numbers = #tpu.dot_dimension_numbers<[1], [1], [0], [0], [0, 0, 1, 0], [], []>} : vector<32x8xbf16>, vector<32x8xbf16>, vector<32x32xf32> -> vector<32x32xf32>
    %cst_30 = arith.constant 0.353553385 : f32
    %82 = vector.broadcast %cst_30 : f32 to vector<32x32xf32>
    %83 = arith.mulf %81, %82 : vector<32x32xf32>
    %cst_31 = arith.constant 0xFF800000 : f32
    %84 = vector.shape_cast %2 : vector<1x32xi1> to vector<1x32xi1>
    %85 = vector.broadcast %84 : vector<1x32xi1> to vector<32x32xi1>
    %86 = vector.broadcast %cst_31 : f32 to vector<32x32xf32>
    %87 = arith.select %85, %83, %86 : vector<32x32xi1>, vector<32x32xf32>
    %cst_32 = arith.constant dense<0xFF800000> : vector<32xf32>
    %88 = vector.multi_reduction <maximumf>, %87, %cst_32 [1] : vector<32x32xf32> to vector<32xf32>
    %89 = vector.shape_cast %88 : vector<32xf32> to vector<32x1xf32>
    %90 = vector.broadcast %89 : vector<32x1xf32> to vector<32x32xf32>
    %91 = arith.subf %87, %90 : vector<32x32xf32>
    %92 = arith.truncf %91 : vector<32x32xf32> to vector<32x32xbf16>
    %93 = math.exp %92 : vector<32x32xbf16>
    %94 = arith.extf %93 : vector<32x32xbf16> to vector<32x32xf32>
    %cst_33 = arith.constant dense<0.000000e+00> : vector<32xf32>
    %95 = vector.multi_reduction <add>, %94, %cst_33 [1] : vector<32x32xf32> to vector<32xf32>
    %96 = vector.shape_cast %95 : vector<32xf32> to vector<32x1xf32>
    %97 = tpu.reciprocal %96 {approx = true} : vector<32x1xf32> -> vector<32x1xf32>
    %98 = arith.extf %93 : vector<32x32xbf16> to vector<32x32xf32>
    %99 = vector.broadcast %97 : vector<32x1xf32> to vector<32x32xf32>
    %100 = arith.mulf %98, %99 : vector<32x32xf32>
    %101 = arith.truncf %100 : vector<32x32xf32> to vector<32x32xbf16>
    %cst_34 = arith.constant dense<0.000000e+00> : vector<32x8xf32>
    %102 = tpu.matmul %101, %80, %cst_34 {dimension_numbers = #tpu.dot_dimension_numbers<[1], [0], [0], [1], [0, 0, 1, 1], [], []>} : vector<32x32xbf16>, vector<32x8xbf16>, vector<32x8xf32> -> vector<32x8xf32>
    %103 = tpu.concatenate %27, %52, %77, %102 in 1 : vector<32x8xf32>, vector<32x8xf32>, vector<32x8xf32>, vector<32x8xf32> -> vector<32x32xf32>
    %104 = arith.truncf %103 : vector<32x32xf32> to vector<32x32xbf16>
    %c0_35 = arith.constant 0 : index
    %c0_36 = arith.constant 0 : index
    %105 = vector.load %arg2[%c0_35, %c0_36] : memref<32x32xbf16, #tpu.memory_space<vmem>>, vector<32x32xbf16>
    tpu.vector_store %arg2[%c0_35, %c0_36], %104 {strides = array<i32>} : memref<32x32xbf16, #tpu.memory_space<vmem>>, vector<32x32xbf16>,
    return
  }
  func.func @transform_0(%arg0: i32) -> (i32, i32) {
    %c0_i32 = arith.constant 0 : i32
    %c0_i32_0 = arith.constant 0 : i32
    return %arg0, %c0_i32 : i32, i32
  }
  func.func @transform_1(%arg0: i32) -> (i32, i32) {
    %c0_i32 = arith.constant 0 : i32
    %c0_i32_0 = arith.constant 0 : i32
    return %arg0, %c0_i32 : i32, i32
  }
}

module attributes {stable_mosaic.version = 11 : i64} {
  func.func @_proj_mlp_kernel(%arg0: i32, %arg1: memref<64x32xbf16, #tpu.memory_space<vmem>>, %arg2: memref<64x32xf32, #tpu.memory_space<vmem>>, %arg3: memref<32x32xbf16, #tpu.memory_space<vmem>>, %arg4: memref<1x32xf32, #tpu.memory_space<vmem>>, %arg5: memref<1x32xf32, #tpu.memory_space<vmem>>, %arg6: memref<1x32xf32, #tpu.memory_space<vmem>>, %arg7: memref<32x128xbf16, #tpu.memory_space<vmem>>, %arg8: memref<1x128xf32, #tpu.memory_space<vmem>>, %arg9: memref<128x32xbf16, #tpu.memory_space<vmem>>, %arg10: memref<1x32xf32, #tpu.memory_space<vmem>>, %arg11: memref<64x32xf32, #tpu.memory_space<vmem>>) attributes {dimension_semantics = [#tpu.dimension_semantics<parallel>], iteration_bounds = array<i64: 1>, scalar_prefetch = 0 : i64, scratch_operands = 0 : i64, tpu.core_type = #tpu.core_type<tc>, window_params = [{transform_indices = @transform_0, window_bounds = array<i64: 64, 32>}, {transform_indices = @transform_1, window_bounds = array<i64: 64, 32>}, {pipeline_mode = #tpu.pipeline_mode<synchronous>, transform_indices = @transform_2, window_bounds = array<i64: 32, 32>}, {pipeline_mode = #tpu.pipeline_mode<synchronous>, transform_indices = @transform_3, window_bounds = array<i64: 1, 32>}, {pipeline_mode = #tpu.pipeline_mode<synchronous>, transform_indices = @transform_4, window_bounds = array<i64: 1, 32>}, {pipeline_mode = #tpu.pipeline_mode<synchronous>, transform_indices = @transform_5, window_bounds = array<i64: 1, 32>}, {pipeline_mode = #tpu.pipeline_mode<synchronous>, transform_indices = @transform_6, window_bounds = array<i64: 32, 128>}, {pipeline_mode = #tpu.pipeline_mode<synchronous>, transform_indices = @transform_7, window_bounds = array<i64: 1, 128>}, {pipeline_mode = #tpu.pipeline_mode<synchronous>, transform_indices = @transform_8, window_bounds = array<i64: 128, 32>}, {pipeline_mode = #tpu.pipeline_mode<synchronous>, transform_indices = @transform_9, window_bounds = array<i64: 1, 32>}, {transform_indices = @transform_10, window_bounds = array<i64: 64, 32>}]} {
    %c0 = arith.constant 0 : index
    %c0_0 = arith.constant 0 : index
    %0 = vector.load %arg2[%c0, %c0_0] : memref<64x32xf32, #tpu.memory_space<vmem>>, vector<64x32xf32>
    %c0_1 = arith.constant 0 : index
    %c0_2 = arith.constant 0 : index
    %1 = vector.load %arg1[%c0_1, %c0_2] : memref<64x32xbf16, #tpu.memory_space<vmem>>, vector<64x32xbf16>
    %c0_3 = arith.constant 0 : index
    %c0_4 = arith.constant 0 : index
    %2 = vector.load %arg3[%c0_3, %c0_4] : memref<32x32xbf16, #tpu.memory_space<vmem>>, vector<32x32xbf16>
    %cst = arith.constant dense<0.000000e+00> : vector<64x32xf32>
    %3 = tpu.matmul %1, %2, %cst {dimension_numbers = #tpu.dot_dimension_numbers<[1], [0], [0], [1], [0, 0, 1, 1], [], []>} : vector<64x32xbf16>, vector<32x32xbf16>, vector<64x32xf32> -> vector<64x32xf32>
    %4 = arith.addf %0, %3 : vector<64x32xf32>
    %c0_5 = arith.constant 0 : index
    %c0_6 = arith.constant 0 : index
    %5 = vector.load %arg4[%c0_5, %c0_6] : memref<1x32xf32, #tpu.memory_space<vmem>>, vector<1x32xf32>
    %6 = vector.broadcast %5 : vector<1x32xf32> to vector<64x32xf32>
    %7 = arith.addf %4, %6 : vector<64x32xf32>
    %c0_7 = arith.constant 0 : index
    %c0_8 = arith.constant 0 : index
    %8 = vector.load %arg5[%c0_7, %c0_8] : memref<1x32xf32, #tpu.memory_space<vmem>>, vector<1x32xf32>
    %c0_9 = arith.constant 0 : index
    %c0_10 = arith.constant 0 : index
    %9 = vector.load %arg6[%c0_9, %c0_10] : memref<1x32xf32, #tpu.memory_space<vmem>>, vector<1x32xf32>
    %cst_11 = arith.constant dense<0.000000e+00> : vector<64xf32>
    %10 = vector.multi_reduction <add>, %7, %cst_11 [1] : vector<64x32xf32> to vector<64xf32>
    %11 = vector.shape_cast %10 : vector<64xf32> to vector<64x1xf32>
    %cst_12 = arith.constant 3.200000e+01 : f32
    %12 = vector.broadcast %cst_12 : f32 to vector<64x1xf32>
    %13 = arith.divf %11, %12 : vector<64x1xf32>
    %14 = vector.broadcast %13 : vector<64x1xf32> to vector<64x32xf32>
    %15 = arith.subf %7, %14 : vector<64x32xf32>
    %16 = arith.mulf %15, %15 : vector<64x32xf32>
    %cst_13 = arith.constant dense<0.000000e+00> : vector<64xf32>
    %17 = vector.multi_reduction <add>, %16, %cst_13 [1] : vector<64x32xf32> to vector<64xf32>
    %18 = vector.shape_cast %17 : vector<64xf32> to vector<64x1xf32>
    %cst_14 = arith.constant 3.200000e+01 : f32
    %19 = vector.broadcast %cst_14 : f32 to vector<64x1xf32>
    %20 = arith.divf %18, %19 : vector<64x1xf32>
    %21 = vector.broadcast %13 : vector<64x1xf32> to vector<64x32xf32>
    %22 = arith.subf %7, %21 : vector<64x32xf32>
    %cst_15 = arith.constant 9.99999974E-6 : f32
    %23 = vector.broadcast %cst_15 : f32 to vector<64x1xf32>
    %24 = arith.addf %20, %23 : vector<64x1xf32>
    %25 = math.rsqrt %24 : vector<64x1xf32>
    %26 = vector.broadcast %25 : vector<64x1xf32> to vector<64x32xf32>
    %27 = arith.mulf %22, %26 : vector<64x32xf32>
    %28 = vector.broadcast %8 : vector<1x32xf32> to vector<64x32xf32>
    %29 = arith.mulf %27, %28 : vector<64x32xf32>
    %30 = vector.broadcast %9 : vector<1x32xf32> to vector<64x32xf32>
    %31 = arith.addf %29, %30 : vector<64x32xf32>
    %32 = arith.truncf %31 : vector<64x32xf32> to vector<64x32xbf16>
    %c0_16 = arith.constant 0 : index
    %c0_17 = arith.constant 0 : index
    %33 = vector.load %arg7[%c0_16, %c0_17] : memref<32x128xbf16, #tpu.memory_space<vmem>>, vector<32x128xbf16>
    %c0_18 = arith.constant 0 : index
    %c0_19 = arith.constant 0 : index
    %34 = vector.load %arg8[%c0_18, %c0_19] : memref<1x128xf32, #tpu.memory_space<vmem>>, vector<1x128xf32>
    %cst_20 = arith.constant dense<0.000000e+00> : vector<64x128xf32>
    %35 = tpu.matmul %32, %33, %cst_20 {dimension_numbers = #tpu.dot_dimension_numbers<[1], [0], [0], [1], [0, 0, 1, 1], [], []>} : vector<64x32xbf16>, vector<32x128xbf16>, vector<64x128xf32> -> vector<64x128xf32>
    %36 = vector.broadcast %34 : vector<1x128xf32> to vector<64x128xf32>
    %37 = arith.addf %35, %36 : vector<64x128xf32>
    %cst_21 = arith.constant 1.702000e+00 : f32
    %38 = vector.broadcast %cst_21 : f32 to vector<64x128xf32>
    %39 = arith.mulf %38, %37 : vector<64x128xf32>
    %40 = arith.negf %39 : vector<64x128xf32>
    %41 = math.exp %40 : vector<64x128xf32>
    %cst_22 = arith.constant 1.000000e+00 : f32
    %42 = vector.broadcast %cst_22 : f32 to vector<64x128xf32>
    %43 = arith.addf %42, %41 : vector<64x128xf32>
    %44 = arith.divf %42, %43 : vector<64x128xf32>
    %45 = arith.mulf %37, %44 : vector<64x128xf32>
    %c0_23 = arith.constant 0 : index
    %c0_24 = arith.constant 0 : index
    %46 = vector.load %arg9[%c0_23, %c0_24] : memref<128x32xbf16, #tpu.memory_space<vmem>>, vector<128x32xbf16>
    %47 = arith.truncf %45 : vector<64x128xf32> to vector<64x128xbf16>
    %cst_25 = arith.constant dense<0.000000e+00> : vector<64x32xf32>
    %48 = tpu.matmul %47, %46, %cst_25 {dimension_numbers = #tpu.dot_dimension_numbers<[1], [0], [0], [1], [0, 0, 1, 1], [], []>} : vector<64x128xbf16>, vector<128x32xbf16>, vector<64x32xf32> -> vector<64x32xf32>
    %49 = arith.addf %7, %48 : vector<64x32xf32>
    %c0_26 = arith.constant 0 : index
    %c0_27 = arith.constant 0 : index
    %50 = vector.load %arg10[%c0_26, %c0_27] : memref<1x32xf32, #tpu.memory_space<vmem>>, vector<1x32xf32>
    %51 = vector.broadcast %50 : vector<1x32xf32> to vector<64x32xf32>
    %52 = arith.addf %49, %51 : vector<64x32xf32>
    %c0_28 = arith.constant 0 : index
    %c0_29 = arith.constant 0 : index
    %53 = vector.load %arg11[%c0_28, %c0_29] : memref<64x32xf32, #tpu.memory_space<vmem>>, vector<64x32xf32>
    tpu.vector_store %arg11[%c0_28, %c0_29], %52 {strides = array<i32>} : memref<64x32xf32, #tpu.memory_space<vmem>>, vector<64x32xf32>,
    return
  }
  func.func @transform_0(%arg0: i32) -> (i32, i32) {
    %c0_i32 = arith.constant 0 : i32
    %c0_i32_0 = arith.constant 0 : i32
    return %arg0, %c0_i32 : i32, i32
  }
  func.func @transform_1(%arg0: i32) -> (i32, i32) {
    %c0_i32 = arith.constant 0 : i32
    %c0_i32_0 = arith.constant 0 : i32
    return %arg0, %c0_i32 : i32, i32
  }
  func.func @transform_2(%arg0: i32) -> (i32, i32) {
    %c0_i32 = arith.constant 0 : i32
    %c0_i32_0 = arith.constant 0 : i32
    %c0_i32_1 = arith.constant 0 : i32
    return %c0_i32, %c0_i32_0 : i32, i32
  }
  func.func @transform_3(%arg0: i32) -> (i32, i32) {
    %c0_i32 = arith.constant 0 : i32
    %c0_i32_0 = arith.constant 0 : i32
    %c0_i32_1 = arith.constant 0 : i32
    return %c0_i32, %c0_i32_0 : i32, i32
  }
  func.func @transform_4(%arg0: i32) -> (i32, i32) {
    %c0_i32 = arith.constant 0 : i32
    %c0_i32_0 = arith.constant 0 : i32
    %c0_i32_1 = arith.constant 0 : i32
    return %c0_i32, %c0_i32_0 : i32, i32
  }
  func.func @transform_5(%arg0: i32) -> (i32, i32) {
    %c0_i32 = arith.constant 0 : i32
    %c0_i32_0 = arith.constant 0 : i32
    %c0_i32_1 = arith.constant 0 : i32
    return %c0_i32, %c0_i32_0 : i32, i32
  }
  func.func @transform_6(%arg0: i32) -> (i32, i32) {
    %c0_i32 = arith.constant 0 : i32
    %c0_i32_0 = arith.constant 0 : i32
    %c0_i32_1 = arith.constant 0 : i32
    return %c0_i32, %c0_i32_0 : i32, i32
  }
  func.func @transform_7(%arg0: i32) -> (i32, i32) {
    %c0_i32 = arith.constant 0 : i32
    %c0_i32_0 = arith.constant 0 : i32
    %c0_i32_1 = arith.constant 0 : i32
    return %c0_i32, %c0_i32_0 : i32, i32
  }
  func.func @transform_8(%arg0: i32) -> (i32, i32) {
    %c0_i32 = arith.constant 0 : i32
    %c0_i32_0 = arith.constant 0 : i32
    %c0_i32_1 = arith.constant 0 : i32
    return %c0_i32, %c0_i32_0 : i32, i32
  }
  func.func @transform_9(%arg0: i32) -> (i32, i32) {
    %c0_i32 = arith.constant 0 : i32
    %c0_i32_0 = arith.constant 0 : i32
    %c0_i32_1 = arith.constant 0 : i32
    return %c0_i32, %c0_i32_0 : i32, i32
  }
  func.func @transform_10(%arg0: i32) -> (i32, i32) {
    %c0_i32 = arith.constant 0 : i32
    %c0_i32_0 = arith.constant 0 : i32
    return %arg0, %c0_i32 : i32, i32
  }
}

module attributes {stable_mosaic.version = 11 : i64} {
  func.func @_ln_linear_kernel(%arg0: i32, %arg1: memref<2x32xf32, #tpu.memory_space<vmem>>, %arg2: memref<1x32xf32, #tpu.memory_space<vmem>>, %arg3: memref<1x32xf32, #tpu.memory_space<vmem>>, %arg4: memref<32x16xbf16, #tpu.memory_space<vmem>>, %arg5: memref<1x16xf32, #tpu.memory_space<vmem>>, %arg6: memref<2x16xf32, #tpu.memory_space<vmem>>) attributes {dimension_semantics = [#tpu.dimension_semantics<parallel>], iteration_bounds = array<i64: 1>, scalar_prefetch = 0 : i64, scratch_operands = 0 : i64, tpu.core_type = #tpu.core_type<tc>, window_params = [{transform_indices = @transform_0, window_bounds = array<i64: 2, 32>}, {pipeline_mode = #tpu.pipeline_mode<synchronous>, transform_indices = @transform_1, window_bounds = array<i64: 1, 32>}, {pipeline_mode = #tpu.pipeline_mode<synchronous>, transform_indices = @transform_2, window_bounds = array<i64: 1, 32>}, {pipeline_mode = #tpu.pipeline_mode<synchronous>, transform_indices = @transform_3, window_bounds = array<i64: 32, 16>}, {pipeline_mode = #tpu.pipeline_mode<synchronous>, transform_indices = @transform_4, window_bounds = array<i64: 1, 16>}, {transform_indices = @transform_5, window_bounds = array<i64: 2, 16>}]} {
    %c0 = arith.constant 0 : index
    %c0_0 = arith.constant 0 : index
    %0 = vector.load %arg1[%c0, %c0_0] : memref<2x32xf32, #tpu.memory_space<vmem>>, vector<2x32xf32>
    %c0_1 = arith.constant 0 : index
    %c0_2 = arith.constant 0 : index
    %1 = vector.load %arg2[%c0_1, %c0_2] : memref<1x32xf32, #tpu.memory_space<vmem>>, vector<1x32xf32>
    %c0_3 = arith.constant 0 : index
    %c0_4 = arith.constant 0 : index
    %2 = vector.load %arg3[%c0_3, %c0_4] : memref<1x32xf32, #tpu.memory_space<vmem>>, vector<1x32xf32>
    %cst = arith.constant dense<0.000000e+00> : vector<2xf32>
    %3 = vector.multi_reduction <add>, %0, %cst [1] : vector<2x32xf32> to vector<2xf32>
    %4 = vector.shape_cast %3 : vector<2xf32> to vector<2x1xf32>
    %cst_5 = arith.constant 3.200000e+01 : f32
    %5 = vector.broadcast %cst_5 : f32 to vector<2x1xf32>
    %6 = arith.divf %4, %5 : vector<2x1xf32>
    %7 = vector.broadcast %6 : vector<2x1xf32> to vector<2x32xf32>
    %8 = arith.subf %0, %7 : vector<2x32xf32>
    %9 = arith.mulf %8, %8 : vector<2x32xf32>
    %cst_6 = arith.constant dense<0.000000e+00> : vector<2xf32>
    %10 = vector.multi_reduction <add>, %9, %cst_6 [1] : vector<2x32xf32> to vector<2xf32>
    %11 = vector.shape_cast %10 : vector<2xf32> to vector<2x1xf32>
    %cst_7 = arith.constant 3.200000e+01 : f32
    %12 = vector.broadcast %cst_7 : f32 to vector<2x1xf32>
    %13 = arith.divf %11, %12 : vector<2x1xf32>
    %14 = vector.broadcast %6 : vector<2x1xf32> to vector<2x32xf32>
    %15 = arith.subf %0, %14 : vector<2x32xf32>
    %cst_8 = arith.constant 9.99999974E-6 : f32
    %16 = vector.broadcast %cst_8 : f32 to vector<2x1xf32>
    %17 = arith.addf %13, %16 : vector<2x1xf32>
    %18 = math.rsqrt %17 : vector<2x1xf32>
    %19 = vector.broadcast %18 : vector<2x1xf32> to vector<2x32xf32>
    %20 = arith.mulf %15, %19 : vector<2x32xf32>
    %21 = vector.broadcast %1 : vector<1x32xf32> to vector<2x32xf32>
    %22 = arith.mulf %20, %21 : vector<2x32xf32>
    %23 = vector.broadcast %2 : vector<1x32xf32> to vector<2x32xf32>
    %24 = arith.addf %22, %23 : vector<2x32xf32>
    %c0_9 = arith.constant 0 : index
    %c0_10 = arith.constant 0 : index
    %25 = vector.load %arg4[%c0_9, %c0_10] : memref<32x16xbf16, #tpu.memory_space<vmem>>, vector<32x16xbf16>
    %26 = arith.truncf %24 : vector<2x32xf32> to vector<2x32xbf16>
    %cst_11 = arith.constant dense<0.000000e+00> : vector<2x16xf32>
    %27 = tpu.matmul %26, %25, %cst_11 {dimension_numbers = #tpu.dot_dimension_numbers<[1], [0], [0], [1], [0, 0, 1, 1], [], []>} : vector<2x32xbf16>, vector<32x16xbf16>, vector<2x16xf32> -> vector<2x16xf32>
    %c0_12 = arith.constant 0 : index
    %c0_13 = arith.constant 0 : index
    %28 = vector.load %arg5[%c0_12, %c0_13] : memref<1x16xf32, #tpu.memory_space<vmem>>, vector<1x16xf32>
    %29 = vector.broadcast %28 : vector<1x16xf32> to vector<2x16xf32>
    %30 = arith.addf %27, %29 : vector<2x16xf32>
    %c0_14 = arith.constant 0 : index
    %c0_15 = arith.constant 0 : index
    %31 = vector.load %arg6[%c0_14, %c0_15] : memref<2x16xf32, #tpu.memory_space<vmem>>, vector<2x16xf32>
    tpu.vector_store %arg6[%c0_14, %c0_15], %30 {strides = array<i32>} : memref<2x16xf32, #tpu.memory_space<vmem>>, vector<2x16xf32>,
    return
  }
  func.func @transform_0(%arg0: i32) -> (i32, i32) {
    %c0_i32 = arith.constant 0 : i32
    %c0_i32_0 = arith.constant 0 : i32
    return %arg0, %c0_i32 : i32, i32
  }
  func.func @transform_1(%arg0: i32) -> (i32, i32) {
    %c0_i32 = arith.constant 0 : i32
    %c0_i32_0 = arith.constant 0 : i32
    %c0_i32_1 = arith.constant 0 : i32
    return %c0_i32, %c0_i32_0 : i32, i32
  }
  func.func @transform_2(%arg0: i32) -> (i32, i32) {
    %c0_i32 = arith.constant 0 : i32
    %c0_i32_0 = arith.constant 0 : i32
    %c0_i32_1 = arith.constant 0 : i32
    return %c0_i32, %c0_i32_0 : i32, i32
  }
  func.func @transform_3(%arg0: i32) -> (i32, i32) {
    %c0_i32 = arith.constant 0 : i32
    %c0_i32_0 = arith.constant 0 : i32
    %c0_i32_1 = arith.constant 0 : i32
    return %c0_i32, %c0_i32_0 : i32, i32
  }
  func.func @transform_4(%arg0: i32) -> (i32, i32) {
    %c0_i32 = arith.constant 0 : i32
    %c0_i32_0 = arith.constant 0 : i32
    %c0_i32_1 = arith.constant 0 : i32
    return %c0_i32, %c0_i32_0 : i32, i32
  }
  func.func @transform_5(%arg0: i32) -> (i32, i32) {
    %c0_i32 = arith.constant 0 : i32
    %c0_i32_0 = arith.constant 0 : i32
    return %arg0, %c0_i32 : i32, i32
  }
}

</mosaic_0001>

<bundles_post_ra>
// kernel: visual_transformer_forward.9
= control target key start
LH: loop header
LB: loop body
LE: loop exit
PB: predicated region body
PF: predicated region fallthrough
CT: control target
= control target key end

     0   :  { %8 = vsyncpa [#allocation3], 0  ;;  %s379_s0 = inlined_call_operand.hbm [shape: f32[32,48], index: 0, kind: input, shape index: {}]   ;;  %s380_s1 = inlined_call_operand.hbm [shape: bf16[48,32], index: 1, kind: input, shape index: {}]   ;;  %s381_s2 = inlined_call_operand.hbm [shape: f32[1,32], index: 2, kind: input, shape index: {}]   ;;  %s382_s3 = inlined_call_operand.hbm [shape: f32[32,32], index: 3, kind: output, shape index: {}]  }
   0x1   :  { %9 = vsyncpa [#allocation6], 0 }
   0x2   :  { %10 = vsyncpa [#allocation4], 0  ;;  %s297_s12 = smov [#allocation5]   ;;  %s203_s16 = scalar_lea.hbm %s380_s1, 384 }
   0x3   :  { %s28_s13 = sshll.u32 %s297_s12, 4  ;;  %p204_p0 = scmp.ne.s32.totalorder %s380_s1, %s203_s16  ;;  %s29_s13 = int_to_ptr.vmem [resolvable:$true] %s28_s13 }
   0x4   :  { %p207_p1 = scmp.lt.u32.totalorder %s203_s16, %s380_s1 }
   0x6   :  { %p209_p2 = pnand %p207_p1, %p204_p0 }
   0x8   :  { %212 = shalt.err (!%p209_p2)
}
   0x9   :  { %s213_s21 = scalar_lea.vmem %s29_s13, 384  ;;  %p218_p4 = scmp.lt.s32.totalorder %s29_s13, %s29_s13 }
   0xa   :  { %p214_p3 = scmp.ne.s32.totalorder %s29_s13, %s213_s21  ;;  %p219_p5 = scmp.lt.s32.totalorder %s213_s21, %s213_s21 }
   0xc   :  { %p220_p6 = por %p219_p5, %p218_p4 }
   0xe   :  { %p221_p7 = pnand %p220_p6, %p214_p3 }
  0x10   :  { %224 = shalt.err (!%p221_p7)
}
  0x11   :  { %s298_s22 = smov 64   ;;  %s299_s23 = smov 4  }
  0x12   :  { %34 = dma.hbm_to_vmem [thread:$0]  %s380_s1, 384, %s29_s13, [#allocation6], %s298_s22, %s298_s22, %s299_s23  }
  0x13   :  { %s300_s26 = smov [#allocation2]   ;;  %s225_s30 = scalar_lea.hbm %s379_s0, 512 }
  0x14   :  { %s16_s27 = sshll.u32 %s300_s26, 4  ;;  %p226_p8 = scmp.ne.s32.totalorder %s379_s0, %s225_s30  ;;  %s17_s27 = int_to_ptr.vmem [resolvable:$true] %s16_s27 }
  0x15   :  { %p229_p9 = scmp.lt.u32.totalorder %s225_s30, %s379_s0 }
  0x17   :  { %p231_p10 = pnand %p229_p9, %p226_p8 }
  0x19   :  { %234 = shalt.err (!%p231_p10)
}
  0x1a   :  { %s235_s8 = scalar_lea.vmem %s17_s27, 512  ;;  %p240_p12 = scmp.lt.s32.totalorder %s17_s27, %s17_s27 }
  0x1b   :  { %p236_p11 = scmp.ne.s32.totalorder %s17_s27, %s235_s8  ;;  %p241_p13 = scmp.lt.s32.totalorder %s235_s8, %s235_s8 }
  0x1d   :  { %p242_p0 = por %p241_p13, %p240_p12 }
  0x1f   :  { %p243_p1 = pnand %p242_p0, %p236_p11 }
  0x21   :  { %246 = shalt.err (!%p243_p1)
}
  0x22   :  { %s301_s1 = smov 128   ;;  %s302_s9 = smov 8  }
  0x23   :  { %22 = dma.hbm_to_vmem [thread:$0]  %s379_s0, 512, %s17_s27, [#allocation3], %s301_s1, %s301_s1, %s302_s9  }
  0x24   :  { %s303_s12 = smov [#allocation7]   ;;  %s247_s16 = scalar_lea.hbm %s381_s2, 16 }
  0x25   :  { %s41_s13 = sshll.u32 %s303_s12, 4  ;;  %p248_p2 = scmp.ne.s32.totalorder %s381_s2, %s247_s16  ;;  %s42_s13 = int_to_ptr.vmem [resolvable:$true] %s41_s13 }
  0x26   :  { %p251_p3 = scmp.lt.u32.totalorder %s247_s16, %s381_s2 }
  0x28   :  { %p253_p4 = pnand %p251_p3, %p248_p2 }
  0x2a   :  { %256 = shalt.err (!%p253_p4)
}
  0x2b   :  { %s257_s21 = scalar_lea.vmem %s42_s13, 16  ;;  %s261_s0 = scalar_lea.vmem %s42_s13, 32 }
  0x2c   :  { %p258_p5 = scmp.ne.s32.totalorder %s42_s13, %s257_s21  ;;  %p262_p6 = scmp.lt.s32.totalorder %s42_s13, %s42_s13 }
  0x2d   :  { %p263_p7 = scmp.lt.s32.totalorder %s261_s0, %s257_s21 }
  0x2f   :  { %p264_p8 = por %p263_p7, %p262_p6 }
  0x31   :  { %p265_p9 = pnand %p264_p8, %p258_p5 }
  0x33   :  { %268 = shalt.err (!%p265_p9)
}
  0x34   :  { %44 = dma.hbm_to_vmem [thread:$0]  %s381_s2, 16, %s42_s13, [#allocation6]  }
  0x35   :  { %291 = dma.done.wait [#allocation3], 512  }
  0x36   :  { %292 = vsyncadd [#allocation3], 4294966784 }
  0x37   :  { %293 = dma.done.wait [#allocation6], 400  }
  0x38   :  { %294 = vsyncadd [#allocation6], 4294966896  ;;  %v200_v0 = vld [vmem:[#allocation5] sm:$0xff]   ;;  %v201_v1 = vld [vmem:[#allocation5 + $0x8] sm:$0xff]   ;;  %vm92_vm0 = vcmask 392192   ;;  %vm148_vm1 = vcmask 261120  }
  0x39   :  { %182 = vmatprep.subr.bf16.mxu0 %v200_v0  ;;  %v55_v2 = vld [vmem:[#allocation2] sm:$0xff]  ;;  %v56_v3 = vld [vmem:[#allocation2 + $0x8] sm:$0xff]  ;;  %v202_v4 = vld [vmem:[#allocation5 + $0x10] sm:$0xff]   ;;  %s304_s2 = smov [#allocation8]  }
  0x3a   :  { %183 = vmatpush3.bf16.msra.mxu0 %v200_v0  ;;  %v65_v5 = vpack.c.bf16 %v56_v3, %v55_v2  ;;  %v57_v6 = vld [vmem:[#allocation2 + $0x10] sm:$0xff]  ;;  %v58_v7 = vld [vmem:[#allocation2 + $0x18] sm:$0xff]  ;;  %s158_s24 = sshll.u32 %s304_s2, 4  ;;  %s159_s24 = int_to_ptr.vmem [resolvable:$true] %s158_s24 }
  0x3b   :  { %184 = vmatprep.subr.bf16.mxu0 %v201_v1  ;;  %v66_v8 = vpack.c.bf16 %v58_v7, %v57_v6  ;;  %v171_v9 = vld [vmem:[#allocation7] ss:$0 sm:$0xff]  ;;  %s269_s25 = scalar_lea.vmem %s159_s24, 512  ;;  %p274_p11 = scmp.lt.s32.totalorder %s159_s24, %s159_s24 }
  0x3c   :  { %188 = vmatprep.mubr.msk.bf16.mxu0 %vm92_vm0, %v65_v5  ;;  %p270_p10 = scmp.ne.s32.totalorder %s159_s24, %s269_s25  ;;  %p275_p12 = scmp.lt.s32.totalorder %s269_s25, %s269_s25 }
  0x3e   :  { %185 = vmatpush3.bf16.msra.mxu0 %v201_v1  ;;  %p276_p13 = por %p275_p12, %p274_p11 }
  0x3f   :  { %186 = vmatprep.subr.bf16.mxu0 %v202_v4 }
  0x40   :  { %p277_p0 = pnand %p276_p13, %p270_p10 }
  0x42   :  { %187 = vmatpush3.bf16.msra.mxu0 %v202_v4 }
  0x45   :  { %189 = vmatmul.mubr.msk.bf16.vlgmr.msra.gmra.mrb[0].mxu0 %vm92_vm0, %v66_v8 }
 0x118   :  { %v190_v10 = vpop.f32.mrb[0].mxu0 }
 0x119   :  { %v142_v11 = vadd.f32 %v190_v10, %v171_v9  ;;  %v133_v12 = vpop.f32.mrb[1].mxu0 }
 0x11a   :  { %v134_v13 = vadd.f32 %v171_v9, %v133_v12  ;;  %v191_v14 = vpop.f32.mrb[2].mxu0 }
 0x11b   :  { %151 = vst.msk [vmem:[#allocation8 + $0x10] sm:$0xff] %vm148_vm1, %v142_v11  ;;  %v145_v15 = vadd.f32 %v191_v14, %v171_v9  ;;  %v136_v16 = vpop.f32.mrb[3].mxu0 }
 0x11c   :  { %149 = vst.msk [vmem:[#allocation8] sm:$0xff] %vm148_vm1, %v134_v13  ;;  %v137_v17 = vadd.f32 %v171_v9, %v136_v16 }
 0x11d   :  { %152 = vst.msk [vmem:[#allocation8 + $0x18] sm:$0xff] %vm148_vm1, %v145_v15 }
 0x11e   :  { %150 = vst.msk [vmem:[#allocation8 + $0x8] sm:$0xff] %vm148_vm1, %v137_v17 }
 0x11f   :  { %280 = shalt.err (!%p277_p0)
}
 0x120   :  { %s281_s28 = scalar_lea.hbm %s382_s3, 512 }
 0x121   :  { %p282_p1 = scmp.ne.s32.totalorder %s382_s3, %s281_s28  ;;  %p285_p2 = scmp.lt.u32.totalorder %s281_s28, %s382_s3 }
 0x123   :  { %p287_p3 = pnand %p285_p2, %p282_p1 }
 0x125   :  { %290 = shalt.err (!%p287_p3)
}
 0x126   :  { %164 = dma.vmem_to_hbm [thread:$0]  %s159_s24, 512, %s382_s3, [#allocation4], %s301_s1, %s301_s1, %s302_s9  }
 0x127   :  { %295 = dma.done.wait [#allocation4], 512  }
 0x128   :  { %296 = vsyncadd [#allocation4], 4294966784 }
 0x129   :  { %168 = vsyncpa [#allocation3], 1 }
 0x12a   :  { %169 = vsyncpa [#allocation6], 1 }
 0x12b   :  { %170 = vsyncpa [#allocation4], 1 }

// kernel: visual_transformer_forward.10
= control target key start
LH: loop header
LB: loop body
LE: loop exit
PB: predicated region body
PF: predicated region fallthrough
CT: control target
= control target key end

     0   :  { %8 = vsyncpa [#allocation3], 0  ;;  %s491_s0 = inlined_call_operand.hbm [shape: f32[64,32], index: 0, kind: input, shape index: {}]   ;;  %s492_s1 = inlined_call_operand.hbm [shape: f32[1,32], index: 1, kind: input, shape index: {}]   ;;  %s493_s2 = inlined_call_operand.hbm [shape: f32[1,32], index: 2, kind: input, shape index: {}]   ;;  %s494_s3 = inlined_call_operand.hbm [shape: f32[64,32], index: 3, kind: output, shape index: {}]  }
   0x1   :  { %9 = vsyncpa [#allocation6], 0 }
   0x2   :  { %10 = vsyncpa [#allocation4], 0  ;;  %s340_s12 = smov [#allocation5]   ;;  %s341_s14 = smov [#allocation2]  }
   0x3   :  { %s29_s13 = sshll.u32 %s340_s12, 4  ;;  %s16_s15 = sshll.u32 %s341_s14, 4  ;;  %s30_s13 = int_to_ptr.vmem [resolvable:$true] %s29_s13  ;;  %s366_s15 = int_to_ptr.vmem [resolvable:$true] %s16_s15 }
   0x4   :  { %s246_s18 = scalar_lea.hbm %s492_s1, 16 }
   0x5   :  { %p247_p0 = scmp.ne.s32.totalorder %s492_s1, %s246_s18  ;;  %p250_p1 = scmp.lt.u32.totalorder %s246_s18, %s492_s1 }
   0x7   :  { %p252_p2 = pnand %p250_p1, %p247_p0 }
   0x9   :  { %255 = shalt.err (!%p252_p2)
}
   0xa   :  { %s256_s23 = scalar_lea.vmem %s30_s13, 16  ;;  %s260_s24 = scalar_lea.vmem %s30_s13, 32 }
   0xb   :  { %p257_p3 = scmp.ne.s32.totalorder %s30_s13, %s256_s23  ;;  %p261_p4 = scmp.lt.s32.totalorder %s30_s13, %s30_s13 }
   0xc   :  { %p262_p5 = scmp.lt.s32.totalorder %s260_s24, %s256_s23 }
   0xe   :  { %p263_p6 = por %p262_p5, %p261_p4 }
  0x10   :  { %p264_p7 = pnand %p263_p6, %p257_p3 }
  0x12   :  { %267 = shalt.err (!%p264_p7)
}
  0x13   :  { %32 = dma.hbm_to_vmem [thread:$0]  %s492_s1, 16, %s30_s13, [#allocation6]  }
  0x14   :  { %s268_s29 = scalar_lea.hbm %s491_s0, 1024 }
  0x15   :  { %p269_p8 = scmp.ne.s32.totalorder %s491_s0, %s268_s29  ;;  %p272_p9 = scmp.lt.u32.totalorder %s268_s29, %s491_s0 }
  0x17   :  { %p274_p10 = pnand %p272_p9, %p269_p8 }
  0x19   :  { %277 = shalt.err (!%p274_p10)
}
  0x1a   :  { %s278_s7 = scalar_lea.vmem %s366_s15, 1024  ;;  %p283_p12 = scmp.lt.s32.totalorder %s366_s15, %s366_s15 }
  0x1b   :  { %p279_p11 = scmp.ne.s32.totalorder %s366_s15, %s278_s7  ;;  %p284_p13 = scmp.lt.s32.totalorder %s278_s7, %s278_s7 }
  0x1d   :  { %p285_p0 = por %p284_p13, %p283_p12 }
  0x1f   :  { %p286_p1 = pnand %p285_p0, %p279_p11 }
  0x21   :  { %289 = shalt.err (!%p286_p1)
}
  0x22   :  { %s342_s1 = smov 128   ;;  %s343_s8 = smov 8  }
  0x23   :  { %22 = dma.hbm_to_vmem [thread:$0]  %s491_s0, 1024, %s366_s15, [#allocation3], %s342_s1, %s342_s1, %s343_s8  }
  0x24   :  { %s344_s11 = smov [#allocation7]   ;;  %s290_s16 = scalar_lea.hbm %s493_s2, 16 }
  0x25   :  { %s39_s12 = sshll.u32 %s344_s11, 4  ;;  %p291_p2 = scmp.ne.s32.totalorder %s493_s2, %s290_s16  ;;  %s40_s12 = int_to_ptr.vmem [resolvable:$true] %s39_s12 }
  0x26   :  { %p294_p3 = scmp.lt.u32.totalorder %s290_s16, %s493_s2 }
  0x28   :  { %p296_p4 = pnand %p294_p3, %p291_p2 }
  0x2a   :  { %299 = shalt.err (!%p296_p4)
}
  0x2b   :  { %s300_s21 = scalar_lea.vmem %s40_s12, 16  ;;  %s304_s0 = scalar_lea.vmem %s40_s12, 32 }
  0x2c   :  { %p301_p5 = scmp.ne.s32.totalorder %s40_s12, %s300_s21  ;;  %p305_p6 = scmp.lt.s32.totalorder %s40_s12, %s40_s12 }
  0x2d   :  { %p306_p7 = scmp.lt.s32.totalorder %s304_s0, %s300_s21 }
  0x2f   :  { %p307_p8 = por %p306_p7, %p305_p6 }
  0x31   :  { %p308_p9 = pnand %p307_p8, %p301_p5 }
  0x33   :  { %311 = shalt.err (!%p308_p9)
}
  0x34   :  { %42 = dma.hbm_to_vmem [thread:$0]  %s493_s2, 16, %s40_s12, [#allocation6]  }
  0x35   :  { %334 = dma.done.wait [#allocation3], 1024  }
  0x36   :  { %335 = vsyncadd [#allocation3], 4294966272 }
  0x37   :  { %336 = dma.done.wait [#allocation6], 32  }
  0x38   :  { %337 = vsyncadd [#allocation6], 4294967264  ;;  %vm62_vm0 = vcmask 261120   ;;  %v52_v0 = vld [vmem:[#allocation2] sm:$0xff]  ;;  %v54_v1 = vld [vmem:[#allocation2 + $0x10] sm:$0xff]  ;;  %s345_s2 = smov [#allocation8]  }
  0x39   :  { %v53_v2 = vld [vmem:[#allocation2 + $0x8] sm:$0xff]  ;;  %v63_v3 = vsel %vm62_vm0, %v52_v0, 0.0  ;;  %v69_v4 = vsel %vm62_vm0, %v54_v1, 0.0  ;;  %v55_v5 = vld [vmem:[#allocation2 + $0x18] sm:$0xff]  ;;  %v56_v8 = vld [vmem:[#allocation2 + $0x20] sm:$0xff]  ;;  %s209_s23 = sshll.u32 %s345_s2, 4  ;;  %s210_s23 = int_to_ptr.vmem [resolvable:$true] %s209_s23 }
  0x3a   :  { %64 = vadd.xlane.f32.xlu0 %v63_v3  ;;  %70 = vadd.xlane.f32.xlu1 %v69_v4  ;;  %v66_v6 = vsel %vm62_vm0, %v53_v2, 0.0  ;;  %v72_v7 = vsel %vm62_vm0, %v55_v5, 0.0  ;;  %v57_v9 = vld [vmem:[#allocation2 + $0x28] sm:$0xff]  ;;  %v75_v10 = vsel %vm62_vm0, %v56_v8, 0.0  ;;  %v58_v12 = vld [vmem:[#allocation2 + $0x30] sm:$0xff]  ;;  %v59_v13 = vld [vmem:[#allocation2 + $0x38] sm:$0xff]  ;;  %p317_p11 = scmp.lt.s32.totalorder %s210_s23, %s210_s23 }
  0x3b   :  { %v78_v11 = vsel %vm62_vm0, %v57_v9, 0.0  ;;  %v81_v14 = vsel %vm62_vm0, %v58_v12, 0.0  ;;  %v84_v15 = vsel %vm62_vm0, %v59_v13, 0.0  ;;  %s312_s24 = scalar_lea.vmem %s210_s23, 1024 }
  0x3c   :  { %p313_p10 = scmp.ne.s32.totalorder %s210_s23, %s312_s24  ;;  %p318_p12 = scmp.lt.s32.totalorder %s312_s24, %s312_s24 }
  0x3e   :  { %67 = vadd.xlane.f32.xlu0 %v66_v6  ;;  %73 = vadd.xlane.f32.xlu1 %v72_v7  ;;  %p319_p13 = por %p318_p12, %p317_p11 }
  0x40   :  { %p320_p0 = pnand %p319_p13, %p313_p10 }
  0x42   :  { %76 = vadd.xlane.f32.xlu0 %v75_v10  ;;  %79 = vadd.xlane.f32.xlu1 %v78_v11 }
  0x46   :  { %82 = vadd.xlane.f32.xlu0 %v81_v14  ;;  %85 = vadd.xlane.f32.xlu1 %v84_v15 }
  0xc7   :  { %v65_v16 = vpop.xlane.xlu0 %64  ;;  %v71_v17 = vpop.xlane.xlu1 %70 }
  0xc8   :  { %v88_v18 = vmul.f32 0.03125, %v65_v16  ;;  %v90_v19 = vmul.f32 0.03125, %v71_v17  ;;  %v223_v17 = vld [vmem:[#allocation7] ss:$0 sm:$0xff] }
  0xca   :  { %v420_v20 = vsub.f32 %v52_v0, %v88_v18  ;;  %v422_v21 = vsub.f32 %v54_v1, %v90_v19 }
  0xcb   :  { %v68_v22 = vpop.xlane.xlu0 %67  ;;  %v74_v23 = vpop.xlane.xlu1 %73 }
  0xcc   :  { %v89_v24 = vmul.f32 0.03125, %v68_v22  ;;  %v91_v25 = vmul.f32 0.03125, %v74_v23  ;;  %v104_v26 = vmul.f32 %v420_v20, %v420_v20  ;;  %v106_v27 = vmul.f32 %v422_v21, %v422_v21 }
  0xce   :  { %v428_v28 = vsub.f32 %v53_v2, %v89_v24  ;;  %v430_v29 = vsub.f32 %v55_v5, %v91_v25  ;;  %v112_v30 = vsel %vm62_vm0, %v104_v26, 0.0  ;;  %v118_v33 = vsel %vm62_vm0, %v106_v27, 0.0 }
  0xcf   :  { %113 = vadd.xlane.f32.xlu0 %v112_v30  ;;  %v77_v31 = vpop.xlane.xlu0 %76  ;;  %v80_v32 = vpop.xlane.xlu1 %79 }
  0xd0   :  { %v92_v34 = vmul.f32 0.03125, %v77_v31  ;;  %v93_v35 = vmul.f32 0.03125, %v80_v32  ;;  %v105_v36 = vmul.f32 %v428_v28, %v428_v28  ;;  %v107_v37 = vmul.f32 %v430_v29, %v430_v29 }
  0xd2   :  { %v438_v38 = vsub.f32 %v56_v8, %v92_v34  ;;  %v440_v39 = vsub.f32 %v57_v9, %v93_v35  ;;  %v115_v40 = vsel %vm62_vm0, %v105_v36, 0.0  ;;  %v121_v43 = vsel %vm62_vm0, %v107_v37, 0.0 }
  0xd3   :  { %119 = vadd.xlane.f32.xlu0 %v118_v33  ;;  %116 = vadd.xlane.f32.xlu1 %v115_v40  ;;  %v83_v41 = vpop.xlane.xlu0 %82  ;;  %v86_v42 = vpop.xlane.xlu1 %85 }
  0xd4   :  { %v94_v44 = vmul.f32 0.03125, %v83_v41  ;;  %v95_v45 = vmul.f32 0.03125, %v86_v42  ;;  %v108_v46 = vmul.f32 %v438_v38, %v438_v38  ;;  %v109_v47 = vmul.f32 %v440_v39, %v440_v39 }
  0xd6   :  { %v448_v48 = vsub.f32 %v58_v12, %v94_v44  ;;  %v450_v49 = vsub.f32 %v59_v13, %v95_v45  ;;  %v124_v50 = vsel %vm62_vm0, %v108_v46, 0.0  ;;  %v127_v51 = vsel %vm62_vm0, %v109_v47, 0.0  ;;  %v222_v12 = vld [vmem:[#allocation5] ss:$0 sm:$0xff] }
  0xd7   :  { %122 = vadd.xlane.f32.xlu1 %v121_v43  ;;  %125 = vadd.xlane.f32.xlu0 %v124_v50 }
  0xd8   :  { %v110_v52 = vmul.f32 %v448_v48, %v448_v48  ;;  %v111_v53 = vmul.f32 %v450_v49, %v450_v49 }
  0xda   :  { %v130_v54 = vsel %vm62_vm0, %v110_v52, 0.0  ;;  %v133_v55 = vsel %vm62_vm0, %v111_v53, 0.0 }
  0xdb   :  { %128 = vadd.xlane.f32.xlu1 %v127_v51  ;;  %131 = vadd.xlane.f32.xlu0 %v130_v54 }
  0xdf   :  { %134 = vadd.xlane.f32.xlu1 %v133_v55 }
 0x15c   :  { %v114_v56 = vpop.xlane.xlu0 %113 }
 0x15d   :  { %v136_v57 = vmul.f32 0.03125, %v114_v56 }
 0x15f   :  { %v144_v58 = vadd.f32 1e-05, %v136_v57 }
 0x160   :  { %v117_v59 = vpop.xlane.xlu1 %116  ;;  %v120_v60 = vpop.xlane.xlu0 %119 }
 0x161   :  { %230 = vrsqrt.f32 %v144_v58  ;;  %v137_v61 = vmul.f32 0.03125, %v117_v59  ;;  %v138_v62 = vmul.f32 0.03125, %v120_v60 }
 0x163   :  { %v145_v63 = vadd.f32 1e-05, %v137_v61  ;;  %v146_v0 = vadd.f32 1e-05, %v138_v62 }
 0x164   :  { %v123_v1 = vpop.xlane.xlu1 %122  ;;  %v126_v2 = vpop.xlane.xlu0 %125 }
 0x165   :  { %232 = vrsqrt.f32 %v145_v63  ;;  %v139_v3 = vmul.f32 0.03125, %v123_v1  ;;  %v140_v4 = vmul.f32 0.03125, %v126_v2 }
 0x166   :  { %234 = vrsqrt.f32 %v146_v0 }
 0x167   :  { %v147_v5 = vadd.f32 1e-05, %v139_v3  ;;  %v148_v6 = vadd.f32 1e-05, %v140_v4 }
 0x168   :  { %v129_v7 = vpop.xlane.xlu1 %128  ;;  %v132_v8 = vpop.xlane.xlu0 %131 }
 0x169   :  { %236 = vrsqrt.f32 %v147_v5  ;;  %v141_v9 = vmul.f32 0.03125, %v129_v7  ;;  %v142_v10 = vmul.f32 0.03125, %v132_v8 }
 0x16a   :  { %238 = vrsqrt.f32 %v148_v6 }
 0x16b   :  { %v231_v11 = vpop.eup %230  ;;  %v149_v13 = vadd.f32 1e-05, %v141_v9  ;;  %v150_v14 = vadd.f32 1e-05, %v142_v10 }
 0x16c   :  { %v160_v15 = vmul.f32 %v231_v11, %v420_v20  ;;  %v135_v16 = vpop.xlane.xlu1 %134 }
 0x16d   :  { %240 = vrsqrt.f32 %v149_v13  ;;  %v143_v18 = vmul.f32 0.03125, %v135_v16 }
 0x16e   :  { %v174_v19 = vmul.f32 %v222_v12, %v160_v15  ;;  %242 = vrsqrt.f32 %v150_v14 }
 0x16f   :  { %v233_v22 = vpop.eup %232  ;;  %v151_v23 = vadd.f32 1e-05, %v143_v18 }
 0x170   :  { %v235_v24 = vpop.eup %234  ;;  %v188_v25 = vadd.f32 %v223_v17, %v174_v19  ;;  %v161_v26 = vmul.f32 %v233_v22, %v428_v28 }
 0x171   :  { %v162_v27 = vmul.f32 %v235_v24, %v422_v21  ;;  %244 = vrsqrt.f32 %v151_v23 }
 0x172   :  { %196 = vst.msk [vmem:[#allocation8] sm:$0xff] %vm62_vm0, %v188_v25  ;;  %v175_v30 = vmul.f32 %v222_v12, %v161_v26 }
 0x173   :  { %v237_v31 = vpop.eup %236  ;;  %v176_v20 = vmul.f32 %v222_v12, %v162_v27 }
 0x174   :  { %v239_v32 = vpop.eup %238  ;;  %v189_v33 = vadd.f32 %v223_v17, %v175_v30  ;;  %v163_v34 = vmul.f32 %v237_v31, %v430_v29 }
 0x175   :  { %v190_v35 = vadd.f32 %v223_v17, %v176_v20  ;;  %v164_v36 = vmul.f32 %v239_v32, %v438_v38 }
 0x176   :  { %197 = vst.msk [vmem:[#allocation8 + $0x8] sm:$0xff] %vm62_vm0, %v189_v33  ;;  %v177_v37 = vmul.f32 %v222_v12, %v163_v34 }
 0x177   :  { %v241_v40 = vpop.eup %240  ;;  %198 = vst.msk [vmem:[#allocation8 + $0x10] sm:$0xff] %vm62_vm0, %v190_v35  ;;  %v178_v21 = vmul.f32 %v222_v12, %v164_v36 }
 0x178   :  { %v243_v28 = vpop.eup %242  ;;  %v191_v41 = vadd.f32 %v223_v17, %v177_v37  ;;  %v165_v42 = vmul.f32 %v241_v40, %v440_v39 }
 0x179   :  { %v192_v43 = vadd.f32 %v223_v17, %v178_v21  ;;  %v166_v44 = vmul.f32 %v243_v28, %v448_v48 }
 0x17a   :  { %199 = vst.msk [vmem:[#allocation8 + $0x18] sm:$0xff] %vm62_vm0, %v191_v41  ;;  %v179_v29 = vmul.f32 %v222_v12, %v165_v42 }
 0x17b   :  { %v245_v45 = vpop.eup %244  ;;  %200 = vst.msk [vmem:[#allocation8 + $0x20] sm:$0xff] %vm62_vm0, %v192_v43  ;;  %v180_v38 = vmul.f32 %v222_v12, %v166_v44 }
 0x17c   :  { %v193_v46 = vadd.f32 %v223_v17, %v179_v29  ;;  %v167_v47 = vmul.f32 %v245_v45, %v450_v49 }
 0x17d   :  { %v194_v50 = vadd.f32 %v223_v17, %v180_v38 }
 0x17e   :  { %201 = vst.msk [vmem:[#allocation8 + $0x28] sm:$0xff] %vm62_vm0, %v193_v46  ;;  %v181_v51 = vmul.f32 %v222_v12, %v167_v47 }
 0x17f   :  { %202 = vst.msk [vmem:[#allocation8 + $0x30] sm:$0xff] %vm62_vm0, %v194_v50 }
 0x180   :  { %v195_v39 = vadd.f32 %v223_v17, %v181_v51 }
 0x182   :  { %203 = vst.msk [vmem:[#allocation8 + $0x38] sm:$0xff] %vm62_vm0, %v195_v39 }
 0x183   :  { %323 = shalt.err (!%p320_p0)
}
 0x184   :  { %s324_s27 = scalar_lea.hbm %s494_s3, 1024 }
 0x185   :  { %p325_p1 = scmp.ne.s32.totalorder %s494_s3, %s324_s27  ;;  %p328_p2 = scmp.lt.u32.totalorder %s324_s27, %s494_s3 }
 0x187   :  { %p330_p3 = pnand %p328_p2, %p325_p1 }
 0x189   :  { %333 = shalt.err (!%p330_p3)
}
 0x18a   :  { %215 = dma.vmem_to_hbm [thread:$0]  %s210_s23, 1024, %s494_s3, [#allocation4], %s342_s1, %s342_s1, %s343_s8  }
 0x18b   :  { %338 = dma.done.wait [#allocation4], 1024  }
 0x18c   :  { %339 = vsyncadd [#allocation4], 4294966272 }
 0x18d   :  { %219 = vsyncpa [#allocation3], 1 }
 0x18e   :  { %220 = vsyncpa [#allocation6], 1 }
 0x18f   :  { %221 = vsyncpa [#allocation4], 1 }

// kernel: visual_transformer_forward.11
= control target key start
LH: loop header
LB: loop body
LE: loop exit
PB: predicated region body
PF: predicated region fallthrough
CT: control target
= control target key end

     0   :  { %10 = vsyncpa [#allocation3], 0  ;;  %s800_s0 = inlined_call_operand.hbm [shape: f32[64,32], index: 0, kind: input, shape index: {}]   ;;  %s801_s1 = inlined_call_operand.hbm [shape: f32[1,32], index: 1, kind: input, shape index: {}]   ;;  %s802_s2 = inlined_call_operand.hbm [shape: f32[1,32], index: 2, kind: input, shape index: {}]   ;;  %s803_s3 = inlined_call_operand.hbm [shape: bf16[32,96], index: 3, kind: input, shape index: {}]   ;;  %s804_s4 = inlined_call_operand.hbm [shape: f32[1,96], index: 4, kind: input, shape index: {}]   ;;  %s805_s5 = inlined_call_operand.hbm [shape: bf16[64,96], index: 5, kind: output, shape index: {}]  }
   0x1   :  { %11 = vsyncpa [#allocation6], 0 }
   0x2   :  { %12 = vsyncpa [#allocation9], 0 }
   0x3   :  { %13 = vsyncpa [#allocation4], 0  ;;  %s607_s18 = smov [#allocation5]   ;;  %s608_s20 = smov [#allocation8]  }
   0x4   :  { %s32_s19 = sshll.u32 %s607_s18, 4  ;;  %s51_s21 = sshll.u32 %s608_s20, 4  ;;  %s33_s19 = int_to_ptr.vmem [resolvable:$true] %s32_s19  ;;  %s647_s21 = int_to_ptr.vmem [resolvable:$true] %s51_s21 }
   0x5   :  { %s467_s24 = scalar_lea.hbm %s801_s1, 16 }
   0x6   :  { %p468_p0 = scmp.ne.s32.totalorder %s801_s1, %s467_s24  ;;  %p471_p1 = scmp.lt.u32.totalorder %s467_s24, %s801_s1 }
   0x8   :  { %p473_p2 = pnand %p471_p1, %p468_p0 }
   0xa   :  { %476 = shalt.err (!%p473_p2)
}
   0xb   :  { %s477_s29 = scalar_lea.vmem %s33_s19, 16  ;;  %s481_s30 = scalar_lea.vmem %s33_s19, 32 }
   0xc   :  { %p478_p3 = scmp.ne.s32.totalorder %s33_s19, %s477_s29  ;;  %p482_p4 = scmp.lt.s32.totalorder %s33_s19, %s33_s19 }
   0xd   :  { %p483_p5 = scmp.lt.s32.totalorder %s481_s30, %s477_s29 }
   0xf   :  { %p484_p6 = por %p483_p5, %p482_p4 }
  0x11   :  { %p485_p7 = pnand %p484_p6, %p478_p3 }
  0x13   :  { %488 = shalt.err (!%p485_p7)
}
  0x14   :  { %35 = dma.hbm_to_vmem [thread:$0]  %s801_s1, 16, %s33_s19, [#allocation6]  }
  0x15   :  { %s489_s10 = scalar_lea.hbm %s803_s3, 256 }
  0x16   :  { %p490_p8 = scmp.ne.s32.totalorder %s803_s3, %s489_s10  ;;  %p493_p9 = scmp.lt.u32.totalorder %s489_s10, %s803_s3 }
  0x18   :  { %p495_p10 = pnand %p493_p9, %p490_p8 }
  0x1a   :  { %498 = shalt.err (!%p495_p10)
}
  0x1b   :  { %s499_s15 = scalar_lea.vmem %s647_s21, 256  ;;  %p504_p12 = scmp.lt.s32.totalorder %s647_s21, %s647_s21 }
  0x1c   :  { %p500_p11 = scmp.ne.s32.totalorder %s647_s21, %s499_s15  ;;  %p505_p13 = scmp.lt.s32.totalorder %s499_s15, %s499_s15 }
  0x1e   :  { %p506_p0 = por %p505_p13, %p504_p12 }
  0x20   :  { %p507_p1 = pnand %p506_p0, %p500_p11 }
  0x22   :  { %510 = shalt.err (!%p507_p1)
}
  0x23   :  { %s609_s1 = smov 64   ;;  %s610_s16 = smov 4  }
  0x24   :  { %57 = dma.hbm_to_vmem [thread:$0]  %s803_s3, 256, %s647_s21, [#allocation9], %s609_s1, %s609_s1, %s610_s16  }
  0x25   :  { %s611_s19 = smov [#allocation2]   ;;  %s511_s24 = scalar_lea.hbm %s800_s0, 1024 }
  0x26   :  { %s19_s20 = sshll.u32 %s611_s19, 4  ;;  %p512_p2 = scmp.ne.s32.totalorder %s800_s0, %s511_s24  ;;  %s20_s20 = int_to_ptr.vmem [resolvable:$true] %s19_s20 }
  0x27   :  { %p515_p3 = scmp.lt.u32.totalorder %s511_s24, %s800_s0 }
  0x29   :  { %p517_p4 = pnand %p515_p3, %p512_p2 }
  0x2b   :  { %520 = shalt.err (!%p517_p4)
}
  0x2c   :  { %s521_s29 = scalar_lea.vmem %s20_s20, 1024  ;;  %p526_p6 = scmp.lt.s32.totalorder %s20_s20, %s20_s20 }
  0x2d   :  { %p522_p5 = scmp.ne.s32.totalorder %s20_s20, %s521_s29  ;;  %p527_p7 = scmp.lt.s32.totalorder %s521_s29, %s521_s29 }
  0x2f   :  { %p528_p8 = por %p527_p7, %p526_p6 }
  0x31   :  { %p529_p9 = pnand %p528_p8, %p522_p5 }
  0x33   :  { %532 = shalt.err (!%p529_p9)
}
  0x34   :  { %s612_s3 = smov 128   ;;  %s613_s21 = smov 8  }
  0x35   :  { %25 = dma.hbm_to_vmem [thread:$0]  %s800_s0, 1024, %s20_s20, [#allocation3], %s612_s3, %s612_s3, %s613_s21  }
  0x36   :  { %s614_s7 = smov [#allocation7]   ;;  %s615_s9 = smov [#allocation10]  }
  0x37   :  { %s42_s8 = sshll.u32 %s614_s7, 4  ;;  %s64_s10 = sshll.u32 %s615_s9, 4  ;;  %s43_s8 = int_to_ptr.vmem [resolvable:$true] %s42_s8  ;;  %s65_s10 = int_to_ptr.vmem [resolvable:$true] %s64_s10 }
  0x38   :  { %s533_s13 = scalar_lea.hbm %s802_s2, 16 }
  0x39   :  { %p534_p10 = scmp.ne.s32.totalorder %s802_s2, %s533_s13  ;;  %p537_p11 = scmp.lt.u32.totalorder %s533_s13, %s802_s2 }
  0x3b   :  { %p539_p12 = pnand %p537_p11, %p534_p10 }
  0x3d   :  { %542 = shalt.err (!%p539_p12)
}
  0x3e   :  { %s543_s0 = scalar_lea.vmem %s43_s8, 16  ;;  %s547_s19 = scalar_lea.vmem %s43_s8, 32 }
  0x3f   :  { %p544_p13 = scmp.ne.s32.totalorder %s43_s8, %s543_s0  ;;  %p548_p0 = scmp.lt.s32.totalorder %s43_s8, %s43_s8 }
  0x40   :  { %p549_p1 = scmp.lt.s32.totalorder %s547_s19, %s543_s0 }
  0x42   :  { %p550_p2 = por %p549_p1, %p548_p0 }
  0x44   :  { %p551_p3 = pnand %p550_p2, %p544_p13 }
  0x46   :  { %554 = shalt.err (!%p551_p3)
}
  0x47   :  { %45 = dma.hbm_to_vmem [thread:$0]  %s802_s2, 16, %s43_s8, [#allocation6]  }
  0x48   :  { %s555_s25 = scalar_lea.hbm %s804_s4, 16 }
  0x49   :  { %p556_p4 = scmp.ne.s32.totalorder %s804_s4, %s555_s25  ;;  %p559_p5 = scmp.lt.u32.totalorder %s555_s25, %s804_s4 }
  0x4b   :  { %p561_p6 = pnand %p559_p5, %p556_p4 }
  0x4d   :  { %564 = shalt.err (!%p561_p6)
}
  0x4e   :  { %s565_s3 = scalar_lea.vmem %s65_s10, 16  ;;  %s569_s21 = scalar_lea.vmem %s65_s10, 32 }
  0x4f   :  { %p566_p7 = scmp.ne.s32.totalorder %s65_s10, %s565_s3  ;;  %p570_p8 = scmp.lt.s32.totalorder %s65_s10, %s65_s10 }
  0x50   :  { %p571_p9 = scmp.lt.s32.totalorder %s569_s21, %s565_s3 }
  0x52   :  { %p572_p10 = por %p571_p9, %p570_p8 }
  0x54   :  { %p573_p11 = pnand %p572_p10, %p566_p7 }
  0x56   :  { %576 = shalt.err (!%p573_p11)
}
  0x57   :  { %67 = dma.hbm_to_vmem [thread:$0]  %s804_s4, 16, %s65_s10, [#allocation9]  }
  0x58   :  { %599 = dma.done.wait [#allocation3], 1024  }
  0x59   :  { %600 = vsyncadd [#allocation3], 4294966272 }
  0x5a   :  { %601 = dma.done.wait [#allocation6], 32  }
  0x5b   :  { %602 = vsyncadd [#allocation6], 4294967264 }
  0x5c   :  { %603 = dma.done.wait [#allocation9], 272  }
  0x5d   :  { %604 = vsyncadd [#allocation9], 4294967024  ;;  %vm94_vm0 = vcmask 261120   ;;  %v84_v0 = vld [vmem:[#allocation2] sm:$0xff]  ;;  %v85_v2 = vld [vmem:[#allocation2 + $0x8] sm:$0xff]  ;;  %vm364_vm1 = vcmask 781312  }
  0x5e   :  { %v88_v1 = vld [vmem:[#allocation2 + $0x20] sm:$0xff]  ;;  %v95_v3 = vsel %vm94_vm0, %v84_v0, 0.0  ;;  %v89_v5 = vld [vmem:[#allocation2 + $0x28] sm:$0xff]  ;;  %v98_v6 = vsel %vm94_vm0, %v85_v2, 0.0  ;;  %v86_v8 = vld [vmem:[#allocation2 + $0x10] sm:$0xff]  ;;  %s616_s4 = smov [#allocation11]  }
  0x5f   :  { %v107_v4 = vsel %vm94_vm0, %v88_v1, 0.0  ;;  %96 = vadd.xlane.f32.xlu0 %v95_v3  ;;  %v110_v7 = vsel %vm94_vm0, %v89_v5, 0.0  ;;  %v87_v9 = vld [vmem:[#allocation2 + $0x18] sm:$0xff]  ;;  %v101_v10 = vsel %vm94_vm0, %v86_v8, 0.0  ;;  %v90_v12 = vld [vmem:[#allocation2 + $0x30] sm:$0xff]  ;;  %v449_v56 = vld [vmem:[#allocation8] sm:$0xff]  }
  0x60   :  { %108 = vadd.xlane.f32.xlu1 %v107_v4  ;;  %v104_v11 = vsel %vm94_vm0, %v87_v9, 0.0  ;;  %v91_v13 = vld [vmem:[#allocation2 + $0x38] sm:$0xff]  ;;  %v113_v14 = vsel %vm94_vm0, %v90_v12, 0.0  ;;  %423 = vmatprep.subr.bf16.mxu0 %v449_v56  ;;  %v450_v57 = vld [vmem:[#allocation8 + $0x8] sm:$0xff]   ;;  %s378_s6 = sshll.u32 %s616_s4, 4  ;;  %s379_s6 = int_to_ptr.vmem [resolvable:$true] %s378_s6 }
  0x61   :  { %v116_v15 = vsel %vm94_vm0, %v91_v13, 0.0  ;;  %435 = vmatprep.subr.bf16.mxu1 %v449_v56  ;;  %424 = vmatpush3.bf16.msra.mxu0 %v449_v56  ;;  %s577_s7 = scalar_lea.vmem %s379_s6, 512  ;;  %p582_p13 = scmp.lt.s32.totalorder %s379_s6, %s379_s6 }
  0x62   :  { %437 = vmatpush3.bf16.msra.mxu1 %v449_v56  ;;  %425 = vmatprep.subr.bf16.mxu0 %v450_v57  ;;  %p578_p12 = scmp.ne.s32.totalorder %s379_s6, %s577_s7  ;;  %p583_p0 = scmp.lt.s32.totalorder %s577_s7, %s577_s7 }
  0x63   :  { %99 = vadd.xlane.f32.xlu0 %v98_v6  ;;  %436 = vmatprep.subr.bf16.mxu1 %v450_v57 }
  0x64   :  { %111 = vadd.xlane.f32.xlu1 %v110_v7  ;;  %p584_p1 = por %p583_p0, %p582_p13 }
  0x65   :  { %426 = vmatpush3.bf16.msra.mxu0 %v450_v57 }
  0x66   :  { %438 = vmatpush3.bf16.msra.mxu1 %v450_v57  ;;  %p585_p2 = pnand %p584_p1, %p578_p12 }
  0x67   :  { %102 = vadd.xlane.f32.xlu0 %v101_v10 }
  0x68   :  { %105 = vadd.xlane.f32.xlu1 %v104_v11 }
  0x6b   :  { %114 = vadd.xlane.f32.xlu0 %v113_v14 }
  0x6c   :  { %117 = vadd.xlane.f32.xlu1 %v116_v15 }
  0xec   :  { %v97_v16 = vpop.xlane.xlu0 %96 }
  0xed   :  { %v109_v17 = vpop.xlane.xlu1 %108  ;;  %v120_v18 = vmul.f32 0.03125, %v97_v16 }
  0xee   :  { %v124_v19 = vmul.f32 0.03125, %v109_v17 }
  0xef   :  { %v725_v20 = vsub.f32 %v84_v0, %v120_v18 }
  0xf0   :  { %v727_v21 = vsub.f32 %v88_v1, %v124_v19  ;;  %v100_v22 = vpop.xlane.xlu0 %99  ;;  %v392_v19 = vld [vmem:[#allocation5] ss:$0 sm:$0xff] }
  0xf1   :  { %v112_v23 = vpop.xlane.xlu1 %111  ;;  %v121_v24 = vmul.f32 0.03125, %v100_v22  ;;  %v136_v26 = vmul.f32 %v725_v20, %v725_v20 }
  0xf2   :  { %v125_v25 = vmul.f32 0.03125, %v112_v23  ;;  %v140_v27 = vmul.f32 %v727_v21, %v727_v21 }
  0xf3   :  { %v733_v28 = vsub.f32 %v85_v2, %v121_v24  ;;  %v144_v30 = vsel %vm94_vm0, %v136_v26, 0.0 }
  0xf4   :  { %v735_v29 = vsub.f32 %v89_v5, %v125_v25  ;;  %145 = vadd.xlane.f32.xlu0 %v144_v30  ;;  %v103_v31 = vpop.xlane.xlu0 %102  ;;  %v156_v33 = vsel %vm94_vm0, %v140_v27, 0.0  ;;  %v393_v27 = vld [vmem:[#allocation7] ss:$0 sm:$0xff] }
  0xf5   :  { %v106_v32 = vpop.xlane.xlu1 %105  ;;  %v122_v34 = vmul.f32 0.03125, %v103_v31  ;;  %v137_v36 = vmul.f32 %v733_v28, %v733_v28 }
  0xf6   :  { %v123_v35 = vmul.f32 0.03125, %v106_v32  ;;  %v141_v37 = vmul.f32 %v735_v29, %v735_v29 }
  0xf7   :  { %v743_v38 = vsub.f32 %v86_v8, %v122_v34  ;;  %v147_v40 = vsel %vm94_vm0, %v137_v36, 0.0 }
  0xf8   :  { %v745_v39 = vsub.f32 %v87_v9, %v123_v35  ;;  %157 = vadd.xlane.f32.xlu0 %v156_v33  ;;  %148 = vadd.xlane.f32.xlu1 %v147_v40  ;;  %v115_v41 = vpop.xlane.xlu0 %114  ;;  %v159_v43 = vsel %vm94_vm0, %v141_v37, 0.0 }
  0xf9   :  { %v118_v42 = vpop.xlane.xlu1 %117  ;;  %v126_v44 = vmul.f32 0.03125, %v115_v41  ;;  %v138_v46 = vmul.f32 %v743_v38, %v743_v38 }
  0xfa   :  { %v127_v45 = vmul.f32 0.03125, %v118_v42  ;;  %v139_v47 = vmul.f32 %v745_v39, %v745_v39 }
  0xfb   :  { %v753_v48 = vsub.f32 %v90_v12, %v126_v44  ;;  %v150_v50 = vsel %vm94_vm0, %v138_v46, 0.0 }
  0xfc   :  { %v755_v49 = vsub.f32 %v91_v13, %v127_v45  ;;  %160 = vadd.xlane.f32.xlu1 %v159_v43  ;;  %151 = vadd.xlane.f32.xlu0 %v150_v50  ;;  %v153_v51 = vsel %vm94_vm0, %v139_v47, 0.0 }
  0xfd   :  { %v142_v52 = vmul.f32 %v753_v48, %v753_v48 }
  0xfe   :  { %v143_v53 = vmul.f32 %v755_v49, %v755_v49 }
  0xff   :  { %v162_v54 = vsel %vm94_vm0, %v142_v52, 0.0 }
 0x100   :  { %154 = vadd.xlane.f32.xlu1 %v153_v51  ;;  %163 = vadd.xlane.f32.xlu0 %v162_v54  ;;  %v165_v55 = vsel %vm94_vm0, %v143_v53, 0.0 }
 0x104   :  { %166 = vadd.xlane.f32.xlu1 %v165_v55 }
 0x181   :  { %v146_v58 = vpop.xlane.xlu0 %145 }
 0x182   :  { %v168_v59 = vmul.f32 0.03125, %v146_v58 }
 0x184   :  { %v176_v60 = vadd.f32 1e-05, %v168_v59 }
 0x185   :  { %v149_v61 = vpop.xlane.xlu1 %148  ;;  %v158_v62 = vpop.xlane.xlu0 %157 }
 0x186   :  { %451 = vrsqrt.f32 %v176_v60  ;;  %v169_v63 = vmul.f32 0.03125, %v149_v61  ;;  %v172_v0 = vmul.f32 0.03125, %v158_v62 }
 0x188   :  { %v177_v1 = vadd.f32 1e-05, %v169_v63  ;;  %v180_v2 = vadd.f32 1e-05, %v172_v0 }
 0x189   :  { %v161_v3 = vpop.xlane.xlu1 %160  ;;  %v152_v4 = vpop.xlane.xlu0 %151 }
 0x18a   :  { %453 = vrsqrt.f32 %v177_v1  ;;  %v173_v5 = vmul.f32 0.03125, %v161_v3  ;;  %v170_v6 = vmul.f32 0.03125, %v152_v4 }
 0x18b   :  { %455 = vrsqrt.f32 %v180_v2 }
 0x18c   :  { %v181_v7 = vadd.f32 1e-05, %v173_v5  ;;  %v178_v8 = vadd.f32 1e-05, %v170_v6 }
 0x18d   :  { %v155_v9 = vpop.xlane.xlu1 %154  ;;  %v164_v10 = vpop.xlane.xlu0 %163 }
 0x18e   :  { %457 = vrsqrt.f32 %v181_v7  ;;  %v171_v11 = vmul.f32 0.03125, %v155_v9  ;;  %v174_v12 = vmul.f32 0.03125, %v164_v10 }
 0x18f   :  { %459 = vrsqrt.f32 %v178_v8 }
 0x190   :  { %v452_v13 = vpop.eup %451  ;;  %v179_v14 = vadd.f32 1e-05, %v171_v11  ;;  %v182_v15 = vadd.f32 1e-05, %v174_v12 }
 0x191   :  { %v167_v16 = vpop.xlane.xlu1 %166  ;;  %v192_v17 = vmul.f32 %v452_v13, %v725_v20 }
 0x192   :  { %461 = vrsqrt.f32 %v179_v14  ;;  %v175_v18 = vmul.f32 0.03125, %v167_v16 }
 0x193   :  { %463 = vrsqrt.f32 %v182_v15  ;;  %v206_v26 = vmul.f32 %v392_v19, %v192_v17 }
 0x194   :  { %v454_v22 = vpop.eup %453  ;;  %v183_v23 = vadd.f32 1e-05, %v175_v18 }
 0x195   :  { %v456_v24 = vpop.eup %455  ;;  %v193_v25 = vmul.f32 %v454_v22, %v733_v28  ;;  %v220_v34 = vadd.f32 %v393_v27, %v206_v26 }
 0x196   :  { %465 = vrsqrt.f32 %v183_v23  ;;  %v196_v30 = vmul.f32 %v456_v24, %v727_v21 }
 0x197   :  { %v207_v31 = vmul.f32 %v392_v19, %v193_v25 }
 0x198   :  { %v458_v32 = vpop.eup %457  ;;  %v210_v36 = vmul.f32 %v392_v19, %v196_v30 }
 0x199   :  { %v460_v33 = vpop.eup %459  ;;  %v221_v35 = vadd.f32 %v393_v27, %v207_v31  ;;  %v197_v20 = vmul.f32 %v458_v32, %v735_v29 }
 0x19a   :  { %v194_v37 = vmul.f32 %v460_v33, %v743_v38  ;;  %v224_v44 = vadd.f32 %v393_v27, %v210_v36 }
 0x19b   :  { %v232_v40 = vpack.c.bf16 %v221_v35, %v220_v34  ;;  %v211_v41 = vmul.f32 %v392_v19, %v197_v20 }
 0x19c   :  { %v462_v42 = vpop.eup %461  ;;  %v208_v45 = vmul.f32 %v392_v19, %v194_v37 }
 0x19d   :  { %v464_v43 = vpop.eup %463  ;;  %v195_v28 = vmul.f32 %v462_v42, %v745_v39  ;;  %427 = vmatprep.mubr.msk.bf16.mxu0 %vm94_vm0, %v232_v40  ;;  %v225_v21 = vadd.f32 %v393_v27, %v211_v41 }
 0x19e   :  { %v198_v46 = vmul.f32 %v464_v43, %v753_v48  ;;  %v222_v38 = vadd.f32 %v393_v27, %v208_v45  ;;  %v394_v48 = vld [vmem:[#allocation10] ss:$0 sm:$0xff] }
 0x19f   :  { %v234_v47 = vpack.c.bf16 %v225_v21, %v224_v44  ;;  %v209_v50 = vmul.f32 %v392_v19, %v195_v28 }
 0x1a0   :  { %v466_v51 = vpop.eup %465  ;;  %v212_v53 = vmul.f32 %v392_v19, %v198_v46 }
 0x1a1   :  { %v199_v29 = vmul.f32 %v466_v51, %v755_v49  ;;  %431 = vmatprep.mubr.msk.bf16.mxu1 %vm94_vm0, %v234_v47  ;;  %v223_v52 = vadd.f32 %v393_v27, %v209_v50 }
 0x1a2   :  { %v226_v39 = vadd.f32 %v393_v27, %v212_v53 }
 0x1a3   :  { %v233_v54 = vpack.c.bf16 %v223_v52, %v222_v38  ;;  %v213_v55 = vmul.f32 %v392_v19, %v199_v29 }
 0x1a5   :  { %428 = vmatmul.mubr.msk.bf16.vlgmr.msra.gmra.mrb[0].mxu0 %vm94_vm0, %v233_v54  ;;  %v227_v56 = vadd.f32 %v393_v27, %v213_v55 }
 0x1a7   :  { %v235_v57 = vpack.c.bf16 %v227_v56, %v226_v39 }
 0x1a9   :  { %432 = vmatmul.mubr.msk.bf16.vlgmr.msra.gmra.mrb[0].mxu1 %vm94_vm0, %v235_v57 }
 0x278   :  { %v429_v58 = vpop.f32.mrb[0].mxu0 }
 0x279   :  { %v310_v59 = vadd.f32 %v429_v58, %v394_v48  ;;  %v301_v60 = vpop.f32.mrb[1].mxu0 }
 0x27a   :  { %v302_v49 = vadd.f32 %v394_v48, %v301_v60  ;;  %v430_v61 = vpop.f32.mrb[2].mxu0 }
 0x27b   :  { %v411_v62 = vpack.c.bf16 %v310_v59, %v310_v59  ;;  %v313_v63 = vadd.f32 %v430_v61, %v394_v48  ;;  %v304_v0 = vpop.f32.mrb[3].mxu0 }
 0x27c   :  { %v409_v1 = vpack.c.bf16 %v302_v49, %v302_v49  ;;  %v305_v2 = vadd.f32 %v394_v48, %v304_v0  ;;  %v433_v3 = vpop.f32.mrb[0].mxu1 }
 0x27d   :  { %367 = vst.msk [vmem:[#allocation11 + $0x8] sm:$0xf] %vm364_vm1, %v411_v62  ;;  %v412_v4 = vpack.c.bf16 %v313_v63, %v313_v63  ;;  %v326_v5 = vadd.f32 %v433_v3, %v394_v48  ;;  %v317_v6 = vpop.f32.mrb[1].mxu1 }
 0x27e   :  { %365 = vst.msk [vmem:[#allocation11] sm:$0xf] %vm364_vm1, %v409_v1  ;;  %v410_v7 = vpack.c.bf16 %v305_v2, %v305_v2  ;;  %v318_v8 = vadd.f32 %v394_v48, %v317_v6  ;;  %v434_v9 = vpop.f32.mrb[2].mxu1 }
 0x27f   :  { %368 = vst.msk [vmem:[#allocation11 + $0xc] sm:$0xf] %vm364_vm1, %v412_v4  ;;  %v415_v10 = vpack.c.bf16 %v326_v5, %v326_v5  ;;  %v329_v11 = vadd.f32 %v434_v9, %v394_v48  ;;  %v320_v12 = vpop.f32.mrb[3].mxu1 }
 0x280   :  { %366 = vst.msk [vmem:[#allocation11 + $0x4] sm:$0xf] %vm364_vm1, %v410_v7  ;;  %v413_v13 = vpack.c.bf16 %v318_v8, %v318_v8  ;;  %v321_v14 = vadd.f32 %v394_v48, %v320_v12 }
 0x281   :  { %371 = vst.msk [vmem:[#allocation11 + $0x18] sm:$0xf] %vm364_vm1, %v415_v10  ;;  %v416_v15 = vpack.c.bf16 %v329_v11, %v329_v11 }
 0x282   :  { %369 = vst.msk [vmem:[#allocation11 + $0x10] sm:$0xf] %vm364_vm1, %v413_v13  ;;  %v414_v16 = vpack.c.bf16 %v321_v14, %v321_v14 }
 0x283   :  { %372 = vst.msk [vmem:[#allocation11 + $0x1c] sm:$0xf] %vm364_vm1, %v416_v15 }
 0x284   :  { %370 = vst.msk [vmem:[#allocation11 + $0x14] sm:$0xf] %vm364_vm1, %v414_v16 }
 0x285   :  { %588 = shalt.err (!%p585_p2)
}
 0x286   :  { %s589_s10 = scalar_lea.hbm %s805_s5, 512 }
 0x287   :  { %p590_p3 = scmp.ne.s32.totalorder %s805_s5, %s589_s10  ;;  %p593_p4 = scmp.lt.u32.totalorder %s589_s10, %s805_s5 }
 0x289   :  { %p595_p5 = pnand %p593_p4, %p590_p3 }
 0x28b   :  { %598 = shalt.err (!%p595_p5)
}
 0x28c   :  { %384 = dma.vmem_to_hbm [thread:$0]  %s379_s6, 512, %s805_s5, [#allocation4], %s609_s1, %s609_s1, %s610_s16  }
 0x28d   :  { %605 = dma.done.wait [#allocation4], 512  }
 0x28e   :  { %606 = vsyncadd [#allocation4], 4294966784 }
 0x28f   :  { %388 = vsyncpa [#allocation3], 1 }
 0x290   :  { %389 = vsyncpa [#allocation6], 1 }
 0x291   :  { %390 = vsyncpa [#allocation9], 1 }
 0x292   :  { %391 = vsyncpa [#allocation4], 1 }

// kernel: visual_transformer_forward.12
= control target key start
LH: loop header
LB: loop body
LE: loop exit
PB: predicated region body
PF: predicated region fallthrough
CT: control target
= control target key end

     0   :  { %6 = vsyncpa [#allocation3], 0  ;;  %s1836_s0 = inlined_call_operand.hbm [shape: bf16[64,96], index: 0, kind: input, shape index: {}]   ;;  %s1837_s1 = inlined_call_operand.hbm [shape: bf16[64,32], index: 1, kind: output, shape index: {}]  }
   0x1   :  { %8 = vsyncpa [#allocation3 + $0x1], 0 }
   0x2   :  { %9 = vsyncpa [#allocation4], 0 }
   0x3   :  { %11 = vsyncpa [#allocation4 + $0x1], 0  ;;  %s1493_s6 = smov 0   ;;  %s1495_s7 = smov 0  }
   0x4   :  { %s1497_s8 = smov 0   ;;  %s1499_s9 = smov 0  }
   0x5 LB: > { %s1514_s10 = sadd.s32 4294967295, %s1462_s9   ;;  %s1077_s11 = sadd.s32 4294967294, %s1462_s9   ;;  %s1462_s9 = sphi %s1499_s9, %s1850_s9   ;;  %s1458_s8 = sphi %s1497_s8, %s1849_s8   ;;  %s1454_s7 = sphi %s1495_s7, %s1848_s7   ;;  %s1450_s6 = sphi %s1493_s6, %s1847_s6  }
   0x6   : > { %s1518_s12 = sadd.s32 1, %s1462_s9   ;;  %s24_s13 = sadd.s32 1, %s1458_s8 }
   0x7   : > { %s21_s14 = ssub.s32 %s1462_s9, %s1518_s12  ;;  %p31_p0 = scmp.ne.s32.totalorder %s1458_s8, %s1454_s7 }
   0x8   : > { %p22_p1 = scmp.eq.s32.totalorder %s21_s14, 0  ;;  %p32_p2 = scmp.eq.s32.totalorder %s1462_s9, 0 }
   0x9   : > { %p37_p3 = scmp.ne.s32.totalorder %s1454_s7, %s1450_s6  ;;  %p38_p4 = scmp.eq.s32.totalorder %s1514_s10, 0 }
   0xa   : > { %s1530_s15 = scalar_select %p22_p1, %s1458_s8, %s24_s13  }
   0xb   : > { %p1532_p5 = por %p32_p2, %p31_p0  ;;  %p1536_p6 = por %p38_p4, %p37_p3 }
   0xc   : > { %p61_p7 = scmp.eq.s32.totalorder %s1514_s10, 1  ;;  %p67_p8 = scmp.eq.s32.totalorder %s1077_s11, 1 }
   0xd   : > { %p1235_p10 = scmp.lt.s32.totalorder %s1462_s9, 2  ;;  %s87_s20 = sand.u32 1, %s1458_s8  }
   0xe   : > { %p1543_p11 = por %p61_p7, %p31_p0  ;;  %p1547_p12 = por %p67_p8, %p37_p3 }
   0xf   : > { %s1113_s21 = sshll.u32 %s1462_s9, 8  ;;  %s1080_s22 = sshll.u32 %s87_s20, 4 }
  0x10   : > { %s1841_s18 = scalar_select %p1543_p11, 1, 0 }
  0x11   : > { %s1842_s19 = scalar_select %p1547_p12, 1, 0 }
  0x12   : > { %s1556_s25 = scalar_lea.hbm %s1836_s0, %s1113_s21  ;;  %s91_s26 = scalar_lea.vmem [#allocation2], %s1080_s22 }
  0x13   : > { %s98_s27 = sshll.u32 %s91_s26, 4  ;;  %p1560_p13 = pnand %p1235_p10, %p1532_p5  ;;  %s1564_s27 = int_to_ptr.vmem [resolvable:$true] %s98_s27 }
  0x14   : > { %s1566_s29 = scalar_lea.sflag [#allocation3], %s87_s20  ;;  %s1366_s30 = scalar_lea.hbm %s1556_s25, 256 }
  0x15   : > { %p1367_p0 = scmp.ne.s32.totalorder %s1556_s25, %s1366_s30  ;;  %p1368_p1 = pneg %p1560_p13 }
  0x16   : > { %s1371_s4 = scalar_lea.hbm %s1836_s0, 512  ;;  %p1372_p4 = scmp.lt.u32.totalorder %s1556_s25, %s1836_s0 }
  0x17   : > { %p1369_p2 = pnand %p1368_p1, %p1367_p0  ;;  %p1373_p5 = scmp.lt.u32.totalorder %s1371_s4, %s1366_s30 }
  0x18   : > { %p1375_p8 = scmp.lt.u32.totalorder %s1366_s30, %s1556_s25 }
  0x19   : > { %p1370_p3 = pneg %p1369_p2  ;;  %p1374_p7 = por %p1373_p5, %p1372_p4 }
  0x1b   : > { %p1376_p10 = por %p1375_p8, %p1374_p7 }
  0x1d   : > { %p1377_p9 = pnand %p1376_p10, %p1370_p3 }
  0x1f   : > { %1380 = shalt.err (!%p1377_p9)
}
  0x20   : > { %s1381_s13 = scalar_lea.vmem %s1564_s27, 256  ;;  %s1464_s14 = smov [#allocation2]  }
  0x21   : > { %p1382_p0 = scmp.ne.s32.totalorder %s1564_s27, %s1381_s13  ;;  %s1386_s16 = sshll.u32 %s1464_s14, 4  ;;  %s1387_s16 = int_to_ptr.vmem [resolvable:$false] %s1386_s16 }
  0x22   : > { %s1388_s20 = scalar_lea.vmem %s1387_s16, 512  ;;  %p1389_p11 = scmp.lt.s32.totalorder %s1564_s27, %s1387_s16 }
  0x23   : > { %p1384_p2 = pnand %p1382_p0, %p1368_p1  ;;  %p1390_p4 = scmp.lt.s32.totalorder %s1388_s20, %s1381_s13 }
  0x25   : > { %p1385_p12 = pneg %p1384_p2  ;;  %p1391_p5 = por %p1390_p4, %p1389_p11 }
  0x27   : > { %p1392_p7 = pnand %p1391_p5, %p1385_p12 }
  0x29   : > { %1395 = shalt.err (!%p1392_p7)
}
  0x2a   : > { %s1465_s21 = smov 64   ;;  %s1466_s22 = smov 4  }
  0x2b   : > { %1230 = dma.hbm_to_vmem [thread:$0]  (!%p1560_p13), %s1556_s25, 256, %s1564_s27, %s1566_s29, %s1465_s21, %s1465_s21, %s1466_s22  }
  0x2c   : > { %p1083_p9 = scmp.ge.s32.totalorder %s1462_s9, 1  ;;  %p106_p1 = scmp.lt.s32.totalorder %s1462_s9, 3 }
  0x2e   : > { %p107_p3 = pnand %p1083_p9, %p106_p1 }
  0x2f   : > { %s1597_s23 = sand.u32 (!%p107_p3), 1, %s1454_s7  }
  0x30   : > { %110 = sbr.rel (%p107_p3) target bundleno = 2799 (0xaef), region = 24  ;;  %s1084_s24 = sshll.u32 (!%p107_p3), %s1597_s23, 4 }
  0x31   : > { %s113_s26 = scalar_lea.sflag (!%p107_p3), [#allocation3], %s1597_s23  ;;  %s116_s30 = scalar_lea.vmem (!%p107_p3), [#allocation2], %s1084_s24 }
  0x37   : > { %1441 = dma.done.wait (%p1536_p6), %s113_s26, 256  }
  0x38   : > { %1443 = vsyncadd (%p1536_p6), %s113_s26, 4294967040  ;;  %v1607_v0 = vld [vmem:[%s116_s30] sm:$0xff]   ;;  %vm159_vm0 = vcmask 64512   ;;  %s1467_s25 = smov 96   ;;  %v1610_v1 = vld [vmem:[%s116_s30 + $0x8] sm:$0xff]   ;;  %v138_v6 = vlaneseq  ;;  %vm231_vm2 = vcmask 261120  }
  0x39   : > { %155 = vrot.lane.b32.xlu0 %v1607_v0, %s1467_s25  ;;  %1155 = vmatprep.mubr.msk.bf16.mxu0 %vm159_vm0, %v1607_v0  ;;  %s1468_s17 = smov 64   ;;  %s1469_s27 = smov 88   ;;  %vm959_vm3 = vcmask 130048   ;;  %vm964_vm4 = vcmask 195584   ;;  %vm985_vm5 = vcmask 257024  }
  0x3a   : > { %v1621_v7 = vand.u32 127, %v138_v6  ;;  %s1470_s28 = smov 120   ;;  %s1471_s29 = smov 56  }
  0x3b   : > { %s1472_s2 = smov 80   ;;  %s1473_s3 = smov 112  }
  0x3c   : > { %vm140_vm1 = vcmp.lt.s32.totalorder %v1621_v7, 17  ;;  %s1474_s4 = smov 48   ;;  %s1475_s5 = smov 72  }
  0x3d   : > { %157 = vrot.lane.b32.xlu0 %v1610_v1, %s1467_s25  ;;  %s1476_s11 = smov 104   ;;  %s1477_s13 = smov 40  }
  0x3e   : > { %s1478_s14 = smov 8   ;;  %s1479_s16 = smov 16  }
  0x3f   : > { %s1480_s20 = smov 24   ;;  %s1118_s21 = sshll.u32 %s1514_s10, 8 }
  0x40   : > { %s134_s22 = scalar_lea.vmem [#allocation5], %s1084_s24  ;;  %s1788_s24 = scalar_lea.hbm %s1837_s1, %s1118_s21 }
  0x41   : > { %s1004_s26 = sshll.u32 %s134_s22, 4  ;;  %s991_s25 = scalar_lea.sflag [#allocation4], %s1597_s23  ;;  %s1790_s26 = int_to_ptr.vmem [resolvable:$true] %s1004_s26 }
  0x42   : > { %p1844_p11 = scmp.ne.s32.totalorder %s1841_s18, 0 }
  0xab   : > { %v156_v2 = vpop.permute.xlu0 %155 }
  0xac   : > { %1215 = vmatprep.subr.msk.bf16.mxu0 %vm159_vm0, %v156_v2  ;;  %v167_v3 = vsel %vm159_vm0, %v156_v2, 0 }
  0xad   : > { %1152 = vmatpush3.bf16.xpose.msra.mxu0 %v167_v3 }
  0xaf   : > { %v158_v4 = vpop.permute.xlu0 %157 }
  0xb0   : > { %1216 = vmatprep.subr.msk.bf16.mxu0 %vm159_vm0, %v158_v4  ;;  %v170_v5 = vsel %vm159_vm0, %v158_v4, 0 }
  0xb5   : > { %1154 = vmatpush3.bf16.xpose.msra.mxu0 %v170_v5 }
  0xbc   : > { %1156 = vmatmul.mubr.msk.bf16.vlgmr.msra.gmra.mrb[0].mxu0 %vm159_vm0, %v1610_v1 }
 0x18f   : > { %v1157_v8 = vpop.f32.mrb[0].mxu0 }
 0x190   : > { %v223_v9 = vmul.f32 0.35355338, %v1157_v8  ;;  %v206_v10 = vpop.f32.mrb[1].mxu0 }
 0x191   : > { %v221_v11 = vmul.f32 0.35355338, %v206_v10  ;;  %v1158_v12 = vpop.f32.mrb[2].mxu0 }
 0x192   : > { %v209_v13 = vpop.f32.mrb[3].mxu0  ;;  %v229_v14 = vsel %vm140_vm1, %v223_v9, -inf  ;;  %v224_v19 = vmul.f32 0.35355338, %v1158_v12 }
 0x193   : > { %v222_v15 = vmul.f32 0.35355338, %v209_v13  ;;  %v238_v16 = vsel %vm231_vm2, %v229_v14, -inf  ;;  %v227_v17 = vsel %vm140_vm1, %v221_v11, -inf }
 0x194   : > { %239 = vmax.xlane.f32.xlu0 %v238_v16  ;;  %v232_v18 = vsel %vm231_vm2, %v227_v17, -inf  ;;  %v230_v22 = vsel %vm140_vm1, %v224_v19, -inf }
 0x195   : > { %233 = vmax.xlane.f32.xlu1 %v232_v18  ;;  %v228_v20 = vsel %vm140_vm1, %v222_v15, -inf  ;;  %v241_v23 = vsel %vm231_vm2, %v230_v22, -inf }
 0x196   : > { %v235_v21 = vsel %vm231_vm2, %v228_v20, -inf }
 0x199   : > { %236 = vmax.xlane.f32.xlu1 %v235_v21 }
 0x19d   : > { %242 = vmax.xlane.f32.xlu1 %v241_v23 }
 0x1aa   : > { %284 = vrot.lane.b32.xlu0 %v1610_v1, %s1468_s17 }
 0x1ae   : > { %282 = vrot.lane.b32.xlu1 %v1607_v0, %s1468_s17 }
 0x221   : > { %v240_v26 = vpop.xlane.xlu0 %239 }
 0x222   : > { %v234_v24 = vpop.xlane.xlu1 %233  ;;  %v246_v29 = vsub.f32 %v229_v14, %v240_v26 }
 0x223   : > { %v244_v30 = vsub.f32 %v227_v17, %v234_v24 }
 0x225   : > { %v285_v47 = vpop.permute.xlu0 %284 }
 0x226   : > { %v237_v25 = vpop.xlane.xlu1 %236 }
 0x227   : > { %v245_v27 = vsub.f32 %v228_v20, %v237_v25 }
 0x229   : > { %v248_v32 = vpack.c.bf16 %v245_v27, %v244_v30 }
 0x22a   : > { %v243_v28 = vpop.xlane.xlu1 %242 }
 0x22b   : > { %v247_v31 = vsub.f32 %v230_v22, %v243_v28  ;;  %v251_v36 = vmul.bf16 1069105081, %v248_v32 }
 0x22d   : > { %v249_v33 = vpack.c.bf16 %v247_v31, %v246_v29 }
 0x22e   : > { %v283_v34 = vpop.permute.xlu1 %282 }
 0x22f   : > { %v254_v35 = vmul.bf16 1069105081, %v249_v33  ;;  %1159 = vmatprep.subr.bf16.mxu1 %v283_v34 }
 0x230   : > { %1160 = vmatpush3.bf16.msra.mxu1 %v283_v34 }
 0x231   : > { %1318 = vpow.bf16 %v254_v35  ;;  %1161 = vmatprep.subr.bf16.mxu1 %v285_v47 }
 0x232   : > { %1320 = vpow.bf16 %v251_v36 }
 0x234   : > { %1162 = vmatpush3.bf16.msra.mxu1 %v285_v47 }
 0x23c   : > { %v1319_v37 = vpop.eup %1318 }
 0x23d   : > { %v258_v38 = vunpack.c.l.bf16 %v1319_v37  ;;  %v259_v40 = vunpack.c.h.bf16 %v1319_v37  ;;  %v1321_v41 = vpop.eup %1320 }
 0x23e   : > { %v256_v43 = vunpack.c.l.bf16 %v1321_v41  ;;  %v257_v45 = vunpack.c.h.bf16 %v1321_v41 }
 0x23f   : > { %v266_v39 = vsel %vm231_vm2, %v258_v38, 0.0  ;;  %v269_v42 = vsel %vm231_vm2, %v259_v40, 0.0 }
 0x240   : > { %267 = vadd.xlane.f32.xlu1 %v266_v39  ;;  %v260_v44 = vsel %vm231_vm2, %v256_v43, 0.0  ;;  %v263_v46 = vsel %vm231_vm2, %v257_v45, 0.0 }
 0x244   : > { %270 = vadd.xlane.f32.xlu1 %v269_v42 }
 0x248   : > { %261 = vadd.xlane.f32.xlu1 %v260_v44 }
 0x24c   : > { %264 = vadd.xlane.f32.xlu1 %v263_v46 }
 0x25d   : > { %347 = vrot.lane.b32.xlu1 %v1607_v0, %s1469_s27 }
 0x261   : > { %349 = vrot.lane.b32.xlu1 %v1610_v1, %s1469_s27  ;;  %s1396_s27 = scalar_lea.vmem %s1790_s26, 256 }
 0x262   : > { %p1397_p6 = scmp.ne.s32.totalorder %s1790_s26, %s1396_s27 }
 0x264   : > { %p1398_p12 = pnand %p1397_p6, %p1844_p11 }
 0x265   : > { %343 = vrot.lane.b32.xlu1 %v1607_v0, %s1470_s28 }
 0x266   : > { %p1399_p13 = pneg %p1398_p12 }
 0x269   : > { %345 = vrot.lane.b32.xlu1 %v1610_v1, %s1470_s28  ;;  %s1481_s28 = smov [#allocation5]  }
 0x2cd   : > { %v268_v48 = vpop.xlane.xlu1 %267 }
 0x2d1   : > { %v271_v49 = vpop.xlane.xlu1 %270 }
 0x2d2   : > { %1322 = vrcp.f32 %v271_v49 }
 0x2d5   : > { %v262_v50 = vpop.xlane.xlu1 %261 }
 0x2d6   : > { %1324 = vrcp.f32 %v262_v50 }
 0x2d7   : > { %1326 = vrcp.f32 %v268_v48 }
 0x2d9   : > { %v265_v51 = vpop.xlane.xlu1 %264 }
 0x2da   : > { %1328 = vrcp.f32 %v265_v51 }
 0x2dc   : > { %v1323_v53 = vpop.eup %1322 }
 0x2dd   : > { %v348_v52 = vpop.permute.xlu1 %347  ;;  %v279_v58 = vmul.f32 %v1323_v53, %v259_v40 }
 0x2de   : > { %1217 = vmatprep.subr.msk.bf16.mxu1 %vm159_vm0, %v348_v52  ;;  %v358_v63 = vsel %vm159_vm0, %v348_v52, 0 }
 0x2e0   : > { %v1325_v54 = vpop.eup %1324 }
 0x2e1   : > { %v350_v55 = vpop.permute.xlu1 %349  ;;  %v1327_v56 = vpop.eup %1326  ;;  %v276_v59 = vmul.f32 %v1325_v54, %v256_v43 }
 0x2e2   : > { %v278_v61 = vmul.f32 %v1327_v56, %v258_v38  ;;  %v361_v4 = vsel %vm159_vm0, %v350_v55, 0 }
 0x2e4   : > { %v1329_v57 = vpop.eup %1328  ;;  %v281_v2 = vpack.c.bf16 %v279_v58, %v278_v61 }
 0x2e5   : > { %v277_v60 = vmul.f32 %v1329_v57, %v257_v45  ;;  %v344_v3 = vpop.permute.xlu1 %343 }
 0x2e7   : > { %v280_v62 = vpack.c.bf16 %v277_v60, %v276_v59 }
 0x2e9   : > { %1163 = vmatprep.mubr.msk.bf16.mxu1 %vm231_vm2, %v280_v62  ;;  %v346_v5 = vpop.permute.xlu1 %345 }
 0x2ea   : > { %1164 = vmatmul.mubr.msk.bf16.vlgmr.msra.gmra.mrb[0].mxu1 %vm231_vm2, %v281_v2 }
 0x2eb   : > { %1168 = vmatpush3.bf16.xpose.msra.mxu1 %v358_v63  ;;  %1171 = vmatprep.mubr.msk.bf16.mxu1 %vm159_vm0, %v344_v3 }
 0x2ec   : > { %1218 = vmatprep.subr.msk.bf16.mxu1 %vm159_vm0, %v350_v55 }
 0x2f3   : > { %1170 = vmatpush3.bf16.xpose.msra.mxu1 %v361_v4 }
 0x2fa   : > { %1172 = vmatmul.mubr.msk.bf16.vlgmr.msra.gmra.mrb[4].mxu1 %vm159_vm0, %v346_v5 }
 0x3bd   : > { %v1656_v6 = vpop.f32.mrb[0].mxu1 }
 0x3be   : > { %v1658_v8 = vpop.f32.mrb[1].mxu1 }
 0x3bf   : > { %v1660_v9 = vpop.f32.mrb[2].mxu1 }
 0x3c0   : > { %v1662_v10 = vpop.f32.mrb[3].mxu1 }
 0x3cd   : > { %v1173_v11 = vpop.f32.mrb[4].mxu1 }
 0x3ce   : > { %v397_v12 = vpop.f32.mrb[5].mxu1  ;;  %v414_v13 = vmul.f32 0.35355338, %v1173_v11 }
 0x3cf   : > { %v412_v14 = vmul.f32 0.35355338, %v397_v12  ;;  %v1174_v15 = vpop.f32.mrb[6].mxu1 }
 0x3d0   : > { %v400_v16 = vpop.f32.mrb[7].mxu1  ;;  %v415_v20 = vmul.f32 0.35355338, %v1174_v15  ;;  %v418_v22 = vsel %vm140_vm1, %v414_v13, -inf }
 0x3d1   : > { %v413_v17 = vmul.f32 0.35355338, %v400_v16  ;;  %v416_v18 = vsel %vm140_vm1, %v412_v14, -inf  ;;  %v426_v24 = vsel %vm231_vm2, %v418_v22, -inf }
 0x3d2   : > { %v420_v19 = vsel %vm231_vm2, %v416_v18, -inf  ;;  %v419_v25 = vsel %vm140_vm1, %v415_v20, -inf }
 0x3d3   : > { %421 = vmax.xlane.f32.xlu0 %v420_v19  ;;  %v417_v21 = vsel %vm140_vm1, %v413_v17, -inf  ;;  %v429_v26 = vsel %vm231_vm2, %v419_v25, -inf }
 0x3d4   : > { %v423_v23 = vsel %vm231_vm2, %v417_v21, -inf }
 0x3d5   : > { %424 = vmax.xlane.f32.xlu1 %v423_v23 }
 0x3d7   : > { %427 = vmax.xlane.f32.xlu0 %v426_v24 }
 0x3db   : > { %430 = vmax.xlane.f32.xlu0 %v429_v26 }
 0x3e6   : > { %470 = vrot.lane.b32.xlu1 %v1607_v0, %s1471_s29 }
 0x460   : > { %v422_v27 = vpop.xlane.xlu0 %421 }
 0x461   : > { %v432_v30 = vsub.f32 %v416_v18, %v422_v27 }
 0x462   : > { %v425_v28 = vpop.xlane.xlu1 %424 }
 0x463   : > { %v433_v29 = vsub.f32 %v417_v21, %v425_v28 }
 0x464   : > { %v428_v31 = vpop.xlane.xlu0 %427 }
 0x465   : > { %v436_v32 = vpack.c.bf16 %v433_v29, %v432_v30  ;;  %v434_v35 = vsub.f32 %v418_v22, %v428_v31 }
 0x466   : > { %v471_v33 = vpop.permute.xlu1 %470 }
 0x467   : > { %1175 = vmatprep.subr.bf16.mxu0 %v471_v33  ;;  %v439_v37 = vmul.bf16 1069105081, %v436_v32 }
 0x468   : > { %v431_v34 = vpop.xlane.xlu0 %430  ;;  %1176 = vmatpush3.bf16.msra.mxu0 %v471_v33 }
 0x469   : > { %v435_v36 = vsub.f32 %v419_v25, %v431_v34  ;;  %1330 = vpow.bf16 %v439_v37 }
 0x46b   : > { %v437_v38 = vpack.c.bf16 %v435_v36, %v434_v35 }
 0x46d   : > { %v442_v39 = vmul.bf16 1069105081, %v437_v38 }
 0x46f   : > { %1332 = vpow.bf16 %v442_v39 }
 0x474   : > { %v1331_v40 = vpop.eup %1330 }
 0x475   : > { %v445_v46 = vunpack.c.h.bf16 %v1331_v40  ;;  %v444_v47 = vunpack.c.l.bf16 %v1331_v40 }
 0x477   : > { %v451_v48 = vsel %vm231_vm2, %v445_v46, 0.0  ;;  %v448_v49 = vsel %vm231_vm2, %v444_v47, 0.0 }
 0x47a   : > { %v1333_v41 = vpop.eup %1332 }
 0x47b   : > { %v447_v42 = vunpack.c.h.bf16 %v1333_v41  ;;  %v446_v43 = vunpack.c.l.bf16 %v1333_v41 }
 0x47d   : > { %v457_v44 = vsel %vm231_vm2, %v447_v42, 0.0  ;;  %v454_v45 = vsel %vm231_vm2, %v446_v43, 0.0 }
 0x47e   : > { %458 = vadd.xlane.f32.xlu0 %v457_v44  ;;  %455 = vadd.xlane.f32.xlu1 %v454_v45 }
 0x482   : > { %452 = vadd.xlane.f32.xlu0 %v451_v48  ;;  %449 = vadd.xlane.f32.xlu1 %v448_v49 }
 0x493   : > { %535 = vrot.lane.b32.xlu1 %v1607_v0, %s1472_s2 }
 0x497   : > { %537 = vrot.lane.b32.xlu1 %v1610_v1, %s1472_s2 }
 0x498   : > { %472 = vrot.lane.b32.xlu0 %v1610_v1, %s1471_s29  ;;  %s1400_s29 = sshll.u32 %s1481_s28, 4  ;;  %s1401_s29 = int_to_ptr.vmem [resolvable:$false] %s1400_s29 }
 0x499   : > { %s1402_s2 = scalar_lea.vmem %s1401_s29, 512  ;;  %p1403_p8 = scmp.lt.s32.totalorder %s1790_s26, %s1401_s29 }
 0x49a   : > { %p1404_p10 = scmp.lt.s32.totalorder %s1402_s2, %s1396_s27 }
 0x49b   : > { %533 = vrot.lane.b32.xlu1 %v1610_v1, %s1473_s3 }
 0x49c   : > { %531 = vrot.lane.b32.xlu0 %v1607_v0, %s1473_s3  ;;  %p1405_p0 = por %p1404_p10, %p1403_p8 }
 0x49e   : > { %p1406_p2 = pnand %p1405_p0, %p1399_p13 }
 0x50b   : > { %v459_v50 = vpop.xlane.xlu0 %458  ;;  %v456_v51 = vpop.xlane.xlu1 %455 }
 0x50c   : > { %1334 = vrcp.f32 %v459_v50 }
 0x50d   : > { %1336 = vrcp.f32 %v456_v51 }
 0x50f   : > { %v453_v52 = vpop.xlane.xlu0 %452  ;;  %v450_v53 = vpop.xlane.xlu1 %449 }
 0x510   : > { %1338 = vrcp.f32 %v453_v52 }
 0x511   : > { %1340 = vrcp.f32 %v450_v53 }
 0x513   : > { %v473_v54 = vpop.permute.xlu0 %472  ;;  %v536_v55 = vpop.permute.xlu1 %535 }
 0x514   : > { %1177 = vmatprep.subr.bf16.mxu0 %v473_v54  ;;  %v546_v3 = vsel %vm159_vm0, %v536_v55, 0 }
 0x515   : > { %1178 = vmatpush3.bf16.msra.mxu0 %v473_v54 }
 0x516   : > { %1219 = vmatprep.subr.msk.bf16.mxu0 %vm159_vm0, %v536_v55  ;;  %v1335_v56 = vpop.eup %1334 }
 0x517   : > { %v1337_v57 = vpop.eup %1336  ;;  %v467_v60 = vmul.f32 %v1335_v56, %v447_v42  ;;  %v532_v5 = vpop.permute.xlu0 %531 }
 0x518   : > { %v466_v61 = vmul.f32 %v1337_v57, %v446_v43  ;;  %v538_v11 = vpop.permute.xlu1 %537 }
 0x519   : > { %v549_v12 = vsel %vm159_vm0, %v538_v11, 0 }
 0x51a   : > { %v1339_v58 = vpop.eup %1338  ;;  %v469_v4 = vpack.c.bf16 %v467_v60, %v466_v61 }
 0x51b   : > { %v1341_v59 = vpop.eup %1340  ;;  %v465_v62 = vmul.f32 %v1339_v58, %v445_v46 }
 0x51c   : > { %v464_v63 = vmul.f32 %v1341_v59, %v444_v47  ;;  %v534_v13 = vpop.permute.xlu1 %533 }
 0x51e   : > { %v468_v2 = vpack.c.bf16 %v465_v62, %v464_v63 }
 0x520   : > { %1179 = vmatprep.mubr.msk.bf16.mxu0 %vm231_vm2, %v468_v2 }
 0x521   : > { %1180 = vmatmul.mubr.msk.bf16.vlgmr.msra.gmra.mrb[4].mxu0 %vm231_vm2, %v469_v4 }
 0x522   : > { %1184 = vmatpush3.bf16.xpose.msra.mxu0 %v546_v3  ;;  %1187 = vmatprep.mubr.msk.bf16.mxu0 %vm159_vm0, %v532_v5 }
 0x523   : > { %1220 = vmatprep.subr.msk.bf16.mxu0 %vm159_vm0, %v538_v11 }
 0x52a   : > { %1186 = vmatpush3.bf16.xpose.msra.mxu0 %v549_v12 }
 0x531   : > { %1188 = vmatmul.mubr.msk.bf16.vlgmr.msra.gmra.mrb[8].mxu0 %vm159_vm0, %v534_v13 }
 0x5f4   : > { %v1696_v14 = vpop.f32.mrb[4].mxu0 }
 0x5f5   : > { %v1698_v15 = vpop.f32.mrb[5].mxu0 }
 0x5f6   : > { %v1700_v16 = vpop.f32.mrb[6].mxu0 }
 0x5f7   : > { %v1291_v17 = vpack.i.bf16 %v1700_v16, %v1696_v14  ;;  %v1704_v18 = vpop.f32.mrb[7].mxu0 }
 0x5f8   : > { %v1286_v19 = vpack.i.bf16 %v1704_v18, %v1698_v15 }
 0x604   : > { %v1189_v20 = vpop.f32.mrb[8].mxu0 }
 0x605   : > { %v585_v21 = vpop.f32.mrb[9].mxu0  ;;  %v602_v22 = vmul.f32 0.35355338, %v1189_v20 }
 0x606   : > { %v600_v23 = vmul.f32 0.35355338, %v585_v21  ;;  %v1190_v24 = vpop.f32.mrb[10].mxu0 }
 0x607   : > { %v588_v25 = vpop.f32.mrb[11].mxu0  ;;  %v603_v29 = vmul.f32 0.35355338, %v1190_v24  ;;  %v606_v31 = vsel %vm140_vm1, %v602_v22, -inf }
 0x608   : > { %v601_v26 = vmul.f32 0.35355338, %v588_v25  ;;  %v604_v27 = vsel %vm140_vm1, %v600_v23, -inf  ;;  %v614_v33 = vsel %vm231_vm2, %v606_v31, -inf }
 0x609   : > { %v608_v28 = vsel %vm231_vm2, %v604_v27, -inf  ;;  %v607_v34 = vsel %vm140_vm1, %v603_v29, -inf }
 0x60a   : > { %609 = vmax.xlane.f32.xlu0 %v608_v28  ;;  %v605_v30 = vsel %vm140_vm1, %v601_v26, -inf  ;;  %v617_v35 = vsel %vm231_vm2, %v607_v34, -inf }
 0x60b   : > { %v611_v32 = vsel %vm231_vm2, %v605_v30, -inf }
 0x60c   : > { %612 = vmax.xlane.f32.xlu1 %v611_v32 }
 0x60e   : > { %615 = vmax.xlane.f32.xlu0 %v614_v33 }
 0x612   : > { %618 = vmax.xlane.f32.xlu0 %v617_v35 }
 0x61d   : > { %658 = vrot.lane.b32.xlu1 %v1607_v0, %s1474_s4 }
 0x697   : > { %v610_v36 = vpop.xlane.xlu0 %609 }
 0x698   : > { %v620_v39 = vsub.f32 %v604_v27, %v610_v36 }
 0x699   : > { %v613_v37 = vpop.xlane.xlu1 %612 }
 0x69a   : > { %v621_v38 = vsub.f32 %v605_v30, %v613_v37 }
 0x69b   : > { %v616_v40 = vpop.xlane.xlu0 %615 }
 0x69c   : > { %v624_v41 = vpack.c.bf16 %v621_v38, %v620_v39  ;;  %v622_v44 = vsub.f32 %v606_v31, %v616_v40 }
 0x69d   : > { %v659_v42 = vpop.permute.xlu1 %658 }
 0x69e   : > { %1191 = vmatprep.subr.bf16.mxu1 %v659_v42  ;;  %v627_v46 = vmul.bf16 1069105081, %v624_v41 }
 0x69f   : > { %v619_v43 = vpop.xlane.xlu0 %618  ;;  %1192 = vmatpush3.bf16.msra.mxu1 %v659_v42 }
 0x6a0   : > { %v623_v45 = vsub.f32 %v607_v34, %v619_v43  ;;  %1342 = vpow.bf16 %v627_v46 }
 0x6a2   : > { %v625_v47 = vpack.c.bf16 %v623_v45, %v622_v44 }
 0x6a4   : > { %v630_v48 = vmul.bf16 1069105081, %v625_v47 }
 0x6a6   : > { %1344 = vpow.bf16 %v630_v48 }
 0x6ab   : > { %v1343_v49 = vpop.eup %1342 }
 0x6ac   : > { %v633_v55 = vunpack.c.h.bf16 %v1343_v49  ;;  %v632_v56 = vunpack.c.l.bf16 %v1343_v49 }
 0x6ae   : > { %v639_v57 = vsel %vm231_vm2, %v633_v55, 0.0  ;;  %v636_v58 = vsel %vm231_vm2, %v632_v56, 0.0 }
 0x6b1   : > { %v1345_v50 = vpop.eup %1344 }
 0x6b2   : > { %v635_v51 = vunpack.c.h.bf16 %v1345_v50  ;;  %v634_v52 = vunpack.c.l.bf16 %v1345_v50 }
 0x6b4   : > { %v645_v53 = vsel %vm231_vm2, %v635_v51, 0.0  ;;  %v642_v54 = vsel %vm231_vm2, %v634_v52, 0.0 }
 0x6b5   : > { %646 = vadd.xlane.f32.xlu0 %v645_v53  ;;  %643 = vadd.xlane.f32.xlu1 %v642_v54 }
 0x6b9   : > { %640 = vadd.xlane.f32.xlu0 %v639_v57  ;;  %637 = vadd.xlane.f32.xlu1 %v636_v58 }
 0x6ca   : > { %723 = vrot.lane.b32.xlu1 %v1607_v0, %s1475_s5 }
 0x6ce   : > { %725 = vrot.lane.b32.xlu1 %v1610_v1, %s1475_s5 }
 0x6cf   : > { %660 = vrot.lane.b32.xlu0 %v1610_v1, %s1474_s4 }
 0x6d2   : > { %721 = vrot.lane.b32.xlu1 %v1610_v1, %s1476_s11 }
 0x6d3   : > { %719 = vrot.lane.b32.xlu0 %v1607_v0, %s1476_s11 }
 0x742   : > { %v647_v59 = vpop.xlane.xlu0 %646  ;;  %v644_v60 = vpop.xlane.xlu1 %643 }
 0x743   : > { %1346 = vrcp.f32 %v647_v59 }
 0x744   : > { %1348 = vrcp.f32 %v644_v60 }
 0x746   : > { %v641_v61 = vpop.xlane.xlu0 %640  ;;  %v638_v62 = vpop.xlane.xlu1 %637 }
 0x747   : > { %1350 = vrcp.f32 %v641_v61 }
 0x748   : > { %1352 = vrcp.f32 %v638_v62 }
 0x74a   : > { %v661_v63 = vpop.permute.xlu0 %660  ;;  %v724_v2 = vpop.permute.xlu1 %723 }
 0x74b   : > { %1193 = vmatprep.subr.bf16.mxu1 %v661_v63  ;;  %v734_v23 = vsel %vm159_vm0, %v724_v2, 0 }
 0x74c   : > { %1194 = vmatpush3.bf16.msra.mxu1 %v661_v63 }
 0x74d   : > { %1221 = vmatprep.subr.msk.bf16.mxu1 %vm159_vm0, %v724_v2  ;;  %v1347_v3 = vpop.eup %1346 }
 0x74e   : > { %v1349_v4 = vpop.eup %1348  ;;  %v655_v12 = vmul.f32 %v1347_v3, %v635_v51  ;;  %v720_v25 = vpop.permute.xlu0 %719 }
 0x74f   : > { %v654_v13 = vmul.f32 %v1349_v4, %v634_v52  ;;  %v726_v26 = vpop.permute.xlu1 %725 }
 0x750   : > { %v737_v27 = vsel %vm159_vm0, %v726_v26, 0 }
 0x751   : > { %v1351_v5 = vpop.eup %1350  ;;  %v657_v24 = vpack.c.bf16 %v655_v12, %v654_v13 }
 0x752   : > { %v1353_v11 = vpop.eup %1352  ;;  %v653_v20 = vmul.f32 %v1351_v5, %v633_v55 }
 0x753   : > { %v652_v21 = vmul.f32 %v1353_v11, %v632_v56  ;;  %v722_v28 = vpop.permute.xlu1 %721 }
 0x755   : > { %v656_v22 = vpack.c.bf16 %v653_v20, %v652_v21 }
 0x757   : > { %1195 = vmatprep.mubr.msk.bf16.mxu1 %vm231_vm2, %v656_v22 }
 0x758   : > { %1196 = vmatmul.mubr.msk.bf16.vlgmr.msra.gmra.mrb[8].mxu1 %vm231_vm2, %v657_v24 }
 0x759   : > { %1200 = vmatpush3.bf16.xpose.msra.mxu1 %v734_v23  ;;  %1203 = vmatprep.mubr.msk.bf16.mxu1 %vm159_vm0, %v720_v25 }
 0x75a   : > { %1222 = vmatprep.subr.msk.bf16.mxu1 %vm159_vm0, %v726_v26 }
 0x761   : > { %1202 = vmatpush3.bf16.xpose.msra.mxu1 %v737_v27 }
 0x768   : > { %1204 = vmatmul.mubr.msk.bf16.vlgmr.msra.gmra.mrb[12].mxu1 %vm159_vm0, %v722_v28 }
 0x82b   : > { %v1197_v29 = vpop.f32.mrb[8].mxu1 }
 0x82c   : > { %v704_v30 = vpop.f32.mrb[9].mxu1 }
 0x82d   : > { %v1198_v31 = vpop.f32.mrb[10].mxu1 }
 0x82e   : > { %v1301_v32 = vpack.i.bf16 %v1198_v31, %v1197_v29  ;;  %v707_v33 = vpop.f32.mrb[11].mxu1 }
 0x82f   : > { %v1296_v34 = vpack.i.bf16 %v707_v33, %v704_v30 }
 0x83b   : > { %v1205_v35 = vpop.f32.mrb[12].mxu1 }
 0x83c   : > { %v773_v36 = vpop.f32.mrb[13].mxu1  ;;  %v790_v37 = vmul.f32 0.35355338, %v1205_v35 }
 0x83d   : > { %v788_v38 = vmul.f32 0.35355338, %v773_v36  ;;  %v1206_v39 = vpop.f32.mrb[14].mxu1 }
 0x83e   : > { %v776_v40 = vpop.f32.mrb[15].mxu1  ;;  %v791_v44 = vmul.f32 0.35355338, %v1206_v39  ;;  %v794_v46 = vsel %vm140_vm1, %v790_v37, -inf }
 0x83f   : > { %v789_v41 = vmul.f32 0.35355338, %v776_v40  ;;  %v792_v42 = vsel %vm140_vm1, %v788_v38, -inf  ;;  %v802_v48 = vsel %vm231_vm2, %v794_v46, -inf }
 0x840   : > { %v796_v43 = vsel %vm231_vm2, %v792_v42, -inf  ;;  %v795_v49 = vsel %vm140_vm1, %v791_v44, -inf }
 0x841   : > { %797 = vmax.xlane.f32.xlu0 %v796_v43  ;;  %v793_v45 = vsel %vm140_vm1, %v789_v41, -inf  ;;  %v805_v50 = vsel %vm231_vm2, %v795_v49, -inf }
 0x842   : > { %v799_v47 = vsel %vm231_vm2, %v793_v45, -inf }
 0x843   : > { %800 = vmax.xlane.f32.xlu1 %v799_v47 }
 0x845   : > { %803 = vmax.xlane.f32.xlu0 %v802_v48 }
 0x849   : > { %806 = vmax.xlane.f32.xlu0 %v805_v50 }
 0x8ce   : > { %v798_v51 = vpop.xlane.xlu0 %797 }
 0x8cf   : > { %v808_v54 = vsub.f32 %v792_v42, %v798_v51 }
 0x8d0   : > { %v801_v52 = vpop.xlane.xlu1 %800 }
 0x8d1   : > { %v809_v53 = vsub.f32 %v793_v45, %v801_v52 }
 0x8d2   : > { %v804_v55 = vpop.xlane.xlu0 %803 }
 0x8d3   : > { %v812_v56 = vpack.c.bf16 %v809_v53, %v808_v54  ;;  %v810_v58 = vsub.f32 %v794_v46, %v804_v55 }
 0x8d5   : > { %v815_v60 = vmul.bf16 1069105081, %v812_v56 }
 0x8d6   : > { %v807_v57 = vpop.xlane.xlu0 %806 }
 0x8d7   : > { %v811_v59 = vsub.f32 %v795_v49, %v807_v57  ;;  %1354 = vpow.bf16 %v815_v60 }
 0x8d9   : > { %v813_v61 = vpack.c.bf16 %v811_v59, %v810_v58 }
 0x8db   : > { %v818_v62 = vmul.bf16 1069105081, %v813_v61 }
 0x8dd   : > { %1356 = vpow.bf16 %v818_v62 }
 0x8e2   : > { %v1355_v63 = vpop.eup %1354 }
 0x8e3   : > { %v821_v11 = vunpack.c.h.bf16 %v1355_v63  ;;  %v820_v12 = vunpack.c.l.bf16 %v1355_v63 }
 0x8e5   : > { %v827_v13 = vsel %vm231_vm2, %v821_v11, 0.0  ;;  %v824_v20 = vsel %vm231_vm2, %v820_v12, 0.0 }
 0x8e8   : > { %v1357_v7 = vpop.eup %1356 }
 0x8e9   : > { %v823_v2 = vunpack.c.h.bf16 %v1357_v7  ;;  %v822_v3 = vunpack.c.l.bf16 %v1357_v7 }
 0x8eb   : > { %v833_v4 = vsel %vm231_vm2, %v823_v2, 0.0  ;;  %v830_v5 = vsel %vm231_vm2, %v822_v3, 0.0 }
 0x8ec   : > { %834 = vadd.xlane.f32.xlu0 %v833_v4  ;;  %831 = vadd.xlane.f32.xlu1 %v830_v5 }
 0x8f0   : > { %828 = vadd.xlane.f32.xlu0 %v827_v13  ;;  %825 = vadd.xlane.f32.xlu1 %v824_v20 }
 0x901   : > { %846 = vrot.lane.b32.xlu1 %v1607_v0, %s1477_s13 }
 0x905   : > { %1287 = vrot.lane.b32.xlu1 %v1286_v19, %s1478_s14 }
 0x906   : > { %848 = vrot.lane.b32.xlu0 %v1610_v1, %s1477_s13 }
 0x909   : > { %1292 = vrot.lane.b32.xlu1 %v1291_v17, %s1478_s14 }
 0x90a   : > { %1297 = vrot.lane.b32.xlu0 %v1296_v34, %s1479_s16 }
 0x90d   : > { %1302 = vrot.lane.b32.xlu1 %v1301_v32, %s1479_s16 }
 0x979   : > { %v835_v21 = vpop.xlane.xlu0 %834  ;;  %v832_v22 = vpop.xlane.xlu1 %831 }
 0x97a   : > { %1358 = vrcp.f32 %v835_v21 }
 0x97b   : > { %1360 = vrcp.f32 %v832_v22 }
 0x97d   : > { %v829_v23 = vpop.xlane.xlu0 %828  ;;  %v826_v0 = vpop.xlane.xlu1 %825 }
 0x97e   : > { %1362 = vrcp.f32 %v829_v23 }
 0x97f   : > { %1364 = vrcp.f32 %v826_v0 }
 0x981   : > { %v847_v24 = vpop.permute.xlu1 %846  ;;  %v849_v15 = vpop.permute.xlu0 %848 }
 0x982   : > { %1207 = vmatprep.subr.bf16.mxu0 %v847_v24 }
 0x983   : > { %1208 = vmatpush3.bf16.msra.mxu0 %v847_v24 }
 0x984   : > { %1209 = vmatprep.subr.bf16.mxu0 %v849_v15  ;;  %v1359_v1 = vpop.eup %1358 }
 0x985   : > { %v1361_v18 = vpop.eup %1360  ;;  %v843_v17 = vmul.f32 %v1359_v1, %v823_v2  ;;  %v1288_v35 = vpop.permute.xlu1 %1287 }
 0x986   : > { %v842_v19 = vmul.f32 %v1361_v18, %v822_v3  ;;  %v1298_v37 = vpop.permute.xlu0 %1297  ;;  %v1290_v38 = vunpack.i.h.bf16 %v1288_v35  ;;  %v1289_v41 = vunpack.i.l.bf16 %v1288_v35 }
 0x987   : > { %1210 = vmatpush3.bf16.msra.mxu0 %v849_v15  ;;  %v1300_v40 = vunpack.i.h.bf16 %v1298_v37  ;;  %v1299_v47 = vunpack.i.l.bf16 %v1298_v37 }
 0x988   : > { %v1363_v14 = vpop.eup %1362  ;;  %v845_v28 = vpack.c.bf16 %v843_v17, %v842_v19  ;;  %v956_v42 = vsel %vm159_vm0, %v1662_v10, %v1290_v38  ;;  %v955_v48 = vsel %vm159_vm0, %v1658_v8, %v1289_v41 }
 0x989   : > { %v1365_v16 = vpop.eup %1364  ;;  %v841_v25 = vmul.f32 %v1363_v14, %v821_v11  ;;  %v1293_v36 = vpop.permute.xlu1 %1292  ;;  %v961_v50 = vsel %vm959_vm3, %v956_v42, %v1300_v40 }
 0x98a   : > { %v840_v26 = vmul.f32 %v1365_v16, %v820_v12  ;;  %v1295_v43 = vunpack.i.h.bf16 %v1293_v36  ;;  %v1294_v44 = vunpack.i.l.bf16 %v1293_v36 }
 0x98c   : > { %v844_v27 = vpack.c.bf16 %v841_v25, %v840_v26  ;;  %v958_v51 = vsel %vm159_vm0, %v1660_v9, %v1295_v43  ;;  %v957_v10 = vsel %vm159_vm0, %v1656_v6, %v1294_v44  ;;  %v960_v6 = vsel %vm959_vm3, %v955_v48, %v1299_v47 }
 0x98d   : > { %v1303_v39 = vpop.permute.xlu1 %1302 }
 0x98e   : > { %1211 = vmatprep.mubr.msk.bf16.mxu0 %vm231_vm2, %v844_v27  ;;  %v1305_v45 = vunpack.i.h.bf16 %v1303_v39  ;;  %v1304_v46 = vunpack.i.l.bf16 %v1303_v39 }
 0x98f   : > { %1212 = vmatmul.mubr.msk.bf16.vlgmr.msra.gmra.mrb[12].mxu0 %vm231_vm2, %v845_v28 }
 0x990   : > { %v962_v55 = vsel %vm959_vm3, %v957_v10, %v1304_v46  ;;  %v963_v56 = vsel %vm959_vm3, %v958_v51, %v1305_v45 }
 0xa62   : > { %v1213_v29 = vpop.f32.mrb[12].mxu0 }
 0xa63   : > { %v892_v30 = vpop.f32.mrb[13].mxu0 }
 0xa64   : > { %v1214_v31 = vpop.f32.mrb[14].mxu0 }
 0xa65   : > { %v1311_v32 = vpack.i.bf16 %v1214_v31, %v1213_v29  ;;  %v895_v33 = vpop.f32.mrb[15].mxu0 }
 0xa66   : > { %v1306_v34 = vpack.i.bf16 %v895_v33, %v892_v30 }
 0xa67   : > { %1312 = vrot.lane.b32.xlu1 %v1311_v32, %s1480_s20 }
 0xa68   : > { %1307 = vrot.lane.b32.xlu0 %v1306_v34, %s1480_s20 }
 0xad9   : > { %v1313_v49 = vpop.permute.xlu1 %1312 }
 0xada   : > { %v1315_v52 = vunpack.i.h.bf16 %v1313_v49  ;;  %v1314_v53 = vunpack.i.l.bf16 %v1313_v49  ;;  %v1308_v54 = vpop.permute.xlu0 %1307 }
 0xadb   : > { %v1310_v57 = vunpack.i.h.bf16 %v1308_v54  ;;  %v1309_v8 = vunpack.i.l.bf16 %v1308_v54 }
 0xadc   : > { %v967_v9 = vsel %vm964_vm4, %v962_v55, %v1314_v53  ;;  %v968_v58 = vsel %vm964_vm4, %v963_v56, %v1315_v52 }
 0xadd   : > { %v1116_v59 = vpack.c.bf16 %v967_v9, %v967_v9  ;;  %v1117_v60 = vpack.c.bf16 %v968_v58, %v968_v58  ;;  %v965_v61 = vsel %vm964_vm4, %v960_v6, %v1309_v8  ;;  %v966_v62 = vsel %vm964_vm4, %v961_v50, %v1310_v57 }
 0xade   : > { %v1114_v63 = vpack.c.bf16 %v965_v61, %v965_v61  ;;  %v1115_v7 = vpack.c.bf16 %v966_v62, %v966_v62 }
 0xadf   : > { %988 = vst.msk [vmem:[%s134_s22 + $0x8] sm:$0xf] %vm985_vm5, %v1116_v59  ;;  %989 = vst.msk [vmem:[%s134_s22 + $0xc] sm:$0xf] %vm985_vm5, %v1117_v60 }
 0xae0   : > { %986 = vst.msk [vmem:[%s134_s22] sm:$0xf] %vm985_vm5, %v1114_v63  ;;  %987 = vst.msk [vmem:[%s134_s22 + $0x4] sm:$0xf] %vm985_vm5, %v1115_v7 }
 0xae1   : > { %1409 = shalt.err (!%p1406_p2)
}
 0xae2   : > { %s1410_s3 = scalar_lea.hbm %s1788_s24, 256  ;;  %s1414_s11 = scalar_lea.hbm %s1837_s1, 512 }
 0xae3   : > { %p1411_p4 = scmp.ne.s32.totalorder %s1788_s24, %s1410_s3  ;;  %p1415_p9 = scmp.lt.u32.totalorder %s1788_s24, %s1837_s1 }
 0xae4   : > { %p1416_p1 = scmp.lt.u32.totalorder %s1414_s11, %s1410_s3  ;;  %p1418_p6 = scmp.lt.u32.totalorder %s1410_s3, %s1788_s24 }
 0xae5   : > { %p1412_p5 = pnand %p1411_p4, %p1844_p11 }
 0xae6   : > { %p1417_p3 = por %p1416_p1, %p1415_p9 }
 0xae7   : > { %p1413_p7 = pneg %p1412_p5 }
 0xae8   : > { %p1419_p12 = por %p1418_p6, %p1417_p3 }
 0xaea   : > { %p1420_p13 = pnand %p1419_p12, %p1413_p7 }
 0xaec   : > { %1423 = shalt.err (!%p1420_p13)
}
 0xaed   : > { %s1482_s16 = smov 4  }
 0xaee   : > { %1225 = dma.vmem_to_hbm [thread:$0]  (%p1844_p11), %s1790_s26, 256, %s1788_s24, %s991_s25, %s1468_s17, %s1468_s17, %s1482_s16  }
 0xaef PF: > { %s1019_s20 = sand.u32 1, %s1450_s6   ;;  %p1845_p8 = scmp.ne.s32.totalorder %s1842_s19, 0 }
 0xaf0   : > { %p1846_p10 = scmp.ge.s32.totalorder %s1462_s9, 2  ;;  %s1020_s21 = scalar_lea.sflag [#allocation4], %s1019_s20 }
 0xaf2   : > { %p1232_p0 = pnand %p1846_p10, %p1845_p8 }
 0xaf4   : > { %1445 = dma.done.wait (!%p1232_p0), %s1020_s21, 256  }
 0xaf5   : > { %1447 = vsyncadd (!%p1232_p0), %s1020_s21, 4294967040  ;;  %p14_p2 = scmp.ge.s32.totalorder %s1518_s12, 4   ;;  %s1847_s6 = smov %s1454_s7 }
 0xaf6   : > { %s1848_s7 = smov %s1458_s8  ;;  %s1849_s8 = smov %s1530_s15 }
 0xaf7   : > { %s1850_s9 = smov %s1518_s12  ;;  %16 = sbr.rel (!%p14_p2) target bundleno = 5 (0x5), region = 69 }
 0xafe   :  { %1025 = vsyncpa [#allocation3], 1 }
 0xaff   :  { %1027 = vsyncpa [#allocation3 + $0x1], 1 }
 0xb00   :  { %1028 = vsyncpa [#allocation4], 1 }
 0xb01   :  { %1030 = vsyncpa [#allocation4 + $0x1], 1 }

// kernel: visual_transformer_forward.17
= control target key start
LH: loop header
LB: loop body
LE: loop exit
PB: predicated region body
PF: predicated region fallthrough
CT: control target
= control target key end

     0   :  { %10 = vsyncpa [#allocation3], 0  ;;  %s491_s0 = inlined_call_operand.hbm [shape: f32[2,32], index: 0, kind: input, shape index: {}]   ;;  %s492_s1 = inlined_call_operand.hbm [shape: f32[1,32], index: 1, kind: input, shape index: {}]   ;;  %s493_s2 = inlined_call_operand.hbm [shape: f32[1,32], index: 2, kind: input, shape index: {}]   ;;  %s494_s3 = inlined_call_operand.hbm [shape: bf16[32,16], index: 3, kind: input, shape index: {}]   ;;  %s495_s4 = inlined_call_operand.hbm [shape: f32[1,16], index: 4, kind: input, shape index: {}]   ;;  %s496_s5 = inlined_call_operand.hbm [shape: f32[2,16], index: 5, kind: output, shape index: {}]  }
   0x1   :  { %11 = vsyncpa [#allocation6], 0 }
   0x2   :  { %12 = vsyncpa [#allocation9], 0 }
   0x3   :  { %13 = vsyncpa [#allocation4], 0  ;;  %s372_s18 = smov [#allocation5]   ;;  %s373_s20 = smov [#allocation8]  }
   0x4   :  { %s30_s19 = sshll.u32 %s372_s18, 4  ;;  %s49_s21 = sshll.u32 %s373_s20, 4  ;;  %s31_s19 = int_to_ptr.vmem [resolvable:$true] %s30_s19  ;;  %s412_s21 = int_to_ptr.vmem [resolvable:$true] %s49_s21 }
   0x5   :  { %s232_s24 = scalar_lea.hbm %s492_s1, 16 }
   0x6   :  { %p233_p0 = scmp.ne.s32.totalorder %s492_s1, %s232_s24  ;;  %p236_p1 = scmp.lt.u32.totalorder %s232_s24, %s492_s1 }
   0x8   :  { %p238_p2 = pnand %p236_p1, %p233_p0 }
   0xa   :  { %241 = shalt.err (!%p238_p2)
}
   0xb   :  { %s242_s29 = scalar_lea.vmem %s31_s19, 16  ;;  %s246_s30 = scalar_lea.vmem %s31_s19, 32 }
   0xc   :  { %p243_p3 = scmp.ne.s32.totalorder %s31_s19, %s242_s29  ;;  %p247_p4 = scmp.lt.s32.totalorder %s31_s19, %s31_s19 }
   0xd   :  { %p248_p5 = scmp.lt.s32.totalorder %s246_s30, %s242_s29 }
   0xf   :  { %p249_p6 = por %p248_p5, %p247_p4 }
  0x11   :  { %p250_p7 = pnand %p249_p6, %p243_p3 }
  0x13   :  { %253 = shalt.err (!%p250_p7)
}
  0x14   :  { %33 = dma.hbm_to_vmem [thread:$0]  %s492_s1, 16, %s31_s19, [#allocation6]  }
  0x15   :  { %s254_s10 = scalar_lea.hbm %s494_s3, 256 }
  0x16   :  { %p255_p8 = scmp.ne.s32.totalorder %s494_s3, %s254_s10  ;;  %p258_p9 = scmp.lt.u32.totalorder %s254_s10, %s494_s3 }
  0x18   :  { %p260_p10 = pnand %p258_p9, %p255_p8 }
  0x1a   :  { %263 = shalt.err (!%p260_p10)
}
  0x1b   :  { %s264_s15 = scalar_lea.vmem %s412_s21, 256  ;;  %p269_p12 = scmp.lt.s32.totalorder %s412_s21, %s412_s21 }
  0x1c   :  { %p265_p11 = scmp.ne.s32.totalorder %s412_s21, %s264_s15  ;;  %p270_p13 = scmp.lt.s32.totalorder %s264_s15, %s264_s15 }
  0x1e   :  { %p271_p0 = por %p270_p13, %p269_p12 }
  0x20   :  { %p272_p1 = pnand %p271_p0, %p265_p11 }
  0x22   :  { %275 = shalt.err (!%p272_p1)
}
  0x23   :  { %s374_s1 = smov 64   ;;  %s375_s16 = smov 4  }
  0x24   :  { %55 = dma.hbm_to_vmem [thread:$0]  %s494_s3, 256, %s412_s21, [#allocation9], %s374_s1, %s374_s1, %s375_s16  }
  0x25   :  { %s376_s19 = smov [#allocation2]   ;;  %s377_s22 = smov [#allocation7]  }
  0x26   :  { %s20_s20 = sshll.u32 %s376_s19, 4  ;;  %s40_s23 = sshll.u32 %s377_s22, 4  ;;  %s21_s20 = int_to_ptr.vmem [resolvable:$true] %s20_s20  ;;  %s41_s23 = int_to_ptr.vmem [resolvable:$true] %s40_s23 }
  0x27   :  { %s276_s26 = scalar_lea.hbm %s491_s0, 32 }
  0x28   :  { %p277_p2 = scmp.ne.s32.totalorder %s491_s0, %s276_s26  ;;  %p280_p3 = scmp.lt.u32.totalorder %s276_s26, %s491_s0 }
  0x2a   :  { %p282_p4 = pnand %p280_p3, %p277_p2 }
  0x2c   :  { %285 = shalt.err (!%p282_p4)
}
  0x2d   :  { %s286_s3 = scalar_lea.vmem %s21_s20, 32  ;;  %p291_p6 = scmp.lt.s32.totalorder %s21_s20, %s21_s20 }
  0x2e   :  { %p287_p5 = scmp.ne.s32.totalorder %s21_s20, %s286_s3  ;;  %p292_p7 = scmp.lt.s32.totalorder %s286_s3, %s286_s3 }
  0x30   :  { %p293_p8 = por %p292_p7, %p291_p6 }
  0x32   :  { %p294_p9 = pnand %p293_p8, %p287_p5 }
  0x34   :  { %297 = shalt.err (!%p294_p9)
}
  0x35   :  { %23 = dma.hbm_to_vmem [thread:$0]  %s491_s0, 32, %s21_s20, [#allocation3]  }
  0x36   :  { %s298_s9 = scalar_lea.hbm %s493_s2, 16 }
  0x37   :  { %p299_p10 = scmp.ne.s32.totalorder %s493_s2, %s298_s9  ;;  %p302_p11 = scmp.lt.u32.totalorder %s298_s9, %s493_s2 }
  0x39   :  { %p304_p12 = pnand %p302_p11, %p299_p10 }
  0x3b   :  { %307 = shalt.err (!%p304_p12)
}
  0x3c   :  { %s308_s14 = scalar_lea.vmem %s41_s23, 16  ;;  %s312_s15 = scalar_lea.vmem %s41_s23, 32 }
  0x3d   :  { %p309_p13 = scmp.ne.s32.totalorder %s41_s23, %s308_s14  ;;  %p313_p0 = scmp.lt.s32.totalorder %s41_s23, %s41_s23 }
  0x3e   :  { %p314_p1 = scmp.lt.s32.totalorder %s312_s15, %s308_s14 }
  0x40   :  { %p315_p2 = por %p314_p1, %p313_p0 }
  0x42   :  { %p316_p3 = pnand %p315_p2, %p309_p13 }
  0x44   :  { %319 = shalt.err (!%p316_p3)
}
  0x45   :  { %43 = dma.hbm_to_vmem [thread:$0]  %s493_s2, 16, %s41_s23, [#allocation6]  }
  0x46   :  { %s378_s16 = smov [#allocation10]   ;;  %s320_s20 = scalar_lea.hbm %s495_s4, 16 }
  0x47   :  { %s62_s17 = sshll.u32 %s378_s16, 4  ;;  %p321_p4 = scmp.ne.s32.totalorder %s495_s4, %s320_s20  ;;  %s63_s17 = int_to_ptr.vmem [resolvable:$true] %s62_s17 }
  0x48   :  { %p324_p5 = scmp.lt.u32.totalorder %s320_s20, %s495_s4 }
  0x4a   :  { %p326_p6 = pnand %p324_p5, %p321_p4 }
  0x4c   :  { %329 = shalt.err (!%p326_p6)
}
  0x4d   :  { %s330_s27 = scalar_lea.vmem %s63_s17, 16  ;;  %s334_s2 = scalar_lea.vmem %s63_s17, 32 }
  0x4e   :  { %p331_p7 = scmp.ne.s32.totalorder %s63_s17, %s330_s27  ;;  %p335_p8 = scmp.lt.s32.totalorder %s63_s17, %s63_s17 }
  0x4f   :  { %p336_p9 = scmp.lt.s32.totalorder %s334_s2, %s330_s27 }
  0x51   :  { %p337_p10 = por %p336_p9, %p335_p8 }
  0x53   :  { %p338_p11 = pnand %p337_p10, %p331_p7 }
  0x55   :  { %341 = shalt.err (!%p338_p11)
}
  0x56   :  { %65 = dma.hbm_to_vmem [thread:$0]  %s495_s4, 16, %s63_s17, [#allocation9]  }
  0x57   :  { %364 = dma.done.wait [#allocation3], 32  }
  0x58   :  { %365 = vsyncadd [#allocation3], 4294967264 }
  0x59   :  { %366 = dma.done.wait [#allocation6], 32  }
  0x5a   :  { %367 = vsyncadd [#allocation6], 4294967264 }
  0x5b   :  { %368 = dma.done.wait [#allocation9], 272  }
  0x5c   :  { %369 = vsyncadd [#allocation9], 4294967024  ;;  %vm85_vm0 = vcmask 254976   ;;  %v82_v0 = vld [vmem:[#allocation2] sm:$0x3]  ;;  %v228_v7 = vld [vmem:[#allocation8] sm:$0xff]  }
  0x5d   :  { %v86_v1 = vsel %vm85_vm0, %v82_v0, 0.0  ;;  %v379_v8 = vmov 0.0   ;;  %v229_v9 = vld [vmem:[#allocation8 + $0x8] sm:$0xff]   ;;  %vm380_vm1 = vmmov 0   ;;  %v201_v14 = vld [vmem:[#allocation5] ss:$0 sm:$0xff] }
  0x5e   :  { %87 = vadd.xlane.f32.xlu0 %v86_v1  ;;  %210 = vmatprep.subr.bf16.mxu0 %v379_v8  ;;  %v202_v16 = vld [vmem:[#allocation7] ss:$0 sm:$0xff]  ;;  %vm138_vm2 = vcmask 261120   ;;  %v203_v20 = vld [vmem:[#allocation10] ss:$0 sm:$0xff]  ;;  %s381_s4 = smov [#allocation11]  }
  0x5f   :  { %211 = vmatpush3.bf16.msra.mxu0 %v228_v7  ;;  %214 = vmatprep.mubr.msk.bf16.mxu0 %vm380_vm1, %v379_v8  ;;  %s190_s29 = sshll.u32 %s381_s4, 4  ;;  %vm182_vm3 = vcmask 123904   ;;  %s191_s29 = int_to_ptr.vmem [resolvable:$true] %s190_s29 }
  0x60   :  { %212 = vmatprep.subr.bf16.mxu0 %v379_v8  ;;  %s342_s30 = scalar_lea.vmem %s191_s29, 32  ;;  %p347_p13 = scmp.lt.s32.totalorder %s191_s29, %s191_s29 }
  0x61   :  { %p343_p12 = scmp.ne.s32.totalorder %s191_s29, %s342_s30  ;;  %p348_p0 = scmp.lt.s32.totalorder %s342_s30, %s342_s30 }
  0x63   :  { %213 = vmatpush3.bf16.msra.mxu0 %v229_v9  ;;  %p349_p1 = por %p348_p0, %p347_p13 }
  0x65   :  { %p350_p2 = pnand %p349_p1, %p343_p12 }
  0xeb   :  { %v88_v2 = vpop.xlane.xlu0 %87 }
  0xec   :  { %v90_v3 = vmul.f32 0.03125, %v88_v2 }
  0xee   :  { %v91_v4 = vsub.f32 %v82_v0, %v90_v3 }
  0xf0   :  { %v92_v5 = vmul.f32 %v91_v4, %v91_v4 }
  0xf2   :  { %v93_v6 = vsel %vm85_vm0, %v92_v5, 0.0 }
  0xf3   :  { %94 = vadd.xlane.f32.xlu0 %v93_v6 }
 0x180   :  { %v95_v10 = vpop.xlane.xlu0 %94 }
 0x181   :  { %v96_v11 = vmul.f32 0.03125, %v95_v10 }
 0x183   :  { %v97_v12 = vadd.f32 1e-05, %v96_v11 }
 0x185   :  { %230 = vrsqrt.f32 %v97_v12 }
 0x18f   :  { %v231_v13 = vpop.eup %230 }
 0x190   :  { %v99_v15 = vmul.f32 %v231_v13, %v91_v4 }
 0x192   :  { %v106_v17 = vmul.f32 %v201_v14, %v99_v15 }
 0x194   :  { %v113_v18 = vadd.f32 %v202_v16, %v106_v17 }
 0x196   :  { %v118_v19 = vpack.c.bf16 %v113_v18, %v113_v18 }
 0x198   :  { %215 = vmatmul.mubr.msk.bf16.vlgmr.msra.gmra.mrb[0].mxu0 %vm138_vm2, %v118_v19 }
 0x26b   :  { %v176_v21 = vpop.f32.mrb[0].mxu0 }
 0x26c   :  { %v177_v22 = vadd.f32 %v203_v20, %v176_v21  ;;  %v216_v23 = vpop.f32.mrb[1].mxu0 }
 0x26d   :  { %v179_v24 = vpop.f32.mrb[2].mxu0 }
 0x26e   :  { %v217_v25 = vpop.f32.mrb[3].mxu0  ;;  %183 = vst.msk [vmem:[#allocation11] sm:$0x3] %vm182_vm3, %v177_v22 }
 0x26f   :  { %353 = shalt.err (!%p350_p2)
}
 0x270   :  { %s354_s6 = scalar_lea.hbm %s496_s5, 32 }
 0x271   :  { %p355_p3 = scmp.ne.s32.totalorder %s496_s5, %s354_s6  ;;  %p358_p4 = scmp.lt.u32.totalorder %s354_s6, %s496_s5 }
 0x273   :  { %p360_p5 = pnand %p358_p4, %p355_p3 }
 0x275   :  { %363 = shalt.err (!%p360_p5)
}
 0x276   :  { %193 = dma.vmem_to_hbm [thread:$0]  %s191_s29, 32, %s496_s5, [#allocation4]  }
 0x277   :  { %370 = dma.done.wait [#allocation4], 32  }
 0x278   :  { %371 = vsyncadd [#allocation4], 4294967264 }
 0x279   :  { %197 = vsyncpa [#allocation3], 1 }
 0x27a   :  { %198 = vsyncpa [#allocation6], 1 }
 0x27b   :  { %199 = vsyncpa [#allocation9], 1 }
 0x27c   :  { %200 = vsyncpa [#allocation4], 1 }

// kernel: visual_transformer_forward.13
= control target key start
LH: loop header
LB: loop body
LE: loop exit
PB: predicated region body
PF: predicated region fallthrough
CT: control target
= control target key end

     0   :  { %15 = vsyncpa [#allocation3], 0  ;;  %s1593_s0 = inlined_call_operand.hbm [shape: bf16[64,32], index: 0, kind: input, shape index: {}]   ;;  %s1594_s1 = inlined_call_operand.hbm [shape: f32[64,32], index: 1, kind: input, shape index: {}]   ;;  %s1595_s2 = inlined_call_operand.hbm [shape: bf16[32,32], index: 2, kind: input, shape index: {}]   ;;  %s1596_s3 = inlined_call_operand.hbm [shape: f32[1,32], index: 3, kind: input, shape index: {}]   ;;  %s1597_s4 = inlined_call_operand.hbm [shape: f32[1,32], index: 4, kind: input, shape index: {}]   ;;  %s1598_s5 = inlined_call_operand.hbm [shape: f32[1,32], index: 5, kind: input, shape index: {}]   ;;  %s1599_s6 = inlined_call_operand.hbm [shape: bf16[32,128], index: 6, kind: input, shape index: {}]   ;;  %s1600_s7 = inlined_call_operand.hbm [shape: f32[1,128], index: 7, kind: input, shape index: {}]   ;;  %s1601_s8 = inlined_call_operand.hbm [shape: bf16[128,32], index: 8, kind: input, shape index: {}]   ;;  %s1602_s9 = inlined_call_operand.hbm [shape: f32[1,32], index: 9, kind: input, shape index: {}]   ;;  %s1603_s10 = inlined_call_operand.hbm [shape: f32[64,32], index: 10, kind: output, shape index: {}]  }
   0x1   :  { %16 = vsyncpa [#allocation6], 0 }
   0x2   :  { %17 = vsyncpa [#allocation9], 0 }
   0x3   :  { %18 = vsyncpa [#allocation12], 0 }
   0x4   :  { %19 = vsyncpa [#allocation15], 0 }
   0x5   :  { %20 = vsyncpa [#allocation18], 0 }
   0x6   :  { %21 = vsyncpa [#allocation4], 0  ;;  %s1249_s13 = smov [#allocation5]   ;;  %s993_s17 = scalar_lea.hbm %s1594_s1, 1024 }
   0x7   :  { %s39_s14 = sshll.u32 %s1249_s13, 4  ;;  %p994_p0 = scmp.ne.s32.totalorder %s1594_s1, %s993_s17  ;;  %s40_s14 = int_to_ptr.vmem [resolvable:$true] %s39_s14 }
   0x8   :  { %p997_p1 = scmp.lt.u32.totalorder %s993_s17, %s1594_s1 }
   0xa   :  { %p999_p2 = pnand %p997_p1, %p994_p0 }
   0xc   :  { %1002 = shalt.err (!%p999_p2)
}
   0xd   :  { %s1003_s22 = scalar_lea.vmem %s40_s14, 1024  ;;  %p1008_p4 = scmp.lt.s32.totalorder %s40_s14, %s40_s14 }
   0xe   :  { %p1004_p3 = scmp.ne.s32.totalorder %s40_s14, %s1003_s22  ;;  %p1009_p5 = scmp.lt.s32.totalorder %s1003_s22, %s1003_s22 }
  0x10   :  { %p1010_p6 = por %p1009_p5, %p1008_p4 }
  0x12   :  { %p1011_p7 = pnand %p1010_p6, %p1004_p3 }
  0x14   :  { %1014 = shalt.err (!%p1011_p7)
}
  0x15   :  { %s1250_s23 = smov 128   ;;  %s1251_s24 = smov 8  }
  0x16   :  { %45 = dma.hbm_to_vmem [thread:$0]  %s1594_s1, 1024, %s40_s14, [#allocation6], %s1250_s23, %s1250_s23, %s1251_s24  }
  0x17   :  { %s1252_s27 = smov [#allocation8]   ;;  %s1253_s29 = smov [#allocation11]  }
  0x18   :  { %s64_s28 = sshll.u32 %s1252_s27, 4  ;;  %s84_s30 = sshll.u32 %s1253_s29, 4  ;;  %s65_s28 = int_to_ptr.vmem [resolvable:$true] %s64_s28  ;;  %s85_s30 = int_to_ptr.vmem [resolvable:$true] %s84_s30 }
  0x19   :  { %s1015_s13 = scalar_lea.hbm %s1596_s3, 16 }
  0x1a   :  { %p1016_p8 = scmp.ne.s32.totalorder %s1596_s3, %s1015_s13  ;;  %p1019_p9 = scmp.lt.u32.totalorder %s1015_s13, %s1596_s3 }
  0x1c   :  { %p1021_p10 = pnand %p1019_p9, %p1016_p8 }
  0x1e   :  { %1024 = shalt.err (!%p1021_p10)
}
  0x1f   :  { %s1025_s1 = scalar_lea.vmem %s65_s28, 16  ;;  %s1029_s14 = scalar_lea.vmem %s65_s28, 32 }
  0x20   :  { %p1026_p11 = scmp.ne.s32.totalorder %s65_s28, %s1025_s1  ;;  %p1030_p12 = scmp.lt.s32.totalorder %s65_s28, %s65_s28 }
  0x21   :  { %p1031_p13 = scmp.lt.s32.totalorder %s1029_s14, %s1025_s1 }
  0x23   :  { %p1032_p0 = por %p1031_p13, %p1030_p12 }
  0x25   :  { %p1033_p1 = pnand %p1032_p0, %p1026_p11 }
  0x27   :  { %1036 = shalt.err (!%p1033_p1)
}
  0x28   :  { %67 = dma.hbm_to_vmem [thread:$0]  %s1596_s3, 16, %s65_s28, [#allocation9]  }
  0x29   :  { %s1037_s25 = scalar_lea.hbm %s1598_s5, 16 }
  0x2a   :  { %p1038_p2 = scmp.ne.s32.totalorder %s1598_s5, %s1037_s25  ;;  %p1041_p3 = scmp.lt.u32.totalorder %s1037_s25, %s1598_s5 }
  0x2c   :  { %p1043_p4 = pnand %p1041_p3, %p1038_p2 }
  0x2e   :  { %1046 = shalt.err (!%p1043_p4)
}
  0x2f   :  { %s1047_s12 = scalar_lea.vmem %s85_s30, 16  ;;  %s1051_s13 = scalar_lea.vmem %s85_s30, 32 }
  0x30   :  { %p1048_p5 = scmp.ne.s32.totalorder %s85_s30, %s1047_s12  ;;  %p1052_p6 = scmp.lt.s32.totalorder %s85_s30, %s85_s30 }
  0x31   :  { %p1053_p7 = scmp.lt.s32.totalorder %s1051_s13, %s1047_s12 }
  0x33   :  { %p1054_p8 = por %p1053_p7, %p1052_p6 }
  0x35   :  { %p1055_p9 = pnand %p1054_p8, %p1048_p5 }
  0x37   :  { %1058 = shalt.err (!%p1055_p9)
}
  0x38   :  { %87 = dma.hbm_to_vmem [thread:$0]  %s1598_s5, 16, %s85_s30, [#allocation12]  }
  0x39   :  { %s1254_s15 = smov [#allocation14]   ;;  %s1255_s17 = smov [#allocation2]  }
  0x3a   :  { %s106_s16 = sshll.u32 %s1254_s15, 4  ;;  %s27_s18 = sshll.u32 %s1255_s17, 4  ;;  %s107_s16 = int_to_ptr.vmem [resolvable:$true] %s106_s16  ;;  %s28_s18 = int_to_ptr.vmem [resolvable:$true] %s27_s18 }
  0x3b   :  { %s1059_s19 = scalar_lea.hbm %s1600_s7, 16 }
  0x3c   :  { %p1060_p10 = scmp.ne.s32.totalorder %s1600_s7, %s1059_s19  ;;  %p1063_p11 = scmp.lt.u32.totalorder %s1059_s19, %s1600_s7 }
  0x3e   :  { %p1065_p12 = pnand %p1063_p11, %p1060_p10 }
  0x40   :  { %1068 = shalt.err (!%p1065_p12)
}
  0x41   :  { %s1069_s5 = scalar_lea.vmem %s107_s16, 16  ;;  %s1073_s30 = scalar_lea.vmem %s107_s16, 32 }
  0x42   :  { %p1070_p13 = scmp.ne.s32.totalorder %s107_s16, %s1069_s5  ;;  %p1074_p0 = scmp.lt.s32.totalorder %s107_s16, %s107_s16 }
  0x43   :  { %p1075_p1 = scmp.lt.s32.totalorder %s1073_s30, %s1069_s5 }
  0x45   :  { %p1076_p2 = por %p1075_p1, %p1074_p0 }
  0x47   :  { %p1077_p3 = pnand %p1076_p2, %p1070_p13 }
  0x49   :  { %1080 = shalt.err (!%p1077_p3)
}
  0x4a   :  { %109 = dma.hbm_to_vmem [thread:$0]  %s1600_s7, 16, %s107_s16, [#allocation15]  }
  0x4b   :  { %s1081_s12 = scalar_lea.hbm %s1593_s0, 512 }
  0x4c   :  { %p1082_p4 = scmp.ne.s32.totalorder %s1593_s0, %s1081_s12  ;;  %p1085_p5 = scmp.lt.u32.totalorder %s1081_s12, %s1593_s0 }
  0x4e   :  { %p1087_p6 = pnand %p1085_p5, %p1082_p4 }
  0x50   :  { %1090 = shalt.err (!%p1087_p6)
}
  0x51   :  { %s1091_s17 = scalar_lea.vmem %s28_s18, 512  ;;  %p1096_p8 = scmp.lt.s32.totalorder %s28_s18, %s28_s18 }
  0x52   :  { %p1092_p7 = scmp.ne.s32.totalorder %s28_s18, %s1091_s17  ;;  %p1097_p9 = scmp.lt.s32.totalorder %s1091_s17, %s1091_s17 }
  0x54   :  { %p1098_p10 = por %p1097_p9, %p1096_p8 }
  0x56   :  { %p1099_p11 = pnand %p1098_p10, %p1092_p7 }
  0x58   :  { %1102 = shalt.err (!%p1099_p11)
}
  0x59   :  { %s1256_s7 = smov 64   ;;  %s1257_s16 = smov 4  }
  0x5a   :  { %33 = dma.hbm_to_vmem [thread:$0]  %s1593_s0, 512, %s28_s18, [#allocation3], %s1256_s7, %s1256_s7, %s1257_s16  }
  0x5b   :  { %s1258_s19 = smov [#allocation7]   ;;  %s1259_s21 = smov [#allocation10]  }
  0x5c   :  { %s51_s20 = sshll.u32 %s1258_s19, 4  ;;  %s74_s22 = sshll.u32 %s1259_s21, 4  ;;  %s52_s20 = int_to_ptr.vmem [resolvable:$true] %s51_s20  ;;  %s75_s22 = int_to_ptr.vmem [resolvable:$true] %s74_s22 }
  0x5d   :  { %s1103_s30 = scalar_lea.hbm %s1595_s2, 256 }
  0x5e   :  { %p1104_p12 = scmp.ne.s32.totalorder %s1595_s2, %s1103_s30  ;;  %p1107_p13 = scmp.lt.u32.totalorder %s1103_s30, %s1595_s2 }
  0x60   :  { %p1109_p0 = pnand %p1107_p13, %p1104_p12 }
  0x62   :  { %1112 = shalt.err (!%p1109_p0)
}
  0x63   :  { %s1113_s0 = scalar_lea.vmem %s52_s20, 256  ;;  %p1118_p2 = scmp.lt.s32.totalorder %s52_s20, %s52_s20 }
  0x64   :  { %p1114_p1 = scmp.ne.s32.totalorder %s52_s20, %s1113_s0  ;;  %p1119_p3 = scmp.lt.s32.totalorder %s1113_s0, %s1113_s0 }
  0x66   :  { %p1120_p4 = por %p1119_p3, %p1118_p2 }
  0x68   :  { %p1121_p5 = pnand %p1120_p4, %p1114_p1 }
  0x6a   :  { %1124 = shalt.err (!%p1121_p5)
}
  0x6b   :  { %57 = dma.hbm_to_vmem [thread:$0]  %s1595_s2, 256, %s52_s20, [#allocation6], %s1256_s7, %s1256_s7, %s1257_s16  }
  0x6c   :  { %s1125_s28 = scalar_lea.hbm %s1597_s4, 16 }
  0x6d   :  { %p1126_p6 = scmp.ne.s32.totalorder %s1597_s4, %s1125_s28  ;;  %p1129_p7 = scmp.lt.u32.totalorder %s1125_s28, %s1597_s4 }
  0x6f   :  { %p1131_p8 = pnand %p1129_p7, %p1126_p6 }
  0x71   :  { %1134 = shalt.err (!%p1131_p8)
}
  0x72   :  { %s1135_s19 = scalar_lea.vmem %s75_s22, 16  ;;  %s1139_s21 = scalar_lea.vmem %s75_s22, 32 }
  0x73   :  { %p1136_p9 = scmp.ne.s32.totalorder %s75_s22, %s1135_s19  ;;  %p1140_p10 = scmp.lt.s32.totalorder %s75_s22, %s75_s22 }
  0x74   :  { %p1141_p11 = scmp.lt.s32.totalorder %s1139_s21, %s1135_s19 }
  0x76   :  { %p1142_p12 = por %p1141_p11, %p1140_p10 }
  0x78   :  { %p1143_p13 = pnand %p1142_p12, %p1136_p9 }
  0x7a   :  { %1146 = shalt.err (!%p1143_p13)
}
  0x7b   :  { %77 = dma.hbm_to_vmem [thread:$0]  %s1597_s4, 16, %s75_s22, [#allocation9]  }
  0x7c   :  { %s1260_s25 = smov [#allocation13]   ;;  %s1261_s30 = smov [#allocation16]  }
  0x7d   :  { %s93_s5 = sshll.u32 %s1260_s25, 4  ;;  %s115_s26 = sshll.u32 %s1261_s30, 4  ;;  %s94_s5 = int_to_ptr.vmem [resolvable:$true] %s93_s5  ;;  %s116_s26 = int_to_ptr.vmem [resolvable:$true] %s115_s26 }
  0x7e   :  { %s1147_s11 = scalar_lea.hbm %s1599_s6, 256 }
  0x7f   :  { %p1148_p0 = scmp.ne.s32.totalorder %s1599_s6, %s1147_s11  ;;  %p1151_p1 = scmp.lt.u32.totalorder %s1147_s11, %s1599_s6 }
  0x81   :  { %p1153_p2 = pnand %p1151_p1, %p1148_p0 }
  0x83   :  { %1156 = shalt.err (!%p1153_p2)
}
  0x84   :  { %s1157_s4 = scalar_lea.vmem %s94_s5, 256  ;;  %p1162_p4 = scmp.lt.s32.totalorder %s94_s5, %s94_s5 }
  0x85   :  { %p1158_p3 = scmp.ne.s32.totalorder %s94_s5, %s1157_s4  ;;  %p1163_p5 = scmp.lt.s32.totalorder %s1157_s4, %s1157_s4 }
  0x87   :  { %p1164_p6 = por %p1163_p5, %p1162_p4 }
  0x89   :  { %p1165_p7 = pnand %p1164_p6, %p1158_p3 }
  0x8b   :  { %1168 = shalt.err (!%p1165_p7)
}
  0x8c   :  { %99 = dma.hbm_to_vmem [thread:$0]  %s1599_s6, 256, %s94_s5, [#allocation12], %s1256_s7, %s1256_s7, %s1257_s16  }
  0x8d   :  { %s1169_s17 = scalar_lea.hbm %s1601_s8, 1024 }
  0x8e   :  { %p1170_p8 = scmp.ne.s32.totalorder %s1601_s8, %s1169_s17  ;;  %p1173_p9 = scmp.lt.u32.totalorder %s1169_s17, %s1601_s8 }
  0x90   :  { %p1175_p10 = pnand %p1173_p9, %p1170_p8 }
  0x92   :  { %1178 = shalt.err (!%p1175_p10)
}
  0x93   :  { %s1179_s2 = scalar_lea.vmem %s116_s26, 1024  ;;  %p1184_p12 = scmp.lt.s32.totalorder %s116_s26, %s116_s26 }
  0x94   :  { %p1180_p11 = scmp.ne.s32.totalorder %s116_s26, %s1179_s2  ;;  %p1185_p13 = scmp.lt.s32.totalorder %s1179_s2, %s1179_s2 }
  0x96   :  { %p1186_p0 = por %p1185_p13, %p1184_p12 }
  0x98   :  { %p1187_p1 = pnand %p1186_p0, %p1180_p11 }
  0x9a   :  { %1190 = shalt.err (!%p1187_p1)
}
  0x9b   :  { %121 = dma.hbm_to_vmem [thread:$0]  %s1601_s8, 1024, %s116_s26, [#allocation15], %s1256_s7, %s1256_s7, %s1257_s16  }
  0x9c   :  { %s1262_s25 = smov [#allocation17]   ;;  %s1191_s29 = scalar_lea.hbm %s1602_s9, 16 }
  0x9d   :  { %s128_s5 = sshll.u32 %s1262_s25, 4  ;;  %p1192_p2 = scmp.ne.s32.totalorder %s1602_s9, %s1191_s29  ;;  %s129_s5 = int_to_ptr.vmem [resolvable:$true] %s128_s5 }
  0x9e   :  { %p1195_p3 = scmp.lt.u32.totalorder %s1191_s29, %s1602_s9 }
  0xa0   :  { %p1197_p4 = pnand %p1195_p3, %p1192_p2 }
  0xa2   :  { %1200 = shalt.err (!%p1197_p4)
}
  0xa3   :  { %s1201_s13 = scalar_lea.vmem %s129_s5, 16  ;;  %s1205_s8 = scalar_lea.vmem %s129_s5, 32 }
  0xa4   :  { %p1202_p5 = scmp.ne.s32.totalorder %s129_s5, %s1201_s13  ;;  %p1206_p6 = scmp.lt.s32.totalorder %s129_s5, %s129_s5 }
  0xa5   :  { %p1207_p7 = scmp.lt.s32.totalorder %s1205_s8, %s1201_s13 }
  0xa7   :  { %p1208_p8 = por %p1207_p7, %p1206_p6 }
  0xa9   :  { %p1209_p9 = pnand %p1208_p8, %p1202_p5 }
  0xab   :  { %1212 = shalt.err (!%p1209_p9)
}
  0xac   :  { %131 = dma.hbm_to_vmem [thread:$0]  %s1602_s9, 16, %s129_s5, [#allocation18]  }
  0xad   :  { %1235 = dma.done.wait [#allocation3], 512  }
  0xae   :  { %1236 = vsyncadd [#allocation3], 4294966784 }
  0xaf   :  { %1237 = dma.done.wait [#allocation6], 1280  }
  0xb0   :  { %1238 = vsyncadd [#allocation6], 4294966016 }
  0xb1   :  { %1239 = dma.done.wait [#allocation9], 32  }
  0xb2   :  { %1240 = vsyncadd [#allocation9], 4294967264 }
  0xb3   :  { %1241 = dma.done.wait [#allocation12], 272  }
  0xb4   :  { %1242 = vsyncadd [#allocation12], 4294967024 }
  0xb5   :  { %1243 = dma.done.wait [#allocation15], 1040  }
  0xb6   :  { %1244 = vsyncadd [#allocation15], 4294966256 }
  0xb7   :  { %1245 = dma.done.wait [#allocation18], 16  }
  0xb8   :  { %1246 = vsyncadd [#allocation18], 4294967280  ;;  %v929_v0 = vld [vmem:[#allocation7] sm:$0xff]   ;;  %v930_v1 = vld [vmem:[#allocation7 + $0x8] sm:$0xff]   ;;  %vm215_vm0 = vcmask 261120   ;;  %s1263_s9 = smov [#allocation19]  }
  0xb9   :  { %866 = vmatprep.subr.bf16.mxu1 %v929_v0  ;;  %v931_v2 = vld [vmem:[#allocation2] sm:$0xff]   ;;  %v932_v3 = vld [vmem:[#allocation2 + $0x8] sm:$0xff]   ;;  %v933_v4 = vld [vmem:[#allocation2 + $0x10] sm:$0xff]   ;;  %s788_s26 = sshll.u32 %s1263_s9, 4  ;;  %s789_s26 = int_to_ptr.vmem [resolvable:$true] %s788_s26 }
  0xba   :  { %867 = vmatpush3.bf16.msra.mxu1 %v929_v0  ;;  %870 = vmatprep.mubr.msk.bf16.mxu1 %vm215_vm0, %v931_v2  ;;  %v934_v5 = vld [vmem:[#allocation2 + $0x18] sm:$0xff]   ;;  %v165_v6 = vld [vmem:[#allocation5 + $0x10] sm:$0xff]  ;;  %v163_v7 = vld [vmem:[#allocation5] sm:$0xff]  ;;  %s1213_s4 = scalar_lea.vmem %s789_s26, 1024  ;;  %p1218_p11 = scmp.lt.s32.totalorder %s789_s26, %s789_s26 }
  0xbb   :  { %868 = vmatprep.subr.bf16.mxu1 %v930_v1  ;;  %v815_v9 = vld [vmem:[#allocation8] ss:$0 sm:$0xff]  ;;  %v166_v10 = vld [vmem:[#allocation5 + $0x18] sm:$0xff]  ;;  %v164_v13 = vld [vmem:[#allocation5 + $0x8] sm:$0xff]  ;;  %p1214_p10 = scmp.ne.s32.totalorder %s789_s26, %s1213_s4  ;;  %p1219_p12 = scmp.lt.s32.totalorder %s1213_s4, %s1213_s4 }
  0xbc   :  { %v169_v25 = vld [vmem:[#allocation5 + $0x30] sm:$0xff]  ;;  %v167_v26 = vld [vmem:[#allocation5 + $0x20] sm:$0xff]  ;;  %v170_v29 = vld [vmem:[#allocation5 + $0x38] sm:$0xff] }
  0xbd   :  { %v168_v31 = vld [vmem:[#allocation5 + $0x28] sm:$0xff]  ;;  %p1220_p13 = por %p1219_p12, %p1218_p11 }
  0xbe   :  { %869 = vmatpush3.bf16.msra.mxu1 %v930_v1 }
  0xbf   :  { %p1221_p0 = pnand %p1220_p13, %p1214_p10 }
  0xc1   :  { %871 = vmatmul.mubr.msk.bf16.vlgmr.msra.gmra.mrb[0].mxu1 %vm215_vm0, %v932_v3 }
  0xc2   :  { %874 = vmatprep.mubr.msk.bf16.mxu1 %vm215_vm0, %v933_v4 }
  0xc9   :  { %875 = vmatmul.mubr.msk.bf16.gmra.mrb[4].mxu1 %vm215_vm0, %v934_v5 }
 0x194   :  { %v872_v8 = vpop.f32.mrb[0].mxu1 }
 0x195   :  { %v295_v11 = vadd.f32 %v872_v8, %v165_v6  ;;  %v262_v12 = vpop.f32.mrb[1].mxu1 }
 0x196   :  { %v293_v14 = vadd.f32 %v262_v12, %v163_v7  ;;  %v873_v15 = vpop.f32.mrb[2].mxu1 }
 0x197   :  { %v1458_v16 = vadd.f32 %v815_v9, %v295_v11  ;;  %v296_v17 = vadd.f32 %v873_v15, %v166_v10  ;;  %v265_v18 = vpop.f32.mrb[3].mxu1 }
 0x198   :  { %v1460_v19 = vadd.f32 %v815_v9, %v293_v14  ;;  %v294_v20 = vadd.f32 %v265_v18, %v164_v13 }
 0x199   :  { %v1462_v21 = vadd.f32 %v815_v9, %v296_v17  ;;  %v324_v22 = vsel %vm215_vm0, %v1458_v16, 0.0 }
 0x19a   :  { %v1466_v23 = vadd.f32 %v815_v9, %v294_v20  ;;  %325 = vadd.xlane.f32.xlu1 %v324_v22  ;;  %v318_v24 = vsel %vm215_vm0, %v1460_v19, 0.0 }
 0x19b   :  { %319 = vadd.xlane.f32.xlu0 %v318_v24  ;;  %v327_v30 = vsel %vm215_vm0, %v1462_v21, 0.0 }
 0x19c   :  { %v876_v27 = vpop.f32.mrb[4].mxu1  ;;  %v321_v35 = vsel %vm215_vm0, %v1466_v23, 0.0 }
 0x19d   :  { %v278_v28 = vpop.f32.mrb[5].mxu1  ;;  %v299_v32 = vadd.f32 %v876_v27, %v169_v25  ;;  %v935_v27 = vld [vmem:[#allocation13] sm:$0xff]  }
 0x19e   :  { %v297_v33 = vadd.f32 %v278_v28, %v167_v26  ;;  %v877_v34 = vpop.f32.mrb[6].mxu1  ;;  %328 = vadd.xlane.f32.xlu1 %v327_v30  ;;  %878 = vmatprep.subr.bf16.mxu1 %v935_v27  ;;  %v936_v28 = vld [vmem:[#allocation13 + $0x8] sm:$0xff]  }
 0x19f   :  { %v281_v36 = vpop.f32.mrb[7].mxu1  ;;  %322 = vadd.xlane.f32.xlu0 %v321_v35  ;;  %v300_v38 = vadd.f32 %v877_v34, %v170_v29  ;;  %v1476_v40 = vadd.f32 %v815_v9, %v299_v32  ;;  %879 = vmatpush3.bf16.msra.mxu1 %v935_v27 }
 0x1a0   :  { %v1474_v37 = vadd.f32 %v815_v9, %v297_v33  ;;  %v298_v39 = vadd.f32 %v281_v36, %v168_v31  ;;  %880 = vmatprep.subr.bf16.mxu1 %v936_v28 }
 0x1a1   :  { %v1482_v43 = vadd.f32 %v815_v9, %v300_v38  ;;  %v336_v45 = vsel %vm215_vm0, %v1476_v40, 0.0 }
 0x1a2   :  { %v1478_v41 = vadd.f32 %v815_v9, %v298_v39  ;;  %v330_v42 = vsel %vm215_vm0, %v1474_v37, 0.0 }
 0x1a3   :  { %331 = vadd.xlane.f32.xlu0 %v330_v42  ;;  %v339_v46 = vsel %vm215_vm0, %v1482_v43, 0.0  ;;  %881 = vmatpush3.bf16.msra.mxu1 %v936_v28 }
 0x1a4   :  { %v333_v44 = vsel %vm215_vm0, %v1478_v41, 0.0 }
 0x1a5   :  { %334 = vadd.xlane.f32.xlu1 %v333_v44 }
 0x1a7   :  { %337 = vadd.xlane.f32.xlu0 %v336_v45 }
 0x1a9   :  { %340 = vadd.xlane.f32.xlu1 %v339_v46 }
 0x227   :  { %v326_v47 = vpop.xlane.xlu1 %325 }
 0x228   :  { %v345_v48 = vmul.f32 0.03125, %v326_v47  ;;  %v320_v49 = vpop.xlane.xlu0 %319 }
 0x229   :  { %v343_v50 = vmul.f32 0.03125, %v320_v49 }
 0x22a   :  { %v1491_v51 = vsub.f32 %v1458_v16, %v345_v48 }
 0x22b   :  { %v1494_v52 = vsub.f32 %v1460_v19, %v343_v50  ;;  %v329_v53 = vpop.xlane.xlu1 %328 }
 0x22c   :  { %v346_v54 = vmul.f32 0.03125, %v329_v53  ;;  %v323_v55 = vpop.xlane.xlu0 %322  ;;  %v361_v61 = vmul.f32 %v1491_v51, %v1491_v51 }
 0x22d   :  { %v344_v56 = vmul.f32 0.03125, %v323_v55  ;;  %v359_v57 = vmul.f32 %v1494_v52, %v1494_v52 }
 0x22e   :  { %v1499_v58 = vsub.f32 %v1462_v21, %v346_v54  ;;  %v373_v5 = vsel %vm215_vm0, %v361_v61, 0.0  ;;  %v816_v61 = vld [vmem:[#allocation10] ss:$0 sm:$0xff] }
 0x22f   :  { %v1502_v59 = vsub.f32 %v1466_v23, %v344_v56  ;;  %v367_v60 = vsel %vm215_vm0, %v359_v57, 0.0 }
 0x230   :  { %368 = vadd.xlane.f32.xlu0 %v367_v60  ;;  %v332_v62 = vpop.xlane.xlu0 %331  ;;  %v362_v2 = vmul.f32 %v1499_v58, %v1499_v58 }
 0x231   :  { %v347_v63 = vmul.f32 0.03125, %v332_v62  ;;  %v360_v0 = vmul.f32 %v1502_v59, %v1502_v59 }
 0x232   :  { %v335_v1 = vpop.xlane.xlu1 %334  ;;  %v376_v12 = vsel %vm215_vm0, %v362_v2, 0.0 }
 0x233   :  { %v1512_v3 = vsub.f32 %v1474_v37, %v347_v63  ;;  %v348_v4 = vmul.f32 0.03125, %v335_v1  ;;  %v370_v6 = vsel %vm215_vm0, %v360_v0, 0.0 }
 0x234   :  { %374 = vadd.xlane.f32.xlu0 %v373_v5  ;;  %371 = vadd.xlane.f32.xlu1 %v370_v6  ;;  %v338_v7 = vpop.xlane.xlu0 %337  ;;  %v817_v5 = vld [vmem:[#allocation11] ss:$0 sm:$0xff] }
 0x235   :  { %v1517_v8 = vsub.f32 %v1478_v41, %v348_v4  ;;  %v349_v9 = vmul.f32 0.03125, %v338_v7  ;;  %v363_v10 = vmul.f32 %v1512_v3, %v1512_v3 }
 0x236   :  { %v341_v11 = vpop.xlane.xlu1 %340 }
 0x237   :  { %v1523_v13 = vsub.f32 %v1476_v40, %v349_v9  ;;  %v350_v14 = vmul.f32 0.03125, %v341_v11  ;;  %v379_v15 = vsel %vm215_vm0, %v363_v10, 0.0  ;;  %v364_v17 = vmul.f32 %v1517_v8, %v1517_v8 }
 0x238   :  { %377 = vadd.xlane.f32.xlu1 %v376_v12  ;;  %380 = vadd.xlane.f32.xlu0 %v379_v15 }
 0x239   :  { %v1529_v18 = vsub.f32 %v1482_v43, %v350_v14  ;;  %v365_v20 = vmul.f32 %v1523_v13, %v1523_v13  ;;  %v382_v22 = vsel %vm215_vm0, %v364_v17, 0.0 }
 0x23b   :  { %v385_v24 = vsel %vm215_vm0, %v365_v20, 0.0  ;;  %v366_v25 = vmul.f32 %v1529_v18, %v1529_v18 }
 0x23c   :  { %383 = vadd.xlane.f32.xlu1 %v382_v22  ;;  %386 = vadd.xlane.f32.xlu0 %v385_v24 }
 0x23d   :  { %v388_v26 = vsel %vm215_vm0, %v366_v25, 0.0 }
 0x240   :  { %389 = vadd.xlane.f32.xlu1 %v388_v26 }
 0x2bd   :  { %v369_v29 = vpop.xlane.xlu0 %368 }
 0x2be   :  { %v391_v30 = vmul.f32 0.03125, %v369_v29 }
 0x2c0   :  { %v399_v31 = vadd.f32 1e-05, %v391_v30 }
 0x2c1   :  { %v372_v32 = vpop.xlane.xlu1 %371  ;;  %v375_v33 = vpop.xlane.xlu0 %374 }
 0x2c2   :  { %945 = vrsqrt.f32 %v399_v31  ;;  %v392_v34 = vmul.f32 0.03125, %v372_v32  ;;  %v393_v35 = vmul.f32 0.03125, %v375_v33 }
 0x2c4   :  { %v400_v36 = vadd.f32 1e-05, %v392_v34  ;;  %v401_v38 = vadd.f32 1e-05, %v393_v35 }
 0x2c5   :  { %v378_v39 = vpop.xlane.xlu1 %377  ;;  %v381_v42 = vpop.xlane.xlu0 %380 }
 0x2c6   :  { %947 = vrsqrt.f32 %v400_v36  ;;  %v394_v44 = vmul.f32 0.03125, %v378_v39  ;;  %v395_v45 = vmul.f32 0.03125, %v381_v42  ;;  %v940_v39 = vld [vmem:[#allocation16 + $0x18] sm:$0xff]   ;;  %v941_v42 = vld [vmem:[#allocation16 + $0x20] sm:$0xff]  }
 0x2c7   :  { %949 = vrsqrt.f32 %v401_v38  ;;  %v938_v38 = vld [vmem:[#allocation16 + $0x8] sm:$0xff]  }
 0x2c8   :  { %v402_v46 = vadd.f32 1e-05, %v394_v44  ;;  %v403_v47 = vadd.f32 1e-05, %v395_v45  ;;  %v942_v44 = vld [vmem:[#allocation16 + $0x28] sm:$0xff]   ;;  %v943_v45 = vld [vmem:[#allocation16 + $0x30] sm:$0xff]  }
 0x2c9   :  { %v384_v48 = vpop.xlane.xlu1 %383  ;;  %v387_v49 = vpop.xlane.xlu0 %386 }
 0x2ca   :  { %951 = vrsqrt.f32 %v402_v46  ;;  %v396_v50 = vmul.f32 0.03125, %v384_v48  ;;  %v397_v53 = vmul.f32 0.03125, %v387_v49  ;;  %v944_v46 = vld [vmem:[#allocation16 + $0x38] sm:$0xff]  }
 0x2cb   :  { %953 = vrsqrt.f32 %v403_v47  ;;  %v818_v47 = vld [vmem:[#allocation14] ss:$0 sm:$0xff] }
 0x2cc   :  { %v946_v54 = vpop.eup %945  ;;  %v404_v55 = vadd.f32 1e-05, %v396_v50  ;;  %v405_v56 = vadd.f32 1e-05, %v397_v53 }
 0x2cd   :  { %v415_v57 = vmul.f32 %v946_v54, %v1494_v52  ;;  %v390_v60 = vpop.xlane.xlu1 %389 }
 0x2ce   :  { %955 = vrsqrt.f32 %v404_v55  ;;  %v398_v62 = vmul.f32 0.03125, %v390_v60 }
 0x2cf   :  { %957 = vrsqrt.f32 %v405_v56  ;;  %v429_v4 = vmul.f32 %v816_v61, %v415_v57 }
 0x2d0   :  { %v948_v63 = vpop.eup %947  ;;  %v406_v0 = vadd.f32 1e-05, %v398_v62 }
 0x2d1   :  { %v950_v1 = vpop.eup %949  ;;  %v416_v2 = vmul.f32 %v948_v63, %v1502_v59  ;;  %v443_v12 = vadd.f32 %v817_v5, %v429_v4 }
 0x2d2   :  { %v417_v6 = vmul.f32 %v950_v1, %v1491_v51  ;;  %959 = vrsqrt.f32 %v406_v0 }
 0x2d3   :  { %v430_v7 = vmul.f32 %v816_v61, %v416_v2 }
 0x2d4   :  { %v952_v9 = vpop.eup %951  ;;  %v431_v11 = vmul.f32 %v816_v61, %v417_v6 }
 0x2d5   :  { %v954_v10 = vpop.eup %953  ;;  %v418_v52 = vmul.f32 %v952_v9, %v1499_v58  ;;  %v444_v14 = vadd.f32 %v817_v5, %v430_v7 }
 0x2d6   :  { %v419_v15 = vmul.f32 %v954_v10, %v1512_v3  ;;  %v445_v59 = vadd.f32 %v817_v5, %v431_v11 }
 0x2d7   :  { %v432_v17 = vmul.f32 %v816_v61, %v418_v52  ;;  %v451_v20 = vpack.c.bf16 %v444_v14, %v443_v12 }
 0x2d8   :  { %v956_v22 = vpop.eup %955  ;;  %v433_v51 = vmul.f32 %v816_v61, %v419_v15 }
 0x2d9   :  { %v958_v24 = vpop.eup %957  ;;  %v446_v25 = vadd.f32 %v817_v5, %v432_v17  ;;  %v420_v26 = vmul.f32 %v956_v22, %v1517_v8  ;;  %882 = vmatprep.mubr.msk.bf16.mxu1 %vm215_vm0, %v451_v20 }
 0x2da   :  { %v421_v27 = vmul.f32 %v958_v24, %v1523_v13  ;;  %v447_v3 = vadd.f32 %v817_v5, %v433_v51  ;;  %v937_v13 = vld [vmem:[#allocation16] sm:$0xff]  }
 0x2db   :  { %v452_v28 = vpack.c.bf16 %v446_v25, %v445_v59  ;;  %v434_v29 = vmul.f32 %v816_v61, %v420_v26  ;;  %890 = vmatprep.subr.bf16.mxu0 %v937_v13 }
 0x2dc   :  { %v960_v58 = vpop.eup %959  ;;  %v435_v32 = vmul.f32 %v816_v61, %v421_v27  ;;  %891 = vmatpush3.bf16.msra.mxu0 %v937_v13 }
 0x2dd   :  { %v422_v30 = vmul.f32 %v960_v58, %v1529_v18  ;;  %883 = vmatmul.mubr.msk.bf16.vlgmr.msra.gmra.mrb[8].mxu1 %vm215_vm0, %v452_v28  ;;  %v448_v31 = vadd.f32 %v817_v5, %v434_v29  ;;  %892 = vmatprep.subr.bf16.mxu0 %v938_v38  ;;  %v939_v18 = vld [vmem:[#allocation16 + $0x10] sm:$0xff]  }
 0x2de   :  { %v449_v8 = vadd.f32 %v817_v5, %v435_v32 }
 0x2df   :  { %v453_v33 = vpack.c.bf16 %v448_v31, %v447_v3  ;;  %v436_v34 = vmul.f32 %v816_v61, %v422_v30 }
 0x2e0   :  { %893 = vmatpush3.bf16.msra.mxu0 %v938_v38 }
 0x2e1   :  { %886 = vmatprep.mubr.msk.bf16.mxu1 %vm215_vm0, %v453_v33  ;;  %v450_v35 = vadd.f32 %v817_v5, %v436_v34  ;;  %894 = vmatprep.subr.bf16.mxu0 %v939_v18 }
 0x2e3   :  { %v454_v36 = vpack.c.bf16 %v450_v35, %v449_v8 }
 0x2e4   :  { %895 = vmatpush3.bf16.msra.mxu0 %v939_v18 }
 0x2e5   :  { %887 = vmatmul.mubr.msk.bf16.gmra.mrb[12].mxu1 %vm215_vm0, %v454_v36  ;;  %896 = vmatprep.subr.bf16.mxu0 %v940_v39 }
 0x2e8   :  { %897 = vmatpush3.bf16.msra.mxu0 %v940_v39 }
 0x2e9   :  { %898 = vmatprep.subr.bf16.mxu0 %v941_v42 }
 0x2ec   :  { %899 = vmatpush3.bf16.msra.mxu0 %v941_v42 }
 0x2ed   :  { %900 = vmatprep.subr.bf16.mxu0 %v942_v44 }
 0x2f0   :  { %901 = vmatpush3.bf16.msra.mxu0 %v942_v44 }
 0x2f1   :  { %902 = vmatprep.subr.bf16.mxu0 %v943_v45 }
 0x2f4   :  { %903 = vmatpush3.bf16.msra.mxu0 %v943_v45 }
 0x2f5   :  { %904 = vmatprep.subr.bf16.mxu0 %v944_v46 }
 0x2f8   :  { %905 = vmatpush3.bf16.msra.mxu0 %v944_v46 }
 0x3b0   :  { %v884_v48 = vpop.f32.mrb[8].mxu1 }
 0x3b1   :  { %v1550_v49 = vadd.f32 %v884_v48, %v818_v47  ;;  %v524_v50 = vpop.f32.mrb[9].mxu1 }
 0x3b2   :  { %v1552_v53 = vadd.f32 %v818_v47, %v524_v50  ;;  %v885_v54 = vpop.f32.mrb[10].mxu1 }
 0x3b3   :  { %v827_v55 = vmul.f32 -1.702, %v1550_v49  ;;  %v1555_v56 = vadd.f32 %v885_v54, %v818_v47  ;;  %v527_v57 = vpop.f32.mrb[11].mxu1 }
 0x3b4   :  { %v825_v60 = vmul.f32 -1.702, %v1552_v53  ;;  %v528_v61 = vadd.f32 %v818_v47, %v527_v57 }
 0x3b5   :  { %v575_v62 = vmul.f32 1.442695, %v827_v55  ;;  %v828_v63 = vmul.f32 -1.702, %v1555_v56 }
 0x3b6   :  { %v571_v0 = vmul.f32 1.442695, %v825_v60  ;;  %v826_v1 = vmul.f32 -1.702, %v528_v61 }
 0x3b7   :  { %961 = vpow2.f32 %v575_v62  ;;  %v577_v2 = vmul.f32 1.442695, %v828_v63 }
 0x3b8   :  { %963 = vpow2.f32 %v571_v0  ;;  %v573_v4 = vmul.f32 1.442695, %v826_v1  ;;  %v888_v5 = vpop.f32.mrb[12].mxu1 }
 0x3b9   :  { %965 = vpow2.f32 %v577_v2  ;;  %v549_v6 = vadd.f32 %v888_v5, %v818_v47  ;;  %v540_v7 = vpop.f32.mrb[13].mxu1 }
 0x3ba   :  { %967 = vpow2.f32 %v573_v4  ;;  %v541_v9 = vadd.f32 %v818_v47, %v540_v7  ;;  %v889_v10 = vpop.f32.mrb[14].mxu1 }
 0x3bb   :  { %v831_v11 = vmul.f32 -1.702, %v549_v6  ;;  %v552_v52 = vadd.f32 %v889_v10, %v818_v47  ;;  %v543_v12 = vpop.f32.mrb[15].mxu1 }
 0x3bc   :  { %v829_v14 = vmul.f32 -1.702, %v541_v9  ;;  %v544_v15 = vadd.f32 %v818_v47, %v543_v12 }
 0x3bd   :  { %v583_v17 = vmul.f32 1.442695, %v831_v11  ;;  %v832_v20 = vmul.f32 -1.702, %v552_v52 }
 0x3be   :  { %v579_v22 = vmul.f32 1.442695, %v829_v14  ;;  %v830_v24 = vmul.f32 -1.702, %v544_v15 }
 0x3bf   :  { %969 = vpow2.f32 %v583_v17  ;;  %v585_v59 = vmul.f32 1.442695, %v832_v20 }
 0x3c0   :  { %971 = vpow2.f32 %v579_v22  ;;  %v581_v25 = vmul.f32 1.442695, %v830_v24 }
 0x3c1   :  { %v962_v26 = vpop.eup %961  ;;  %973 = vpow2.f32 %v585_v59 }
 0x3c2   :  { %v964_v51 = vpop.eup %963  ;;  %v589_v27 = vadd.f32 1.0, %v962_v26  ;;  %975 = vpow2.f32 %v581_v25 }
 0x3c3   :  { %v966_v28 = vpop.eup %965  ;;  %v587_v29 = vadd.f32 1.0, %v964_v51 }
 0x3c4   :  { %v968_v58 = vpop.eup %967  ;;  %977 = vrcp.f32 %v589_v27  ;;  %v590_v30 = vadd.f32 1.0, %v966_v28 }
 0x3c5   :  { %979 = vrcp.f32 %v587_v29  ;;  %v588_v3 = vadd.f32 1.0, %v968_v58 }
 0x3c6   :  { %981 = vrcp.f32 %v590_v30 }
 0x3c7   :  { %983 = vrcp.f32 %v588_v3 }
 0x3c9   :  { %v970_v31 = vpop.eup %969 }
 0x3ca   :  { %v972_v32 = vpop.eup %971  ;;  %v593_v33 = vadd.f32 1.0, %v970_v31 }
 0x3cb   :  { %v974_v34 = vpop.eup %973  ;;  %v591_v8 = vadd.f32 1.0, %v972_v32 }
 0x3cc   :  { %v976_v35 = vpop.eup %975  ;;  %985 = vrcp.f32 %v593_v33  ;;  %v594_v36 = vadd.f32 1.0, %v974_v34 }
 0x3cd   :  { %987 = vrcp.f32 %v591_v8  ;;  %v592_v13 = vadd.f32 1.0, %v976_v35 }
 0x3ce   :  { %v978_v38 = vpop.eup %977  ;;  %989 = vrcp.f32 %v594_v36 }
 0x3cf   :  { %v980_v18 = vpop.eup %979  ;;  %991 = vrcp.f32 %v592_v13  ;;  %v613_v44 = vmul.f32 %v978_v38, %v1550_v49 }
 0x3d0   :  { %v982_v39 = vpop.eup %981  ;;  %v611_v46 = vmul.f32 %v980_v18, %v1552_v53 }
 0x3d1   :  { %v984_v42 = vpop.eup %983  ;;  %v614_v45 = vmul.f32 %v982_v39, %v1555_v56  ;;  %v841_v56 = vld [vmem:[#allocation17] ss:$0 sm:$0xff] }
 0x3d2   :  { %v612_v47 = vmul.f32 %v984_v42, %v528_v61 }
 0x3d3   :  { %v636_v48 = vpack.c.bf16 %v614_v45, %v613_v44 }
 0x3d4   :  { %v635_v50 = vpack.c.bf16 %v612_v47, %v611_v46 }
 0x3d6   :  { %v986_v54 = vpop.eup %985  ;;  %906 = vmatprep.mubr.bf16.mxu0 %v635_v50 }
 0x3d7   :  { %v988_v55 = vpop.eup %987  ;;  %907 = vmatmul.mubr.bf16.vlgmr.msra.gmra.mrb[0].mxu0 %v636_v48  ;;  %v617_v62 = vmul.f32 %v986_v54, %v549_v6 }
 0x3d8   :  { %v990_v57 = vpop.eup %989  ;;  %v615_v0 = vmul.f32 %v988_v55, %v541_v9 }
 0x3d9   :  { %v992_v60 = vpop.eup %991  ;;  %v618_v63 = vmul.f32 %v990_v57, %v552_v52 }
 0x3da   :  { %v616_v1 = vmul.f32 %v992_v60, %v544_v15 }
 0x3db   :  { %v638_v2 = vpack.c.bf16 %v618_v63, %v617_v62 }
 0x3dc   :  { %v637_v4 = vpack.c.bf16 %v616_v1, %v615_v0 }
 0x3de   :  { %910 = vmatprep.mubr.bf16.mxu0 %v637_v4 }
 0x3df   :  { %911 = vmatmul.mubr.bf16.gmra.mrb[4].mxu0 %v638_v2 }
 0x4aa   :  { %v908_v49 = vpop.f32.mrb[0].mxu0 }
 0x4ab   :  { %v754_v53 = vadd.f32 %v908_v49, %v1458_v16  ;;  %v721_v61 = vpop.f32.mrb[1].mxu0 }
 0x4ac   :  { %v752_v5 = vadd.f32 %v721_v61, %v1460_v19  ;;  %v909_v7 = vpop.f32.mrb[2].mxu0 }
 0x4ad   :  { %v769_v10 = vadd.f32 %v841_v56, %v754_v53  ;;  %v755_v11 = vadd.f32 %v909_v7, %v1462_v21  ;;  %v724_v12 = vpop.f32.mrb[3].mxu0 }
 0x4ae   :  { %v767_v6 = vadd.f32 %v841_v56, %v752_v5  ;;  %v753_v9 = vadd.f32 %v724_v12, %v1466_v23 }
 0x4af   :  { %777 = vst.msk [vmem:[#allocation19 + $0x10] sm:$0xff] %vm215_vm0, %v769_v10  ;;  %v770_v52 = vadd.f32 %v841_v56, %v755_v11 }
 0x4b0   :  { %775 = vst.msk [vmem:[#allocation19] sm:$0xff] %vm215_vm0, %v767_v6  ;;  %v768_v14 = vadd.f32 %v841_v56, %v753_v9 }
 0x4b1   :  { %778 = vst.msk [vmem:[#allocation19 + $0x18] sm:$0xff] %vm215_vm0, %v770_v52 }
 0x4b2   :  { %776 = vst.msk [vmem:[#allocation19 + $0x8] sm:$0xff] %vm215_vm0, %v768_v14  ;;  %v912_v16 = vpop.f32.mrb[4].mxu0 }
 0x4b3   :  { %v758_v19 = vadd.f32 %v912_v16, %v1476_v40  ;;  %v737_v15 = vpop.f32.mrb[5].mxu0 }
 0x4b4   :  { %v756_v21 = vadd.f32 %v737_v15, %v1474_v37  ;;  %v913_v17 = vpop.f32.mrb[6].mxu0 }
 0x4b5   :  { %v773_v20 = vadd.f32 %v841_v56, %v758_v19  ;;  %v759_v23 = vadd.f32 %v913_v17, %v1482_v43  ;;  %v740_v22 = vpop.f32.mrb[7].mxu0 }
 0x4b6   :  { %v771_v24 = vadd.f32 %v841_v56, %v756_v21  ;;  %v757_v59 = vadd.f32 %v740_v22, %v1478_v41 }
 0x4b7   :  { %781 = vst.msk [vmem:[#allocation19 + $0x30] sm:$0xff] %vm215_vm0, %v773_v20  ;;  %v774_v25 = vadd.f32 %v841_v56, %v759_v23 }
 0x4b8   :  { %779 = vst.msk [vmem:[#allocation19 + $0x20] sm:$0xff] %vm215_vm0, %v771_v24  ;;  %v772_v26 = vadd.f32 %v841_v56, %v757_v59 }
 0x4b9   :  { %782 = vst.msk [vmem:[#allocation19 + $0x38] sm:$0xff] %vm215_vm0, %v774_v25 }
 0x4ba   :  { %780 = vst.msk [vmem:[#allocation19 + $0x28] sm:$0xff] %vm215_vm0, %v772_v26 }
 0x4bb   :  { %1224 = shalt.err (!%p1221_p0)
}
 0x4bc   :  { %s1225_s28 = scalar_lea.hbm %s1603_s10, 1024 }
 0x4bd   :  { %p1226_p1 = scmp.ne.s32.totalorder %s1603_s10, %s1225_s28  ;;  %p1229_p2 = scmp.lt.u32.totalorder %s1225_s28, %s1603_s10 }
 0x4bf   :  { %p1231_p3 = pnand %p1229_p2, %p1226_p1 }
 0x4c1   :  { %1234 = shalt.err (!%p1231_p3)
}
 0x4c2   :  { %794 = dma.vmem_to_hbm [thread:$0]  %s789_s26, 1024, %s1603_s10, [#allocation4], %s1250_s23, %s1250_s23, %s1251_s24  }
 0x4c3   :  { %1247 = dma.done.wait [#allocation4], 1024  }
 0x4c4   :  { %1248 = vsyncadd [#allocation4], 4294966272 }
 0x4c5   :  { %798 = vsyncpa [#allocation3], 1 }
 0x4c6   :  { %799 = vsyncpa [#allocation6], 1 }
 0x4c7   :  { %800 = vsyncpa [#allocation9], 1 }
 0x4c8   :  { %801 = vsyncpa [#allocation12], 1 }
 0x4c9   :  { %802 = vsyncpa [#allocation15], 1 }
 0x4ca   :  { %803 = vsyncpa [#allocation18], 1 }
 0x4cb   :  { %804 = vsyncpa [#allocation4], 1 }

</bundles_post_ra>
